<compile_context>
chip_gen: v7x
topology: tpu7x:2x2x1
jax: 0.10.0
libtpu: 0.0.40
codegen_flags: <defaults>
</compile_context>

<pallas_src>
import functools

import jax
import jax.numpy as jnp
import numpy as np
from jax import lax
from jax.experimental import pallas as pl
from jax.experimental.pallas import tpu as pltpu

# ----------------------------- configuration ------------------------------- #
INP_DIM   = 6          # quantitative input features (useTime=False)
NB_POI    = 18         # nb_poi_class
POI_EMB   = 2          # poi_emb_dim
EMB_SIZE  = 2          # embedding_size
NEG_SLOPE = 0.2
OUT_DIM   = INP_DIM    # self.outp_dim (pred_time & sep_prd -> unchanged)

ENC_DIMS = [INP_DIM + POI_EMB, 16, 8, 4, EMB_SIZE]   # encoder MLP (LeakyReLU incl. out)
DEC_DIMS = [EMB_SIZE, 8, 16, 8, OUT_DIM]             # decoder MLP (no out act)
CLS_DIMS = [EMB_SIZE, 8, 16, NB_POI]                 # classifier MLP (LeakyReLU incl. out)
PRD_DIMS = [EMB_SIZE, 4, 8, 4, 2, 1]                 # mean_time_pred MLP (no out act)

ENC_N = len(ENC_DIMS) - 1   # 4
DEC_N = len(DEC_DIMS) - 1   # 4
CLS_N = len(CLS_DIMS) - 1   # 3
PRD_N = len(PRD_DIMS) - 1   # 5
HEAD_DEPTH = max(DEC_N, CLS_N, PRD_N)   # 5 fused head blocks
N_BLK = ENC_N + HEAD_DEPTH              # 9 resident 128x128 weight blocks

LANES = 128
# lane layout of the fused per-row output slab
EMB_LANE0   = 0                         # embedding lanes 0..1
QUANT_LANE0 = 2                         # quant input / decoder output lanes 2..7
CLS_LANE0   = QUANT_LANE0 + OUT_DIM     # classifier logits / one-hot lanes 8..25
PRED_LANE   = CLS_LANE0 + NB_POI        # 26
CATE_LANE   = LANES - 1                 # cate id stored (as float) in lane 127
# intermediate lane bases for the fused dec | cls | prd head chain
DEC_BASE, CLS_BASE, PRD_BASE = 32, 48, 64
PRD_D3_W = PRD_DIMS[4]                  # width of pred depth-3 output (= 2)


def _round_up(x, m):
    return ((x + m - 1) // m) * m


B_ROWS = _round_up(N_BLK, 8)            # bias slab rows, padded to sublane multiple


# ------------------------------ param packing ------------------------------ #
def _get(layer_params, li):
    W = np.asarray(layer_params[2 * li], np.float32)                 # [din, dout]
    b = np.asarray(layer_params[2 * li + 1], np.float32).reshape(-1)
    return W, b


def pack_params(emb_table, layer_params):
    """Pack emb table + 16 layers into 9 fused 128x128 bf16 blocks + f32 biases."""
    w = np.zeros((N_BLK * LANES, LANES), np.float32)
    b = np.zeros((B_ROWS, LANES), np.float32)
    E = np.asarray(emb_table, np.float32)                            # [18, 2]

    def put(blk, row0, col0, W, bias=None):
        din, dout = W.shape
        w[blk * LANES + row0: blk * LANES + row0 + din, col0: col0 + dout] = W
        if bias is not None:
            b[blk, col0: col0 + dout] = bias

    dec_li = lambda k: ENC_N + k
    cls_li = lambda k: ENC_N + DEC_N + k
    prd_li = lambda k: ENC_N + DEC_N + CLS_N + k

    # ---- encoder blocks 0..3 (embedding lookup folded into block 0) ----
    W0, b0 = _get(layer_params, 0)                                   # [8, 16]
    put(0, QUANT_LANE0, 0, W0[:INP_DIM, :], b0)                      # quant rows 2..7
    put(0, CLS_LANE0, 0, E @ W0[INP_DIM:, :])                        # one-hot rows 8..25
    for k in range(1, ENC_N):
        Wk, bk = _get(layer_params, k)
        put(k, 0, 0, Wk, bk)

    # ---- fused dec | cls | prd heads, blocks 4..8 ----
    B0 = ENC_N
    # depth 0: embedding rows 0..1 -> disjoint head lanes
    Wd, bd = _get(layer_params, dec_li(0)); put(B0 + 0, 0, DEC_BASE, Wd, bd)
    Wc, bc = _get(layer_params, cls_li(0)); put(B0 + 0, 0, CLS_BASE, Wc, bc)
    Wp, bp = _get(layer_params, prd_li(0)); put(B0 + 0, 0, PRD_BASE, Wp, bp)
    # depth 1
    Wd, bd = _get(layer_params, dec_li(1)); put(B0 + 1, DEC_BASE, DEC_BASE, Wd, bd)
    Wc, bc = _get(layer_params, cls_li(1)); put(B0 + 1, CLS_BASE, CLS_BASE, Wc, bc)
    Wp, bp = _get(layer_params, prd_li(1)); put(B0 + 1, PRD_BASE, PRD_BASE, Wp, bp)
    # depth 2 (classifier final -> lands directly at CLS_LANE0)
    Wd, bd = _get(layer_params, dec_li(2)); put(B0 + 2, DEC_BASE, DEC_BASE, Wd, bd)
    Wc, bc = _get(layer_params, cls_li(2)); put(B0 + 2, CLS_BASE, CLS_LANE0, Wc, bc)
    Wp, bp = _get(layer_params, prd_li(2)); put(B0 + 2, PRD_BASE, PRD_BASE, Wp, bp)
    # depth 3 (decoder final -> QUANT_LANE0; classifier identity pass-through)
    Wd, bd = _get(layer_params, dec_li(3)); put(B0 + 3, DEC_BASE, QUANT_LANE0, Wd, bd)
    put(B0 + 3, CLS_LANE0, CLS_LANE0, np.eye(NB_POI, dtype=np.float32))
    Wp, bp = _get(layer_params, prd_li(3)); put(B0 + 3, PRD_BASE, PRD_BASE, Wp, bp)
    # depth 4 (pred final -> PRED_LANE; decoder & classifier identity pass-through)
    put(B0 + 4, QUANT_LANE0, QUANT_LANE0, np.eye(OUT_DIM, dtype=np.float32))
    put(B0 + 4, CLS_LANE0, CLS_LANE0, np.eye(NB_POI, dtype=np.float32))
    Wp, bp = _get(layer_params, prd_li(4)); put(B0 + 4, PRD_BASE, PRED_LANE, Wp, bp)

    return jnp.asarray(w, jnp.bfloat16), jnp.asarray(b, jnp.float32)


# ------------------------------ kernel body -------------------------------- #
def ae_kernel(w_ref, b_ref, x_ref, out_ref, part_ref, *, batch, tile):
    tile_idx = pl.program_id(0)
    x_in = x_ref[...]                         # [TB, 128] f32; quant@2..7, cate@127
    biases = b_ref[...]                       # [B_ROWS, 128] f32

    lane = lax.broadcasted_iota(jnp.int32, (tile, LANES), 1)
    cate = x_in[:, CATE_LANE:CATE_LANE + 1].astype(jnp.int32)          # [TB, 1]
    onehot = (lane == (cate + CLS_LANE0)).astype(jnp.float32)          # one @ lane cate+8

    def wblk(k):                              # static slice of the resident bf16 slab
        return w_ref[k * LANES:(k + 1) * LANES, :]

    def leaky(v):                             # f32 VPU
        return jnp.where(v >= 0.0, v, NEG_SLOPE * v)

    prd_d3 = (lane >= PRD_BASE) & (lane < PRD_BASE + PRD_D3_W)

    # single 9-block bf16 MXU chain: encoder(4) -> fused dec|cls|prd heads(5)
    h = x_in + onehot                         # emb lookup folded into block 0
    embedding = None
    for k in range(N_BLK):
        h = jnp.dot(h.astype(jnp.bfloat16), wblk(k),
                    preferred_element_type=jnp.float32) + biases[k]
        if k < ENC_N + 3:                     # encoder + head depths 0..2: leaky everywhere
            h = leaky(h)
        elif k == ENC_N + 3:                  # head depth 3: only the pred branch activates
            h = jnp.where(prd_d3, leaky(h), h)
        # k == N_BLK-1: no activation (dec/cls pass-through, pred final layer)
        if k == ENC_N - 1:
            embedding = h                     # lanes 0..1
    heads = h                                 # dec@2..7 | cls logits@8..25 | pred@26

    # fused, lane-disjoint per-row output slab -> single dense store
    out_ref[...] = embedding + heads

    # ------------------------- losses (tile partials, f32) ----------------- #
    row = tile_idx * tile + lax.broadcasted_iota(jnp.int32, (tile, 1), 0)
    valid = (row < batch).astype(jnp.float32)                          # [TB, 1]

    quant_mask = (lane >= QUANT_LANE0) & (lane < QUANT_LANE0 + INP_DIM)
    d = x_in - heads                                                   # aligned lanes 2..7
    unsum = jnp.where(quant_mask, d * d, 0.0) * valid
    unsum_col = jnp.sum(unsum, axis=0)                                 # [128]
    loss_rec = jnp.sum(unsum_col)

    cls_mask = (lane >= CLS_LANE0) & (lane < CLS_LANE0 + NB_POI)
    logits_m = jnp.where(cls_mask, heads, jnp.float32(-1e30))          # keep f32 (-1e30 sentinel)
    m = jnp.max(logits_m, axis=-1, keepdims=True)
    lse = jnp.log(jnp.sum(jnp.exp(logits_m - m), axis=-1, keepdims=True)) + m
    ce_row = -jnp.sum(onehot * (heads - lse), axis=-1, keepdims=True)  # [TB, 1]
    loss_cls = jnp.sum(ce_row * valid)

    # per-tile partial block: row 0 = per-feature recon sums, row 1 lane0/1 = scalars
    sub8 = lax.broadcasted_iota(jnp.int32, (8, LANES), 0)
    lane8 = lax.broadcasted_iota(jnp.int32, (8, LANES), 1)
    col_b = jnp.broadcast_to(unsum_col[None, :], (8, LANES))
    blk = jnp.where(sub8 == 0, col_b, 0.0)
    blk = blk + jnp.where((sub8 == 1) & (lane8 == 0), loss_rec, 0.0)
    blk = blk + jnp.where((sub8 == 1) & (lane8 == 1), loss_cls, 0.0)
    part_ref[...] = blk.reshape(1, 8, LANES)


# ------------------------------ host wrapper -------------------------------- #
def _device_defaults():
    """(tile_batch, vmem_limit_bytes) per TPU generation (v7x: 64 MiB VMEM/TC)."""
    try:
        kind = jax.devices()[0].device_kind.lower()
    except Exception:
        kind = ""
    if any(t in kind for t in ("v4", "v5", "v6")):     # 128 MiB VMEM parts
        return 2048, 64 * 1024 * 1024
    return 512, 40 * 1024 * 1024                       # v7x / unknown: stay modest


def autoencoder_forward(quant_inp, cate_inp, emb_table, layer_params, *,
                        tile_batch=None):
    B = quant_inp.shape[0]
    default_tb, vmem_limit = _device_defaults()
    if tile_batch is None:
        tile_batch = default_tb
    w_slab, b_slab = pack_params(emb_table, layer_params)

    TB = min(int(tile_batch), _round_up(B, 8))
    if B >= 16:                        # keep >=2 grid tiles so both v7x TCs get work
        TB = min(TB, _round_up(-(-B // 2), 8))
    TB = _round_up(max(TB, 8), 8)
    num_tiles = -(-B // TB)
    B_pad = num_tiles * TB

    # host-side layout plumbing (stays in XLA): one lane-dense row slab
    quant = jnp.asarray(quant_inp, jnp.float32)
    x_slab = jnp.zeros((B_pad, LANES), jnp.float32)
    x_slab = x_slab.at[:B, QUANT_LANE0:QUANT_LANE0 + INP_DIM].set(quant)
    x_slab = x_slab.at[:B, CATE_LANE].set(
        jnp.asarray(cate_inp, jnp.int32).reshape(-1).astype(jnp.float32))

    kernel = functools.partial(ae_kernel, batch=B, tile=TB)
    out_shape = (
        jax.ShapeDtypeStruct((B_pad, LANES), jnp.float32),           # fused per-row slab
        jax.ShapeDtypeStruct((num_tiles, 8, LANES), jnp.float32),    # per-tile loss partials
    )

    def _build(single_buffer_resident):
        def resident(shape):
            idx = lambda i: (0,) * len(shape)
            if single_buffer_resident:
                # constant index_map -> double-buffering the slab is pure VMEM waste
                return pl.BlockSpec(shape, idx,
                                    pipeline_mode=pl.Buffered(buffer_count=1))
            return pl.BlockSpec(shape, idx)
        return pl.pallas_call(
            kernel,
            grid=(num_tiles,),
            in_specs=[
                resident((N_BLK * LANES, LANES)),            # resident bf16 weights
                resident((B_ROWS, LANES)),                   # resident f32 biases
                pl.BlockSpec((TB, LANES), lambda i: (i, 0)), # row tile (quant + cate lane)
            ],
            out_specs=(
                pl.BlockSpec((TB, LANES), lambda i: (i, 0)),
                pl.BlockSpec((1, 8, LANES), lambda i: (i, 0, 0)),
            ),
            out_shape=out_shape,
            compiler_params=pltpu.CompilerParams(
                dimension_semantics=("parallel",),
                vmem_limit_bytes=vmem_limit,
            ),
        )

    try:
        out_slab, partials = _build(True)(w_slab, b_slab, x_slab)
    except Exception:   # pl.Buffered(1) not supported on this jax/Mosaic version
        out_slab, partials = _build(False)(w_slab, b_slab, x_slab)

    out_slab = out_slab[:B]
    embedding = out_slab[:, EMB_LANE0:EMB_LANE0 + EMB_SIZE]
    output = out_slab[:, QUANT_LANE0:QUANT_LANE0 + OUT_DIM + NB_POI]
    preds = out_slab[:, PRED_LANE:PRED_LANE + 1]

    p = jnp.sum(partials, axis=0)                                    # [8, 128]
    loss_unsum_col = p[0, QUANT_LANE0:QUANT_LANE0 + INP_DIM]         # [INP_DIM]
    loss_rec = p[1, 0]
    loss_cls = p[1, 1]
    # reference uses reduction='sum' for both losses -> no normalization needed
    return embedding, output, loss_rec, preds, loss_unsum_col, loss_cls


# --------------------------- reference / params ----------------------------- #
def reference_forward(quant_inp, cate_inp, emb_table, layer_params):
    """Pure-JAX f32 reference of the PyTorch forward (self-check only)."""
    def leaky(v):
        return jnp.where(v >= 0.0, v, NEG_SLOPE * v)

    def mlp(h, lo, n, out_act):
        for i in range(n):
            W = jnp.asarray(layer_params[2 * (lo + i)], jnp.float32)
            b = jnp.asarray(layer_params[2 * (lo + i) + 1], jnp.float32).reshape(-1)
            h = h @ W + b
            if i < n - 1 or out_act:
                h = leaky(h)
        return h

    x = jnp.asarray(quant_inp, jnp.float32)
    cate = jnp.asarray(cate_inp, jnp.int32)
    xe = jnp.concatenate([x, jnp.asarray(emb_table, jnp.float32)[cate]], axis=-1)
    emb = mlp(xe, 0, ENC_N, True)
    dec = mlp(emb, ENC_N, DEC_N, False)
    cls = mlp(emb, ENC_N + DEC_N, CLS_N, True)
    prd = mlp(emb, ENC_N + DEC_N + CLS_N, PRD_N, False)
    output = jnp.concatenate([dec, cls], axis=-1)
    sq = (x - dec) ** 2
    lse = jax.nn.logsumexp(cls, axis=-1, keepdims=True)
    onehot = jax.nn.one_hot(cate, NB_POI, dtype=jnp.float32)
    loss_cls = -jnp.sum(onehot * (cls - lse))
    return emb, output, jnp.sum(sq), prd, jnp.sum(sq, axis=0), loss_cls


def init_params(key):
    """Deterministic synthetic parameters (weights [in, out], biases [out])."""
    dims = ([(ENC_DIMS[i], ENC_DIMS[i + 1]) for i in range(ENC_N)]
            + [(DEC_DIMS[i], DEC_DIMS[i + 1]) for i in range(DEC_N)]
            + [(CLS_DIMS[i], CLS_DIMS[i + 1]) for i in range(CLS_N)]
            + [(PRD_DIMS[i], PRD_DIMS[i + 1]) for i in range(PRD_N)])
    n_layers = len(dims)
    keys = jax.random.split(key, 2 * n_layers + 1)
    layer_params = []
    for i, (din, dout) in enumerate(dims):
        w = 0.3 * jax.random.normal(keys[2 * i], (din, dout), jnp.float32)
        b = 0.05 * jax.random.normal(keys[2 * i + 1], (dout,), jnp.float32)
        layer_params += [w, b]
    emb_table = 0.5 * jax.random.normal(keys[-1], (NB_POI, POI_EMB), jnp.float32)
    return emb_table, layer_params


def _close(a, b, atol=5e-2, rtol=5e-2):
    a = np.asarray(a, np.float64)
    b = np.asarray(b, np.float64)
    return bool(np.all(np.abs(a - b) <= atol + rtol * np.abs(b)))


if __name__ == "__main__":
    key = jax.random.PRNGKey(0)
    k_q, k_c, k_p = jax.random.split(key, 3)

    B = 37   # deliberately not a multiple of the tile to exercise padding/masking
    quant_inp = jax.random.normal(k_q, (B, INP_DIM), jnp.float32)
    cate_inp = jax.random.randint(k_c, (B,), 0, NB_POI, jnp.int32)
    emb_table, layer_params = init_params(k_p)

    results = autoencoder_forward(quant_inp, cate_inp, emb_table, layer_params,
                                  tile_batch=16)   # grid=(3,) in the demo
    results = jax.block_until_ready(results)
    embedding, output, loss_reconst, preds, loss_unsum_col, loss_poi_class = results

    assert embedding.shape == (B, EMB_SIZE)
    assert output.shape == (B, OUT_DIM + NB_POI)
    assert preds.shape == (B, 1)
    assert loss_unsum_col.shape == (INP_DIM,)
    assert loss_reconst.shape == () and loss_poi_class.shape == ()
    assert bool(jnp.isfinite(loss_reconst)) and bool(jnp.isfinite(loss_poi_class))

    # numerical self-check against a pure-JAX f32 reference (bf16 matmuls -> loose tol)
    r_emb, r_out, r_rec, r_prd, r_col, r_cls = [
        np.asarray(t) for t in reference_forward(quant_inp, cate_inp,
                                                 emb_table, layer_params)]
    assert _close(embedding, r_emb)
    assert _close(output, r_out)
    assert _close(preds, r_prd)
    assert _close(loss_unsum_col, r_col)
    assert _close(loss_reconst, r_rec)
    assert _close(loss_poi_class, r_cls)

    print("KERNEL_OK")
</pallas_src>

<mosaic_0001>
module attributes {stable_mosaic.version = 11 : i64} {
  func.func @ae_kernel(%arg0: i32, %arg1: memref<1152x128xbf16, #tpu.memory_space<vmem>>, %arg2: memref<16x128xf32, #tpu.memory_space<vmem>>, %arg3: memref<16x128xf32, #tpu.memory_space<vmem>>, %arg4: memref<16x128xf32, #tpu.memory_space<vmem>>, %arg5: memref<1x8x128xf32, #tpu.memory_space<vmem>>) attributes {dimension_semantics = [#tpu.dimension_semantics<parallel>], iteration_bounds = array<i64: 3>, scalar_prefetch = 0 : i64, scratch_operands = 0 : i64, tpu.core_type = #tpu.core_type<tc>, window_params = [{pipeline_mode = #tpu.pipeline_mode<synchronous>, transform_indices = @transform_0, window_bounds = array<i64: 1152, 128>}, {pipeline_mode = #tpu.pipeline_mode<synchronous>, transform_indices = @transform_1, window_bounds = array<i64: 16, 128>}, {transform_indices = @transform_2, window_bounds = array<i64: 16, 128>}, {transform_indices = @transform_3, window_bounds = array<i64: 16, 128>}, {transform_indices = @transform_4, window_bounds = array<i64: 1, 8, 128>}]} {
    %c0 = arith.constant 0 : index
    %c0_0 = arith.constant 0 : index
    %0 = vector.load %arg3[%c0, %c0_0] : memref<16x128xf32, #tpu.memory_space<vmem>>, vector<16x128xf32>
    %c0_1 = arith.constant 0 : index
    %c0_2 = arith.constant 0 : index
    %1 = vector.load %arg2[%c0_1, %c0_2] : memref<16x128xf32, #tpu.memory_space<vmem>>, vector<16x128xf32>
    %2 = tpu.iota {dimensions = array<i32: 1>} : vector<16x128xi32>
    %3 = vector.extract_strided_slice %0 {offsets = [0, 127], sizes = [16, 1], strides = [1, 1]} : vector<16x128xf32> to vector<16x1xf32>
    %4 = arith.fptosi %3 : vector<16x1xf32> to vector<16x1xi32>
    %c8_i32 = arith.constant 8 : i32
    %5 = vector.broadcast %c8_i32 : i32 to vector<16x1xi32>
    %6 = arith.addi %4, %5 : vector<16x1xi32>
    %7 = vector.broadcast %6 : vector<16x1xi32> to vector<16x128xi32>
    %8 = arith.cmpi eq, %2, %7 : vector<16x128xi32>
    %9 = arith.extui %8 : vector<16x128xi1> to vector<16x128xi32>
    %10 = arith.sitofp %9 : vector<16x128xi32> to vector<16x128xf32>
    %c64_i32 = arith.constant 64 : i32
    %11 = vector.broadcast %c64_i32 : i32 to vector<16x128xi32>
    %12 = arith.cmpi sge, %2, %11 : vector<16x128xi32>
    %c66_i32 = arith.constant 66 : i32
    %13 = vector.broadcast %c66_i32 : i32 to vector<16x128xi32>
    %14 = arith.cmpi slt, %2, %13 : vector<16x128xi32>
    %15 = arith.andi %12, %14 : vector<16x128xi1>
    %16 = arith.addf %0, %10 : vector<16x128xf32>
    %17 = arith.truncf %16 : vector<16x128xf32> to vector<16x128xbf16>
    %c0_3 = arith.constant 0 : index
    %c0_4 = arith.constant 0 : index
    %18 = vector.load %arg1[%c0_3, %c0_4] : memref<1152x128xbf16, #tpu.memory_space<vmem>>, vector<128x128xbf16>
    %cst = arith.constant dense<0.000000e+00> : vector<16x128xf32>
    %19 = tpu.matmul %17, %18, %cst {dimension_numbers = #tpu.dot_dimension_numbers<[1], [0], [0], [1], [0, 0, 1, 1], [], []>} : vector<16x128xbf16>, vector<128x128xbf16>, vector<16x128xf32> -> vector<16x128xf32>
    %20 = vector.extract_strided_slice %1 {offsets = [0, 0], sizes = [1, 128], strides = [1, 1]} : vector<16x128xf32> to vector<1x128xf32>
    %21 = vector.shape_cast %20 : vector<1x128xf32> to vector<128xf32>
    %22 = vector.shape_cast %21 : vector<128xf32> to vector<1x128xf32>
    %23 = vector.broadcast %22 : vector<1x128xf32> to vector<16x128xf32>
    %24 = arith.addf %19, %23 : vector<16x128xf32>
    %cst_5 = arith.constant 0.000000e+00 : f32
    %25 = vector.broadcast %cst_5 : f32 to vector<16x128xf32>
    %26 = arith.cmpf oge, %24, %25 : vector<16x128xf32>
    %cst_6 = arith.constant 2.000000e-01 : f32
    %27 = vector.broadcast %cst_6 : f32 to vector<16x128xf32>
    %28 = arith.mulf %27, %24 : vector<16x128xf32>
    %29 = arith.select %26, %24, %28 : vector<16x128xi1>, vector<16x128xf32>
    %30 = arith.truncf %29 : vector<16x128xf32> to vector<16x128xbf16>
    %c128 = arith.constant 128 : index
    %c0_7 = arith.constant 0 : index
    %31 = vector.load %arg1[%c128, %c0_7] : memref<1152x128xbf16, #tpu.memory_space<vmem>>, vector<128x128xbf16>
    %cst_8 = arith.constant dense<0.000000e+00> : vector<16x128xf32>
    %32 = tpu.matmul %30, %31, %cst_8 {dimension_numbers = #tpu.dot_dimension_numbers<[1], [0], [0], [1], [0, 0, 1, 1], [], []>} : vector<16x128xbf16>, vector<128x128xbf16>, vector<16x128xf32> -> vector<16x128xf32>
    %33 = vector.extract_strided_slice %1 {offsets = [1, 0], sizes = [1, 128], strides = [1, 1]} : vector<16x128xf32> to vector<1x128xf32>
    %34 = vector.shape_cast %33 : vector<1x128xf32> to vector<128xf32>
    %35 = vector.shape_cast %34 : vector<128xf32> to vector<1x128xf32>
    %36 = vector.broadcast %35 : vector<1x128xf32> to vector<16x128xf32>
    %37 = arith.addf %32, %36 : vector<16x128xf32>
    %cst_9 = arith.constant 0.000000e+00 : f32
    %38 = vector.broadcast %cst_9 : f32 to vector<16x128xf32>
    %39 = arith.cmpf oge, %37, %38 : vector<16x128xf32>
    %cst_10 = arith.constant 2.000000e-01 : f32
    %40 = vector.broadcast %cst_10 : f32 to vector<16x128xf32>
    %41 = arith.mulf %40, %37 : vector<16x128xf32>
    %42 = arith.select %39, %37, %41 : vector<16x128xi1>, vector<16x128xf32>
    %43 = arith.truncf %42 : vector<16x128xf32> to vector<16x128xbf16>
    %c256 = arith.constant 256 : index
    %c0_11 = arith.constant 0 : index
    %44 = vector.load %arg1[%c256, %c0_11] : memref<1152x128xbf16, #tpu.memory_space<vmem>>, vector<128x128xbf16>
    %cst_12 = arith.constant dense<0.000000e+00> : vector<16x128xf32>
    %45 = tpu.matmul %43, %44, %cst_12 {dimension_numbers = #tpu.dot_dimension_numbers<[1], [0], [0], [1], [0, 0, 1, 1], [], []>} : vector<16x128xbf16>, vector<128x128xbf16>, vector<16x128xf32> -> vector<16x128xf32>
    %46 = vector.extract_strided_slice %1 {offsets = [2, 0], sizes = [1, 128], strides = [1, 1]} : vector<16x128xf32> to vector<1x128xf32>
    %47 = vector.shape_cast %46 : vector<1x128xf32> to vector<128xf32>
    %48 = vector.shape_cast %47 : vector<128xf32> to vector<1x128xf32>
    %49 = vector.broadcast %48 : vector<1x128xf32> to vector<16x128xf32>
    %50 = arith.addf %45, %49 : vector<16x128xf32>
    %cst_13 = arith.constant 0.000000e+00 : f32
    %51 = vector.broadcast %cst_13 : f32 to vector<16x128xf32>
    %52 = arith.cmpf oge, %50, %51 : vector<16x128xf32>
    %cst_14 = arith.constant 2.000000e-01 : f32
    %53 = vector.broadcast %cst_14 : f32 to vector<16x128xf32>
    %54 = arith.mulf %53, %50 : vector<16x128xf32>
    %55 = arith.select %52, %50, %54 : vector<16x128xi1>, vector<16x128xf32>
    %56 = arith.truncf %55 : vector<16x128xf32> to vector<16x128xbf16>
    %c384 = arith.constant 384 : index
    %c0_15 = arith.constant 0 : index
    %57 = vector.load %arg1[%c384, %c0_15] : memref<1152x128xbf16, #tpu.memory_space<vmem>>, vector<128x128xbf16>
    %cst_16 = arith.constant dense<0.000000e+00> : vector<16x128xf32>
    %58 = tpu.matmul %56, %57, %cst_16 {dimension_numbers = #tpu.dot_dimension_numbers<[1], [0], [0], [1], [0, 0, 1, 1], [], []>} : vector<16x128xbf16>, vector<128x128xbf16>, vector<16x128xf32> -> vector<16x128xf32>
    %59 = vector.extract_strided_slice %1 {offsets = [3, 0], sizes = [1, 128], strides = [1, 1]} : vector<16x128xf32> to vector<1x128xf32>
    %60 = vector.shape_cast %59 : vector<1x128xf32> to vector<128xf32>
    %61 = vector.shape_cast %60 : vector<128xf32> to vector<1x128xf32>
    %62 = vector.broadcast %61 : vector<1x128xf32> to vector<16x128xf32>
    %63 = arith.addf %58, %62 : vector<16x128xf32>
    %cst_17 = arith.constant 0.000000e+00 : f32
    %64 = vector.broadcast %cst_17 : f32 to vector<16x128xf32>
    %65 = arith.cmpf oge, %63, %64 : vector<16x128xf32>
    %cst_18 = arith.constant 2.000000e-01 : f32
    %66 = vector.broadcast %cst_18 : f32 to vector<16x128xf32>
    %67 = arith.mulf %66, %63 : vector<16x128xf32>
    %68 = arith.select %65, %63, %67 : vector<16x128xi1>, vector<16x128xf32>
    %69 = arith.truncf %68 : vector<16x128xf32> to vector<16x128xbf16>
    %c512 = arith.constant 512 : index
    %c0_19 = arith.constant 0 : index
    %70 = vector.load %arg1[%c512, %c0_19] : memref<1152x128xbf16, #tpu.memory_space<vmem>>, vector<128x128xbf16>
    %cst_20 = arith.constant dense<0.000000e+00> : vector<16x128xf32>
    %71 = tpu.matmul %69, %70, %cst_20 {dimension_numbers = #tpu.dot_dimension_numbers<[1], [0], [0], [1], [0, 0, 1, 1], [], []>} : vector<16x128xbf16>, vector<128x128xbf16>, vector<16x128xf32> -> vector<16x128xf32>
    %72 = vector.extract_strided_slice %1 {offsets = [4, 0], sizes = [1, 128], strides = [1, 1]} : vector<16x128xf32> to vector<1x128xf32>
    %73 = vector.shape_cast %72 : vector<1x128xf32> to vector<128xf32>
    %74 = vector.shape_cast %73 : vector<128xf32> to vector<1x128xf32>
    %75 = vector.broadcast %74 : vector<1x128xf32> to vector<16x128xf32>
    %76 = arith.addf %71, %75 : vector<16x128xf32>
    %cst_21 = arith.constant 0.000000e+00 : f32
    %77 = vector.broadcast %cst_21 : f32 to vector<16x128xf32>
    %78 = arith.cmpf oge, %76, %77 : vector<16x128xf32>
    %cst_22 = arith.constant 2.000000e-01 : f32
    %79 = vector.broadcast %cst_22 : f32 to vector<16x128xf32>
    %80 = arith.mulf %79, %76 : vector<16x128xf32>
    %81 = arith.select %78, %76, %80 : vector<16x128xi1>, vector<16x128xf32>
    %82 = arith.truncf %81 : vector<16x128xf32> to vector<16x128xbf16>
    %c640 = arith.constant 640 : index
    %c0_23 = arith.constant 0 : index
    %83 = vector.load %arg1[%c640, %c0_23] : memref<1152x128xbf16, #tpu.memory_space<vmem>>, vector<128x128xbf16>
    %cst_24 = arith.constant dense<0.000000e+00> : vector<16x128xf32>
    %84 = tpu.matmul %82, %83, %cst_24 {dimension_numbers = #tpu.dot_dimension_numbers<[1], [0], [0], [1], [0, 0, 1, 1], [], []>} : vector<16x128xbf16>, vector<128x128xbf16>, vector<16x128xf32> -> vector<16x128xf32>
    %85 = vector.extract_strided_slice %1 {offsets = [5, 0], sizes = [1, 128], strides = [1, 1]} : vector<16x128xf32> to vector<1x128xf32>
    %86 = vector.shape_cast %85 : vector<1x128xf32> to vector<128xf32>
    %87 = vector.shape_cast %86 : vector<128xf32> to vector<1x128xf32>
    %88 = vector.broadcast %87 : vector<1x128xf32> to vector<16x128xf32>
    %89 = arith.addf %84, %88 : vector<16x128xf32>
    %cst_25 = arith.constant 0.000000e+00 : f32
    %90 = vector.broadcast %cst_25 : f32 to vector<16x128xf32>
    %91 = arith.cmpf oge, %89, %90 : vector<16x128xf32>
    %cst_26 = arith.constant 2.000000e-01 : f32
    %92 = vector.broadcast %cst_26 : f32 to vector<16x128xf32>
    %93 = arith.mulf %92, %89 : vector<16x128xf32>
    %94 = arith.select %91, %89, %93 : vector<16x128xi1>, vector<16x128xf32>
    %95 = arith.truncf %94 : vector<16x128xf32> to vector<16x128xbf16>
    %c768 = arith.constant 768 : index
    %c0_27 = arith.constant 0 : index
    %96 = vector.load %arg1[%c768, %c0_27] : memref<1152x128xbf16, #tpu.memory_space<vmem>>, vector<128x128xbf16>
    %cst_28 = arith.constant dense<0.000000e+00> : vector<16x128xf32>
    %97 = tpu.matmul %95, %96, %cst_28 {dimension_numbers = #tpu.dot_dimension_numbers<[1], [0], [0], [1], [0, 0, 1, 1], [], []>} : vector<16x128xbf16>, vector<128x128xbf16>, vector<16x128xf32> -> vector<16x128xf32>
    %98 = vector.extract_strided_slice %1 {offsets = [6, 0], sizes = [1, 128], strides = [1, 1]} : vector<16x128xf32> to vector<1x128xf32>
    %99 = vector.shape_cast %98 : vector<1x128xf32> to vector<128xf32>
    %100 = vector.shape_cast %99 : vector<128xf32> to vector<1x128xf32>
    %101 = vector.broadcast %100 : vector<1x128xf32> to vector<16x128xf32>
    %102 = arith.addf %97, %101 : vector<16x128xf32>
    %cst_29 = arith.constant 0.000000e+00 : f32
    %103 = vector.broadcast %cst_29 : f32 to vector<16x128xf32>
    %104 = arith.cmpf oge, %102, %103 : vector<16x128xf32>
    %cst_30 = arith.constant 2.000000e-01 : f32
    %105 = vector.broadcast %cst_30 : f32 to vector<16x128xf32>
    %106 = arith.mulf %105, %102 : vector<16x128xf32>
    %107 = arith.select %104, %102, %106 : vector<16x128xi1>, vector<16x128xf32>
    %108 = arith.truncf %107 : vector<16x128xf32> to vector<16x128xbf16>
    %c896 = arith.constant 896 : index
    %c0_31 = arith.constant 0 : index
    %109 = vector.load %arg1[%c896, %c0_31] : memref<1152x128xbf16, #tpu.memory_space<vmem>>, vector<128x128xbf16>
    %cst_32 = arith.constant dense<0.000000e+00> : vector<16x128xf32>
    %110 = tpu.matmul %108, %109, %cst_32 {dimension_numbers = #tpu.dot_dimension_numbers<[1], [0], [0], [1], [0, 0, 1, 1], [], []>} : vector<16x128xbf16>, vector<128x128xbf16>, vector<16x128xf32> -> vector<16x128xf32>
    %111 = vector.extract_strided_slice %1 {offsets = [7, 0], sizes = [1, 128], strides = [1, 1]} : vector<16x128xf32> to vector<1x128xf32>
    %112 = vector.shape_cast %111 : vector<1x128xf32> to vector<128xf32>
    %113 = vector.shape_cast %112 : vector<128xf32> to vector<1x128xf32>
    %114 = vector.broadcast %113 : vector<1x128xf32> to vector<16x128xf32>
    %115 = arith.addf %110, %114 : vector<16x128xf32>
    %cst_33 = arith.constant 0.000000e+00 : f32
    %116 = vector.broadcast %cst_33 : f32 to vector<16x128xf32>
    %117 = arith.cmpf oge, %115, %116 : vector<16x128xf32>
    %cst_34 = arith.constant 2.000000e-01 : f32
    %118 = vector.broadcast %cst_34 : f32 to vector<16x128xf32>
    %119 = arith.mulf %118, %115 : vector<16x128xf32>
    %120 = arith.select %117, %115, %119 : vector<16x128xi1>, vector<16x128xf32>
    %121 = arith.select %15, %120, %115 : vector<16x128xi1>, vector<16x128xf32>
    %122 = arith.truncf %121 : vector<16x128xf32> to vector<16x128xbf16>
    %c1024 = arith.constant 1024 : index
    %c0_35 = arith.constant 0 : index
    %123 = vector.load %arg1[%c1024, %c0_35] : memref<1152x128xbf16, #tpu.memory_space<vmem>>, vector<128x128xbf16>
    %cst_36 = arith.constant dense<0.000000e+00> : vector<16x128xf32>
    %124 = tpu.matmul %122, %123, %cst_36 {dimension_numbers = #tpu.dot_dimension_numbers<[1], [0], [0], [1], [0, 0, 1, 1], [], []>} : vector<16x128xbf16>, vector<128x128xbf16>, vector<16x128xf32> -> vector<16x128xf32>
    %125 = vector.extract_strided_slice %1 {offsets = [8, 0], sizes = [1, 128], strides = [1, 1]} : vector<16x128xf32> to vector<1x128xf32>
    %126 = vector.shape_cast %125 : vector<1x128xf32> to vector<128xf32>
    %127 = vector.shape_cast %126 : vector<128xf32> to vector<1x128xf32>
    %128 = vector.broadcast %127 : vector<1x128xf32> to vector<16x128xf32>
    %129 = arith.addf %124, %128 : vector<16x128xf32>
    %130 = arith.addf %68, %129 : vector<16x128xf32>
    %c0_37 = arith.constant 0 : index
    %c0_38 = arith.constant 0 : index
    %131 = vector.load %arg4[%c0_37, %c0_38] : memref<16x128xf32, #tpu.memory_space<vmem>>, vector<16x128xf32>
    tpu.vector_store %arg4[%c0_37, %c0_38], %130 {strides = array<i32>} : memref<16x128xf32, #tpu.memory_space<vmem>>, vector<16x128xf32>,
    %c16_i32 = arith.constant 16 : i32
    %132 = arith.muli %arg0, %c16_i32 : i32
    %133 = tpu.iota {dimensions = array<i32: 0>} : vector<16x1xi32>
    %134 = vector.broadcast %132 : i32 to vector<16x1xi32>
    %135 = arith.addi %134, %133 : vector<16x1xi32>
    %c37_i32 = arith.constant 37 : i32
    %136 = vector.broadcast %c37_i32 : i32 to vector<16x1xi32>
    %137 = arith.cmpi slt, %135, %136 : vector<16x1xi32>
    %138 = arith.extui %137 : vector<16x1xi1> to vector<16x1xi32>
    %139 = arith.sitofp %138 : vector<16x1xi32> to vector<16x1xf32>
    %c2_i32 = arith.constant 2 : i32
    %140 = vector.broadcast %c2_i32 : i32 to vector<16x128xi32>
    %141 = arith.cmpi sge, %2, %140 : vector<16x128xi32>
    %c8_i32_39 = arith.constant 8 : i32
    %142 = vector.broadcast %c8_i32_39 : i32 to vector<16x128xi32>
    %143 = arith.cmpi slt, %2, %142 : vector<16x128xi32>
    %144 = arith.andi %141, %143 : vector<16x128xi1>
    %145 = arith.subf %0, %129 : vector<16x128xf32>
    %146 = arith.mulf %145, %145 : vector<16x128xf32>
    %cst_40 = arith.constant 0.000000e+00 : f32
    %147 = vector.broadcast %cst_40 : f32 to vector<16x128xf32>
    %148 = arith.select %144, %146, %147 : vector<16x128xi1>, vector<16x128xf32>
    %149 = vector.broadcast %139 : vector<16x1xf32> to vector<16x128xf32>
    %150 = arith.mulf %148, %149 : vector<16x128xf32>
    %cst_41 = arith.constant dense<0.000000e+00> : vector<128xf32>
    %151 = vector.multi_reduction <add>, %150, %cst_41 [0] : vector<16x128xf32> to vector<128xf32>
    %152 = vector.shape_cast %151 : vector<128xf32> to vector<1x128xf32>
    %cst_42 = arith.constant dense<0.000000e+00> : vector<1xf32>
    %153 = vector.multi_reduction <add>, %152, %cst_42 [1] : vector<1x128xf32> to vector<1xf32>
    %154 = vector.shape_cast %153 : vector<1xf32> to vector<1x1xf32>
    %155 = vector.extract %154[0, 0] : f32 from vector<1x1xf32>
    %c8_i32_43 = arith.constant 8 : i32
    %156 = vector.broadcast %c8_i32_43 : i32 to vector<16x128xi32>
    %157 = arith.cmpi sge, %2, %156 : vector<16x128xi32>
    %c26_i32 = arith.constant 26 : i32
    %158 = vector.broadcast %c26_i32 : i32 to vector<16x128xi32>
    %159 = arith.cmpi slt, %2, %158 : vector<16x128xi32>
    %160 = arith.andi %157, %159 : vector<16x128xi1>
    %cst_44 = arith.constant -1.000000e+30 : f32
    %161 = vector.broadcast %cst_44 : f32 to vector<16x128xf32>
    %162 = arith.select %160, %129, %161 : vector<16x128xi1>, vector<16x128xf32>
    %cst_45 = arith.constant dense<0xFF800000> : vector<16xf32>
    %163 = vector.multi_reduction <maximumf>, %162, %cst_45 [1] : vector<16x128xf32> to vector<16xf32>
    %164 = vector.shape_cast %163 : vector<16xf32> to vector<16x1xf32>
    %165 = vector.broadcast %164 : vector<16x1xf32> to vector<16x128xf32>
    %166 = arith.subf %162, %165 : vector<16x128xf32>
    %167 = math.exp %166 : vector<16x128xf32>
    %cst_46 = arith.constant dense<0.000000e+00> : vector<16xf32>
    %168 = vector.multi_reduction <add>, %167, %cst_46 [1] : vector<16x128xf32> to vector<16xf32>
    %169 = vector.shape_cast %168 : vector<16xf32> to vector<16x1xf32>
    %170 = math.log %169 : vector<16x1xf32>
    %171 = arith.addf %170, %164 : vector<16x1xf32>
    %172 = vector.broadcast %171 : vector<16x1xf32> to vector<16x128xf32>
    %173 = arith.subf %129, %172 : vector<16x128xf32>
    %174 = arith.mulf %10, %173 : vector<16x128xf32>
    %cst_47 = arith.constant dense<0.000000e+00> : vector<16xf32>
    %175 = vector.multi_reduction <add>, %174, %cst_47 [1] : vector<16x128xf32> to vector<16xf32>
    %176 = vector.shape_cast %175 : vector<16xf32> to vector<16x1xf32>
    %cst_48 = arith.constant 0.000000e+00 : f32
    %177 = vector.broadcast %cst_48 : f32 to vector<16x1xf32>
    %178 = arith.subf %177, %176 : vector<16x1xf32>
    %179 = arith.mulf %178, %139 : vector<16x1xf32>
    %180 = vector.shape_cast %179 : vector<16x1xf32> to vector<1x16x1xf32>
    %cst_49 = arith.constant dense<0.000000e+00> : vector<1xf32>
    %181 = vector.multi_reduction <add>, %180, %cst_49 [1, 2] : vector<1x16x1xf32> to vector<1xf32>
    %182 = vector.shape_cast %181 : vector<1xf32> to vector<1x1x1xf32>
    %183 = vector.extract %182[0, 0, 0] : f32 from vector<1x1x1xf32>
    %184 = tpu.iota {dimensions = array<i32: 0>} : vector<8x128xi32>
    %185 = tpu.iota {dimensions = array<i32: 1>} : vector<8x128xi32>
    %186 = vector.shape_cast %151 : vector<128xf32> to vector<1x128xf32>
    %187 = vector.shape_cast %186 : vector<1x128xf32> to vector<1x128xf32>
    %188 = vector.broadcast %187 : vector<1x128xf32> to vector<8x128xf32>
    %c0_i32 = arith.constant 0 : i32
    %189 = vector.broadcast %c0_i32 : i32 to vector<8x128xi32>
    %190 = arith.cmpi eq, %184, %189 : vector<8x128xi32>
    %cst_50 = arith.constant 0.000000e+00 : f32
    %191 = vector.broadcast %cst_50 : f32 to vector<8x128xf32>
    %192 = arith.select %190, %188, %191 : vector<8x128xi1>, vector<8x128xf32>
    %c1_i32 = arith.constant 1 : i32
    %193 = vector.broadcast %c1_i32 : i32 to vector<8x128xi32>
    %194 = arith.cmpi eq, %184, %193 : vector<8x128xi32>
    %c0_i32_51 = arith.constant 0 : i32
    %195 = vector.broadcast %c0_i32_51 : i32 to vector<8x128xi32>
    %196 = arith.cmpi eq, %185, %195 : vector<8x128xi32>
    %197 = arith.andi %194, %196 : vector<8x128xi1>
    %cst_52 = arith.constant 0.000000e+00 : f32
    %198 = vector.broadcast %155 : f32 to vector<8x128xf32>
    %199 = vector.broadcast %cst_52 : f32 to vector<8x128xf32>
    %200 = arith.select %197, %198, %199 : vector<8x128xi1>, vector<8x128xf32>
    %201 = arith.addf %192, %200 : vector<8x128xf32>
    %c1_i32_53 = arith.constant 1 : i32
    %202 = vector.broadcast %c1_i32_53 : i32 to vector<8x128xi32>
    %203 = arith.cmpi eq, %184, %202 : vector<8x128xi32>
    %c1_i32_54 = arith.constant 1 : i32
    %204 = vector.broadcast %c1_i32_54 : i32 to vector<8x128xi32>
    %205 = arith.cmpi eq, %185, %204 : vector<8x128xi32>
    %206 = arith.andi %203, %205 : vector<8x128xi1>
    %cst_55 = arith.constant 0.000000e+00 : f32
    %207 = vector.broadcast %183 : f32 to vector<8x128xf32>
    %208 = vector.broadcast %cst_55 : f32 to vector<8x128xf32>
    %209 = arith.select %206, %207, %208 : vector<8x128xi1>, vector<8x128xf32>
    %210 = arith.addf %201, %209 : vector<8x128xf32>
    %211 = vector.shape_cast %210 : vector<8x128xf32> to vector<1x8x128xf32>
    %c0_56 = arith.constant 0 : index
    %c0_57 = arith.constant 0 : index
    %c0_58 = arith.constant 0 : index
    %212 = vector.load %arg5[%c0_56, %c0_57, %c0_58] : memref<1x8x128xf32, #tpu.memory_space<vmem>>, vector<1x8x128xf32>
    tpu.vector_store %arg5[%c0_56, %c0_57, %c0_58], %211 {strides = array<i32>} : memref<1x8x128xf32, #tpu.memory_space<vmem>>, vector<1x8x128xf32>,
    return
  }
  func.func @transform_0(%arg0: i32) -> (i32, i32) {
    %c0_i32 = arith.constant 0 : i32
    %c0_i32_0 = arith.constant 0 : i32
    %c0_i32_1 = arith.constant 0 : i32
    return %c0_i32, %c0_i32_0 : i32, i32
  }
  func.func @transform_1(%arg0: i32) -> (i32, i32) {
    %c0_i32 = arith.constant 0 : i32
    %c0_i32_0 = arith.constant 0 : i32
    %c0_i32_1 = arith.constant 0 : i32
    return %c0_i32, %c0_i32_0 : i32, i32
  }
  func.func @transform_2(%arg0: i32) -> (i32, i32) {
    %c0_i32 = arith.constant 0 : i32
    %c0_i32_0 = arith.constant 0 : i32
    return %arg0, %c0_i32 : i32, i32
  }
  func.func @transform_3(%arg0: i32) -> (i32, i32) {
    %c0_i32 = arith.constant 0 : i32
    %c0_i32_0 = arith.constant 0 : i32
    return %arg0, %c0_i32 : i32, i32
  }
  func.func @transform_4(%arg0: i32) -> (i32, i32, i32) {
    %c0_i32 = arith.constant 0 : i32
    %c0_i32_0 = arith.constant 0 : i32
    %c0_i32_1 = arith.constant 0 : i32
    return %arg0, %c0_i32, %c0_i32_0 : i32, i32, i32
  }
}

module attributes {stable_mosaic.version = 11 : i64} {
  func.func @ae_kernel(%arg0: i32, %arg1: memref<1152x128xbf16, #tpu.memory_space<vmem>>, %arg2: memref<16x128xf32, #tpu.memory_space<vmem>>, %arg3: memref<16x128xf32, #tpu.memory_space<vmem>>, %arg4: memref<16x128xf32, #tpu.memory_space<vmem>>, %arg5: memref<1x8x128xf32, #tpu.memory_space<vmem>>) attributes {dimension_semantics = [#tpu.dimension_semantics<parallel>], iteration_bounds = array<i64: 3>, scalar_prefetch = 0 : i64, scratch_operands = 0 : i64, tpu.core_type = #tpu.core_type<tc>, window_params = [{pipeline_mode = #tpu.pipeline_mode<synchronous>, transform_indices = @transform_0, window_bounds = array<i64: 1152, 128>}, {pipeline_mode = #tpu.pipeline_mode<synchronous>, transform_indices = @transform_1, window_bounds = array<i64: 16, 128>}, {transform_indices = @transform_2, window_bounds = array<i64: 16, 128>}, {transform_indices = @transform_3, window_bounds = array<i64: 16, 128>}, {transform_indices = @transform_4, window_bounds = array<i64: 1, 8, 128>}]} {
    %c0 = arith.constant 0 : index
    %c0_0 = arith.constant 0 : index
    %0 = vector.load %arg3[%c0, %c0_0] : memref<16x128xf32, #tpu.memory_space<vmem>>, vector<16x128xf32>
    %c0_1 = arith.constant 0 : index
    %c0_2 = arith.constant 0 : index
    %1 = vector.load %arg2[%c0_1, %c0_2] : memref<16x128xf32, #tpu.memory_space<vmem>>, vector<16x128xf32>
    %2 = tpu.iota {dimensions = array<i32: 1>} : vector<16x128xi32>
    %3 = vector.extract_strided_slice %0 {offsets = [0, 127], sizes = [16, 1], strides = [1, 1]} : vector<16x128xf32> to vector<16x1xf32>
    %4 = arith.fptosi %3 : vector<16x1xf32> to vector<16x1xi32>
    %c8_i32 = arith.constant 8 : i32
    %5 = vector.broadcast %c8_i32 : i32 to vector<16x1xi32>
    %6 = arith.addi %4, %5 : vector<16x1xi32>
    %7 = vector.broadcast %6 : vector<16x1xi32> to vector<16x128xi32>
    %8 = arith.cmpi eq, %2, %7 : vector<16x128xi32>
    %9 = arith.extui %8 : vector<16x128xi1> to vector<16x128xi32>
    %10 = arith.sitofp %9 : vector<16x128xi32> to vector<16x128xf32>
    %c64_i32 = arith.constant 64 : i32
    %11 = vector.broadcast %c64_i32 : i32 to vector<16x128xi32>
    %12 = arith.cmpi sge, %2, %11 : vector<16x128xi32>
    %c66_i32 = arith.constant 66 : i32
    %13 = vector.broadcast %c66_i32 : i32 to vector<16x128xi32>
    %14 = arith.cmpi slt, %2, %13 : vector<16x128xi32>
    %15 = arith.andi %12, %14 : vector<16x128xi1>
    %16 = arith.addf %0, %10 : vector<16x128xf32>
    %17 = arith.truncf %16 : vector<16x128xf32> to vector<16x128xbf16>
    %c0_3 = arith.constant 0 : index
    %c0_4 = arith.constant 0 : index
    %18 = vector.load %arg1[%c0_3, %c0_4] : memref<1152x128xbf16, #tpu.memory_space<vmem>>, vector<128x128xbf16>
    %cst = arith.constant dense<0.000000e+00> : vector<16x128xf32>
    %19 = tpu.matmul %17, %18, %cst {dimension_numbers = #tpu.dot_dimension_numbers<[1], [0], [0], [1], [0, 0, 1, 1], [], []>} : vector<16x128xbf16>, vector<128x128xbf16>, vector<16x128xf32> -> vector<16x128xf32>
    %20 = vector.extract_strided_slice %1 {offsets = [0, 0], sizes = [1, 128], strides = [1, 1]} : vector<16x128xf32> to vector<1x128xf32>
    %21 = vector.shape_cast %20 : vector<1x128xf32> to vector<128xf32>
    %22 = vector.shape_cast %21 : vector<128xf32> to vector<1x128xf32>
    %23 = vector.broadcast %22 : vector<1x128xf32> to vector<16x128xf32>
    %24 = arith.addf %19, %23 : vector<16x128xf32>
    %cst_5 = arith.constant 0.000000e+00 : f32
    %25 = vector.broadcast %cst_5 : f32 to vector<16x128xf32>
    %26 = arith.cmpf oge, %24, %25 : vector<16x128xf32>
    %cst_6 = arith.constant 2.000000e-01 : f32
    %27 = vector.broadcast %cst_6 : f32 to vector<16x128xf32>
    %28 = arith.mulf %27, %24 : vector<16x128xf32>
    %29 = arith.select %26, %24, %28 : vector<16x128xi1>, vector<16x128xf32>
    %30 = arith.truncf %29 : vector<16x128xf32> to vector<16x128xbf16>
    %c128 = arith.constant 128 : index
    %c0_7 = arith.constant 0 : index
    %31 = vector.load %arg1[%c128, %c0_7] : memref<1152x128xbf16, #tpu.memory_space<vmem>>, vector<128x128xbf16>
    %cst_8 = arith.constant dense<0.000000e+00> : vector<16x128xf32>
    %32 = tpu.matmul %30, %31, %cst_8 {dimension_numbers = #tpu.dot_dimension_numbers<[1], [0], [0], [1], [0, 0, 1, 1], [], []>} : vector<16x128xbf16>, vector<128x128xbf16>, vector<16x128xf32> -> vector<16x128xf32>
    %33 = vector.extract_strided_slice %1 {offsets = [1, 0], sizes = [1, 128], strides = [1, 1]} : vector<16x128xf32> to vector<1x128xf32>
    %34 = vector.shape_cast %33 : vector<1x128xf32> to vector<128xf32>
    %35 = vector.shape_cast %34 : vector<128xf32> to vector<1x128xf32>
    %36 = vector.broadcast %35 : vector<1x128xf32> to vector<16x128xf32>
    %37 = arith.addf %32, %36 : vector<16x128xf32>
    %cst_9 = arith.constant 0.000000e+00 : f32
    %38 = vector.broadcast %cst_9 : f32 to vector<16x128xf32>
    %39 = arith.cmpf oge, %37, %38 : vector<16x128xf32>
    %cst_10 = arith.constant 2.000000e-01 : f32
    %40 = vector.broadcast %cst_10 : f32 to vector<16x128xf32>
    %41 = arith.mulf %40, %37 : vector<16x128xf32>
    %42 = arith.select %39, %37, %41 : vector<16x128xi1>, vector<16x128xf32>
    %43 = arith.truncf %42 : vector<16x128xf32> to vector<16x128xbf16>
    %c256 = arith.constant 256 : index
    %c0_11 = arith.constant 0 : index
    %44 = vector.load %arg1[%c256, %c0_11] : memref<1152x128xbf16, #tpu.memory_space<vmem>>, vector<128x128xbf16>
    %cst_12 = arith.constant dense<0.000000e+00> : vector<16x128xf32>
    %45 = tpu.matmul %43, %44, %cst_12 {dimension_numbers = #tpu.dot_dimension_numbers<[1], [0], [0], [1], [0, 0, 1, 1], [], []>} : vector<16x128xbf16>, vector<128x128xbf16>, vector<16x128xf32> -> vector<16x128xf32>
    %46 = vector.extract_strided_slice %1 {offsets = [2, 0], sizes = [1, 128], strides = [1, 1]} : vector<16x128xf32> to vector<1x128xf32>
    %47 = vector.shape_cast %46 : vector<1x128xf32> to vector<128xf32>
    %48 = vector.shape_cast %47 : vector<128xf32> to vector<1x128xf32>
    %49 = vector.broadcast %48 : vector<1x128xf32> to vector<16x128xf32>
    %50 = arith.addf %45, %49 : vector<16x128xf32>
    %cst_13 = arith.constant 0.000000e+00 : f32
    %51 = vector.broadcast %cst_13 : f32 to vector<16x128xf32>
    %52 = arith.cmpf oge, %50, %51 : vector<16x128xf32>
    %cst_14 = arith.constant 2.000000e-01 : f32
    %53 = vector.broadcast %cst_14 : f32 to vector<16x128xf32>
    %54 = arith.mulf %53, %50 : vector<16x128xf32>
    %55 = arith.select %52, %50, %54 : vector<16x128xi1>, vector<16x128xf32>
    %56 = arith.truncf %55 : vector<16x128xf32> to vector<16x128xbf16>
    %c384 = arith.constant 384 : index
    %c0_15 = arith.constant 0 : index
    %57 = vector.load %arg1[%c384, %c0_15] : memref<1152x128xbf16, #tpu.memory_space<vmem>>, vector<128x128xbf16>
    %cst_16 = arith.constant dense<0.000000e+00> : vector<16x128xf32>
    %58 = tpu.matmul %56, %57, %cst_16 {dimension_numbers = #tpu.dot_dimension_numbers<[1], [0], [0], [1], [0, 0, 1, 1], [], []>} : vector<16x128xbf16>, vector<128x128xbf16>, vector<16x128xf32> -> vector<16x128xf32>
    %59 = vector.extract_strided_slice %1 {offsets = [3, 0], sizes = [1, 128], strides = [1, 1]} : vector<16x128xf32> to vector<1x128xf32>
    %60 = vector.shape_cast %59 : vector<1x128xf32> to vector<128xf32>
    %61 = vector.shape_cast %60 : vector<128xf32> to vector<1x128xf32>
    %62 = vector.broadcast %61 : vector<1x128xf32> to vector<16x128xf32>
    %63 = arith.addf %58, %62 : vector<16x128xf32>
    %cst_17 = arith.constant 0.000000e+00 : f32
    %64 = vector.broadcast %cst_17 : f32 to vector<16x128xf32>
    %65 = arith.cmpf oge, %63, %64 : vector<16x128xf32>
    %cst_18 = arith.constant 2.000000e-01 : f32
    %66 = vector.broadcast %cst_18 : f32 to vector<16x128xf32>
    %67 = arith.mulf %66, %63 : vector<16x128xf32>
    %68 = arith.select %65, %63, %67 : vector<16x128xi1>, vector<16x128xf32>
    %69 = arith.truncf %68 : vector<16x128xf32> to vector<16x128xbf16>
    %c512 = arith.constant 512 : index
    %c0_19 = arith.constant 0 : index
    %70 = vector.load %arg1[%c512, %c0_19] : memref<1152x128xbf16, #tpu.memory_space<vmem>>, vector<128x128xbf16>
    %cst_20 = arith.constant dense<0.000000e+00> : vector<16x128xf32>
    %71 = tpu.matmul %69, %70, %cst_20 {dimension_numbers = #tpu.dot_dimension_numbers<[1], [0], [0], [1], [0, 0, 1, 1], [], []>} : vector<16x128xbf16>, vector<128x128xbf16>, vector<16x128xf32> -> vector<16x128xf32>
    %72 = vector.extract_strided_slice %1 {offsets = [4, 0], sizes = [1, 128], strides = [1, 1]} : vector<16x128xf32> to vector<1x128xf32>
    %73 = vector.shape_cast %72 : vector<1x128xf32> to vector<128xf32>
    %74 = vector.shape_cast %73 : vector<128xf32> to vector<1x128xf32>
    %75 = vector.broadcast %74 : vector<1x128xf32> to vector<16x128xf32>
    %76 = arith.addf %71, %75 : vector<16x128xf32>
    %cst_21 = arith.constant 0.000000e+00 : f32
    %77 = vector.broadcast %cst_21 : f32 to vector<16x128xf32>
    %78 = arith.cmpf oge, %76, %77 : vector<16x128xf32>
    %cst_22 = arith.constant 2.000000e-01 : f32
    %79 = vector.broadcast %cst_22 : f32 to vector<16x128xf32>
    %80 = arith.mulf %79, %76 : vector<16x128xf32>
    %81 = arith.select %78, %76, %80 : vector<16x128xi1>, vector<16x128xf32>
    %82 = arith.truncf %81 : vector<16x128xf32> to vector<16x128xbf16>
    %c640 = arith.constant 640 : index
    %c0_23 = arith.constant 0 : index
    %83 = vector.load %arg1[%c640, %c0_23] : memref<1152x128xbf16, #tpu.memory_space<vmem>>, vector<128x128xbf16>
    %cst_24 = arith.constant dense<0.000000e+00> : vector<16x128xf32>
    %84 = tpu.matmul %82, %83, %cst_24 {dimension_numbers = #tpu.dot_dimension_numbers<[1], [0], [0], [1], [0, 0, 1, 1], [], []>} : vector<16x128xbf16>, vector<128x128xbf16>, vector<16x128xf32> -> vector<16x128xf32>
    %85 = vector.extract_strided_slice %1 {offsets = [5, 0], sizes = [1, 128], strides = [1, 1]} : vector<16x128xf32> to vector<1x128xf32>
    %86 = vector.shape_cast %85 : vector<1x128xf32> to vector<128xf32>
    %87 = vector.shape_cast %86 : vector<128xf32> to vector<1x128xf32>
    %88 = vector.broadcast %87 : vector<1x128xf32> to vector<16x128xf32>
    %89 = arith.addf %84, %88 : vector<16x128xf32>
    %cst_25 = arith.constant 0.000000e+00 : f32
    %90 = vector.broadcast %cst_25 : f32 to vector<16x128xf32>
    %91 = arith.cmpf oge, %89, %90 : vector<16x128xf32>
    %cst_26 = arith.constant 2.000000e-01 : f32
    %92 = vector.broadcast %cst_26 : f32 to vector<16x128xf32>
    %93 = arith.mulf %92, %89 : vector<16x128xf32>
    %94 = arith.select %91, %89, %93 : vector<16x128xi1>, vector<16x128xf32>
    %95 = arith.truncf %94 : vector<16x128xf32> to vector<16x128xbf16>
    %c768 = arith.constant 768 : index
    %c0_27 = arith.constant 0 : index
    %96 = vector.load %arg1[%c768, %c0_27] : memref<1152x128xbf16, #tpu.memory_space<vmem>>, vector<128x128xbf16>
    %cst_28 = arith.constant dense<0.000000e+00> : vector<16x128xf32>
    %97 = tpu.matmul %95, %96, %cst_28 {dimension_numbers = #tpu.dot_dimension_numbers<[1], [0], [0], [1], [0, 0, 1, 1], [], []>} : vector<16x128xbf16>, vector<128x128xbf16>, vector<16x128xf32> -> vector<16x128xf32>
    %98 = vector.extract_strided_slice %1 {offsets = [6, 0], sizes = [1, 128], strides = [1, 1]} : vector<16x128xf32> to vector<1x128xf32>
    %99 = vector.shape_cast %98 : vector<1x128xf32> to vector<128xf32>
    %100 = vector.shape_cast %99 : vector<128xf32> to vector<1x128xf32>
    %101 = vector.broadcast %100 : vector<1x128xf32> to vector<16x128xf32>
    %102 = arith.addf %97, %101 : vector<16x128xf32>
    %cst_29 = arith.constant 0.000000e+00 : f32
    %103 = vector.broadcast %cst_29 : f32 to vector<16x128xf32>
    %104 = arith.cmpf oge, %102, %103 : vector<16x128xf32>
    %cst_30 = arith.constant 2.000000e-01 : f32
    %105 = vector.broadcast %cst_30 : f32 to vector<16x128xf32>
    %106 = arith.mulf %105, %102 : vector<16x128xf32>
    %107 = arith.select %104, %102, %106 : vector<16x128xi1>, vector<16x128xf32>
    %108 = arith.truncf %107 : vector<16x128xf32> to vector<16x128xbf16>
    %c896 = arith.constant 896 : index
    %c0_31 = arith.constant 0 : index
    %109 = vector.load %arg1[%c896, %c0_31] : memref<1152x128xbf16, #tpu.memory_space<vmem>>, vector<128x128xbf16>
    %cst_32 = arith.constant dense<0.000000e+00> : vector<16x128xf32>
    %110 = tpu.matmul %108, %109, %cst_32 {dimension_numbers = #tpu.dot_dimension_numbers<[1], [0], [0], [1], [0, 0, 1, 1], [], []>} : vector<16x128xbf16>, vector<128x128xbf16>, vector<16x128xf32> -> vector<16x128xf32>
    %111 = vector.extract_strided_slice %1 {offsets = [7, 0], sizes = [1, 128], strides = [1, 1]} : vector<16x128xf32> to vector<1x128xf32>
    %112 = vector.shape_cast %111 : vector<1x128xf32> to vector<128xf32>
    %113 = vector.shape_cast %112 : vector<128xf32> to vector<1x128xf32>
    %114 = vector.broadcast %113 : vector<1x128xf32> to vector<16x128xf32>
    %115 = arith.addf %110, %114 : vector<16x128xf32>
    %cst_33 = arith.constant 0.000000e+00 : f32
    %116 = vector.broadcast %cst_33 : f32 to vector<16x128xf32>
    %117 = arith.cmpf oge, %115, %116 : vector<16x128xf32>
    %cst_34 = arith.constant 2.000000e-01 : f32
    %118 = vector.broadcast %cst_34 : f32 to vector<16x128xf32>
    %119 = arith.mulf %118, %115 : vector<16x128xf32>
    %120 = arith.select %117, %115, %119 : vector<16x128xi1>, vector<16x128xf32>
    %121 = arith.select %15, %120, %115 : vector<16x128xi1>, vector<16x128xf32>
    %122 = arith.truncf %121 : vector<16x128xf32> to vector<16x128xbf16>
    %c1024 = arith.constant 1024 : index
    %c0_35 = arith.constant 0 : index
    %123 = vector.load %arg1[%c1024, %c0_35] : memref<1152x128xbf16, #tpu.memory_space<vmem>>, vector<128x128xbf16>
    %cst_36 = arith.constant dense<0.000000e+00> : vector<16x128xf32>
    %124 = tpu.matmul %122, %123, %cst_36 {dimension_numbers = #tpu.dot_dimension_numbers<[1], [0], [0], [1], [0, 0, 1, 1], [], []>} : vector<16x128xbf16>, vector<128x128xbf16>, vector<16x128xf32> -> vector<16x128xf32>
    %125 = vector.extract_strided_slice %1 {offsets = [8, 0], sizes = [1, 128], strides = [1, 1]} : vector<16x128xf32> to vector<1x128xf32>
    %126 = vector.shape_cast %125 : vector<1x128xf32> to vector<128xf32>
    %127 = vector.shape_cast %126 : vector<128xf32> to vector<1x128xf32>
    %128 = vector.broadcast %127 : vector<1x128xf32> to vector<16x128xf32>
    %129 = arith.addf %124, %128 : vector<16x128xf32>
    %130 = arith.addf %68, %129 : vector<16x128xf32>
    %c0_37 = arith.constant 0 : index
    %c0_38 = arith.constant 0 : index
    %131 = vector.load %arg4[%c0_37, %c0_38] : memref<16x128xf32, #tpu.memory_space<vmem>>, vector<16x128xf32>
    tpu.vector_store %arg4[%c0_37, %c0_38], %130 {strides = array<i32>} : memref<16x128xf32, #tpu.memory_space<vmem>>, vector<16x128xf32>,
    %c16_i32 = arith.constant 16 : i32
    %132 = arith.muli %arg0, %c16_i32 : i32
    %133 = tpu.iota {dimensions = array<i32: 0>} : vector<16x1xi32>
    %134 = vector.broadcast %132 : i32 to vector<16x1xi32>
    %135 = arith.addi %134, %133 : vector<16x1xi32>
    %c37_i32 = arith.constant 37 : i32
    %136 = vector.broadcast %c37_i32 : i32 to vector<16x1xi32>
    %137 = arith.cmpi slt, %135, %136 : vector<16x1xi32>
    %138 = arith.extui %137 : vector<16x1xi1> to vector<16x1xi32>
    %139 = arith.sitofp %138 : vector<16x1xi32> to vector<16x1xf32>
    %c2_i32 = arith.constant 2 : i32
    %140 = vector.broadcast %c2_i32 : i32 to vector<16x128xi32>
    %141 = arith.cmpi sge, %2, %140 : vector<16x128xi32>
    %c8_i32_39 = arith.constant 8 : i32
    %142 = vector.broadcast %c8_i32_39 : i32 to vector<16x128xi32>
    %143 = arith.cmpi slt, %2, %142 : vector<16x128xi32>
    %144 = arith.andi %141, %143 : vector<16x128xi1>
    %145 = arith.subf %0, %129 : vector<16x128xf32>
    %146 = arith.mulf %145, %145 : vector<16x128xf32>
    %cst_40 = arith.constant 0.000000e+00 : f32
    %147 = vector.broadcast %cst_40 : f32 to vector<16x128xf32>
    %148 = arith.select %144, %146, %147 : vector<16x128xi1>, vector<16x128xf32>
    %149 = vector.broadcast %139 : vector<16x1xf32> to vector<16x128xf32>
    %150 = arith.mulf %148, %149 : vector<16x128xf32>
    %cst_41 = arith.constant dense<0.000000e+00> : vector<128xf32>
    %151 = vector.multi_reduction <add>, %150, %cst_41 [0] : vector<16x128xf32> to vector<128xf32>
    %152 = vector.shape_cast %151 : vector<128xf32> to vector<1x128xf32>
    %cst_42 = arith.constant dense<0.000000e+00> : vector<1xf32>
    %153 = vector.multi_reduction <add>, %152, %cst_42 [1] : vector<1x128xf32> to vector<1xf32>
    %154 = vector.shape_cast %153 : vector<1xf32> to vector<1x1xf32>
    %155 = vector.extract %154[0, 0] : f32 from vector<1x1xf32>
    %c8_i32_43 = arith.constant 8 : i32
    %156 = vector.broadcast %c8_i32_43 : i32 to vector<16x128xi32>
    %157 = arith.cmpi sge, %2, %156 : vector<16x128xi32>
    %c26_i32 = arith.constant 26 : i32
    %158 = vector.broadcast %c26_i32 : i32 to vector<16x128xi32>
    %159 = arith.cmpi slt, %2, %158 : vector<16x128xi32>
    %160 = arith.andi %157, %159 : vector<16x128xi1>
    %cst_44 = arith.constant -1.000000e+30 : f32
    %161 = vector.broadcast %cst_44 : f32 to vector<16x128xf32>
    %162 = arith.select %160, %129, %161 : vector<16x128xi1>, vector<16x128xf32>
    %cst_45 = arith.constant dense<0xFF800000> : vector<16xf32>
    %163 = vector.multi_reduction <maximumf>, %162, %cst_45 [1] : vector<16x128xf32> to vector<16xf32>
    %164 = vector.shape_cast %163 : vector<16xf32> to vector<16x1xf32>
    %165 = vector.broadcast %164 : vector<16x1xf32> to vector<16x128xf32>
    %166 = arith.subf %162, %165 : vector<16x128xf32>
    %167 = math.exp %166 : vector<16x128xf32>
    %cst_46 = arith.constant dense<0.000000e+00> : vector<16xf32>
    %168 = vector.multi_reduction <add>, %167, %cst_46 [1] : vector<16x128xf32> to vector<16xf32>
    %169 = vector.shape_cast %168 : vector<16xf32> to vector<16x1xf32>
    %170 = math.log %169 : vector<16x1xf32>
    %171 = arith.addf %170, %164 : vector<16x1xf32>
    %172 = vector.broadcast %171 : vector<16x1xf32> to vector<16x128xf32>
    %173 = arith.subf %129, %172 : vector<16x128xf32>
    %174 = arith.mulf %10, %173 : vector<16x128xf32>
    %cst_47 = arith.constant dense<0.000000e+00> : vector<16xf32>
    %175 = vector.multi_reduction <add>, %174, %cst_47 [1] : vector<16x128xf32> to vector<16xf32>
    %176 = vector.shape_cast %175 : vector<16xf32> to vector<16x1xf32>
    %cst_48 = arith.constant 0.000000e+00 : f32
    %177 = vector.broadcast %cst_48 : f32 to vector<16x1xf32>
    %178 = arith.subf %177, %176 : vector<16x1xf32>
    %179 = arith.mulf %178, %139 : vector<16x1xf32>
    %180 = vector.shape_cast %179 : vector<16x1xf32> to vector<1x16x1xf32>
    %cst_49 = arith.constant dense<0.000000e+00> : vector<1xf32>
    %181 = vector.multi_reduction <add>, %180, %cst_49 [1, 2] : vector<1x16x1xf32> to vector<1xf32>
    %182 = vector.shape_cast %181 : vector<1xf32> to vector<1x1x1xf32>
    %183 = vector.extract %182[0, 0, 0] : f32 from vector<1x1x1xf32>
    %184 = tpu.iota {dimensions = array<i32: 0>} : vector<8x128xi32>
    %185 = tpu.iota {dimensions = array<i32: 1>} : vector<8x128xi32>
    %186 = vector.shape_cast %151 : vector<128xf32> to vector<1x128xf32>
    %187 = vector.shape_cast %186 : vector<1x128xf32> to vector<1x128xf32>
    %188 = vector.broadcast %187 : vector<1x128xf32> to vector<8x128xf32>
    %c0_i32 = arith.constant 0 : i32
    %189 = vector.broadcast %c0_i32 : i32 to vector<8x128xi32>
    %190 = arith.cmpi eq, %184, %189 : vector<8x128xi32>
    %cst_50 = arith.constant 0.000000e+00 : f32
    %191 = vector.broadcast %cst_50 : f32 to vector<8x128xf32>
    %192 = arith.select %190, %188, %191 : vector<8x128xi1>, vector<8x128xf32>
    %c1_i32 = arith.constant 1 : i32
    %193 = vector.broadcast %c1_i32 : i32 to vector<8x128xi32>
    %194 = arith.cmpi eq, %184, %193 : vector<8x128xi32>
    %c0_i32_51 = arith.constant 0 : i32
    %195 = vector.broadcast %c0_i32_51 : i32 to vector<8x128xi32>
    %196 = arith.cmpi eq, %185, %195 : vector<8x128xi32>
    %197 = arith.andi %194, %196 : vector<8x128xi1>
    %cst_52 = arith.constant 0.000000e+00 : f32
    %198 = vector.broadcast %155 : f32 to vector<8x128xf32>
    %199 = vector.broadcast %cst_52 : f32 to vector<8x128xf32>
    %200 = arith.select %197, %198, %199 : vector<8x128xi1>, vector<8x128xf32>
    %201 = arith.addf %192, %200 : vector<8x128xf32>
    %c1_i32_53 = arith.constant 1 : i32
    %202 = vector.broadcast %c1_i32_53 : i32 to vector<8x128xi32>
    %203 = arith.cmpi eq, %184, %202 : vector<8x128xi32>
    %c1_i32_54 = arith.constant 1 : i32
    %204 = vector.broadcast %c1_i32_54 : i32 to vector<8x128xi32>
    %205 = arith.cmpi eq, %185, %204 : vector<8x128xi32>
    %206 = arith.andi %203, %205 : vector<8x128xi1>
    %cst_55 = arith.constant 0.000000e+00 : f32
    %207 = vector.broadcast %183 : f32 to vector<8x128xf32>
    %208 = vector.broadcast %cst_55 : f32 to vector<8x128xf32>
    %209 = arith.select %206, %207, %208 : vector<8x128xi1>, vector<8x128xf32>
    %210 = arith.addf %201, %209 : vector<8x128xf32>
    %211 = vector.shape_cast %210 : vector<8x128xf32> to vector<1x8x128xf32>
    %c0_56 = arith.constant 0 : index
    %c0_57 = arith.constant 0 : index
    %c0_58 = arith.constant 0 : index
    %212 = vector.load %arg5[%c0_56, %c0_57, %c0_58] : memref<1x8x128xf32, #tpu.memory_space<vmem>>, vector<1x8x128xf32>
    tpu.vector_store %arg5[%c0_56, %c0_57, %c0_58], %211 {strides = array<i32>} : memref<1x8x128xf32, #tpu.memory_space<vmem>>, vector<1x8x128xf32>,
    return
  }
  func.func @transform_0(%arg0: i32) -> (i32, i32) {
    %c0_i32 = arith.constant 0 : i32
    %c0_i32_0 = arith.constant 0 : i32
    %c0_i32_1 = arith.constant 0 : i32
    return %c0_i32, %c0_i32_0 : i32, i32
  }
  func.func @transform_1(%arg0: i32) -> (i32, i32) {
    %c0_i32 = arith.constant 0 : i32
    %c0_i32_0 = arith.constant 0 : i32
    %c0_i32_1 = arith.constant 0 : i32
    return %c0_i32, %c0_i32_0 : i32, i32
  }
  func.func @transform_2(%arg0: i32) -> (i32, i32) {
    %c0_i32 = arith.constant 0 : i32
    %c0_i32_0 = arith.constant 0 : i32
    return %arg0, %c0_i32 : i32, i32
  }
  func.func @transform_3(%arg0: i32) -> (i32, i32) {
    %c0_i32 = arith.constant 0 : i32
    %c0_i32_0 = arith.constant 0 : i32
    return %arg0, %c0_i32 : i32, i32
  }
  func.func @transform_4(%arg0: i32) -> (i32, i32, i32) {
    %c0_i32 = arith.constant 0 : i32
    %c0_i32_0 = arith.constant 0 : i32
    %c0_i32_1 = arith.constant 0 : i32
    return %arg0, %c0_i32, %c0_i32_0 : i32, i32, i32
  }
}

</mosaic_0001>

<bundles_post_ra>
// kernel: tpu_custom_call.1
= control target key start
LH: loop header
LB: loop body
LE: loop exit
PB: predicated region body
PF: predicated region fallthrough
CT: control target
= control target key end

     0   :  { %s2788_s0 = inlined_call_operand.hbm [shape: bf16[1152,128], index: 0, kind: input, shape index: {}]   ;;  %s2789_s1 = inlined_call_operand.hbm [shape: f32[16,128], index: 1, kind: input, shape index: {}]   ;;  %s2790_s2 = inlined_call_operand.hbm [shape: f32[48,128], index: 2, kind: input, shape index: {}]   ;;  %s2791_s3 = inlined_call_operand.hbm [shape: f32[48,128], index: 3, kind: output, shape index: {0}]   ;;  %s2792_s4 = inlined_call_operand.hbm [shape: f32[3,8,128], index: 4, kind: output, shape index: {1}]  }
   0x1   :  { %2798 = sst [smem:[#allocation16_spill]] %s2788_s0 }
   0x2   :  { %10 = vsyncpa [#allocation3], 0 }
   0x3   :  { %11 = vsyncpa [#allocation6], 0 }
   0x4   :  { %12 = vsyncpa [#allocation4], 0 }
   0x5   :  { %14 = vsyncpa [#allocation4 + $0x1], 0 }
   0x6   :  { %15 = vsyncpa [#allocation10], 0 }
   0x7   :  { %17 = vsyncpa [#allocation10 + $0x1], 0  ;;  %s2348_s15 = smov 0   ;;  %s2350_s16 = smov 0  }
   0x8   :  { %s2352_s17 = smov 0   ;;  %s2354_s18 = smov 0  }
   0x9 LB: > { %s2369_s19 = sadd.s32 4294967295, %s2307_s18   ;;  %s1582_s20 = sadd.s32 4294967294, %s2307_s18   ;;  %s2307_s18 = sphi %s2354_s18, %s2821_s18   ;;  %s2303_s17 = sphi %s2352_s17, %s2820_s17   ;;  %s2299_s16 = sphi %s2350_s16, %s2819_s16   ;;  %s2295_s15 = sphi %s2348_s15, %s2818_s15  }
   0xa   : > { %s2373_s21 = sadd.s32 1, %s2307_s18   ;;  %s72_s22 = sadd.s32 1, %s2303_s17 }
   0xb   : > { %s69_s23 = ssub.s32 %s2307_s18, %s2373_s21  ;;  %p79_p0 = scmp.ne.s32.totalorder %s2303_s17, %s2299_s16 }
   0xc   : > { %p70_p1 = scmp.eq.s32.totalorder %s69_s23, 0  ;;  %p80_p2 = scmp.eq.s32.totalorder %s2307_s18, 0 }
   0xd   : > { %p85_p3 = scmp.ne.s32.totalorder %s2299_s16, %s2295_s15  ;;  %p2793_p4 = scmp.eq.s32.totalorder %s2369_s19, 0 }
   0xe   : > { %s2385_s24 = scalar_select %p70_p1, %s2303_s17, %s72_s22  }
   0xf   : > { %p2387_p5 = por %p80_p2, %p79_p0  ;;  %p2393_p6 = por %p2793_p4, %p85_p3 }
  0x10   : > { %p109_p7 = scmp.eq.s32.totalorder %s2369_s19, 2  ;;  %p115_p8 = scmp.eq.s32.totalorder %s1582_s20, 2 }
  0x11   : > { %s2799_s25 = scalar_select %p2387_p5, 1, 0 }
  0x12   : > { %s2800_s26 = scalar_select %p2393_p6, 1, 0 }
  0x13   : > { %p1583_p9 = scmp.ge.s32.totalorder %s2307_s18, 1  ;;  %p148_p10 = scmp.lt.s32.totalorder %s2307_s18, 4 }
  0x14   : > { %p2400_p11 = por %p109_p7, %p79_p0  ;;  %p2404_p12 = por %p115_p8, %p85_p3 }
  0x15   : > { %p2408_p13 = pnand %p1583_p9, %p148_p10  ;;  %s2309_s30 = smov [#allocation2]  }
  0x16   : > { %s2801_s27 = scalar_select %p2400_p11, 1, 0 }
  0x17   : > { %s2802_s28 = scalar_select %p2404_p12, 1, 0 }
  0x18   : > { %s2803_s29 = scalar_select %p2408_p13, 1, 0 }
  0x19   : > { %p1965_p1 = pneg %p2408_p13  ;;  %s160_s5 = sshll.u32 %s2309_s30, 4  ;;  %s161_s5 = int_to_ptr.vmem [resolvable:$true] %s160_s5 }
  0x1a   : > { %s2310_s7 = smov [#allocation5]   ;;  %s2805_s0 = sld [smem:[#allocation16_spill]] }
  0x1b   : > { %p2416_p2 = pnand %p1965_p1, %p2793_p4  ;;  %s173_s8 = sshll.u32 %s2310_s7, 4  ;;  %s174_s8 = int_to_ptr.vmem [resolvable:$true] %s173_s8 }
  0x1d   : > { %p2117_p7 = pneg %p2416_p2 }
  0x20   : > { %s2115_s11 = scalar_lea.hbm %s2805_s0, 9216 }
  0x21   : > { %p2116_p3 = scmp.ne.s32.totalorder %s2805_s0, %s2115_s11  ;;  %p2122_p10 = scmp.lt.u32.totalorder %s2115_s11, %s2805_s0 }
  0x23   : > { %p2118_p8 = pnand %p2117_p7, %p2116_p3 }
  0x25   : > { %p2119_p9 = pneg %p2118_p8 }
  0x27   : > { %p2124_p1 = pnand %p2122_p10, %p2119_p9 }
  0x29   : > { %2127 = shalt.err (!%p2124_p1)
}
  0x2a   : > { %s2128_s22 = scalar_lea.vmem %s161_s5, 9216  ;;  %p2136_p11 = scmp.lt.s32.totalorder %s161_s5, %s161_s5 }
  0x2b   : > { %p2129_p4 = scmp.ne.s32.totalorder %s161_s5, %s2128_s22  ;;  %p2137_p6 = scmp.lt.s32.totalorder %s2128_s22, %s2128_s22 }
  0x2d   : > { %p2131_p0 = pnand %p2129_p4, %p2117_p7  ;;  %p2138_p13 = por %p2137_p6, %p2136_p11 }
  0x2f   : > { %p2132_p12 = pneg %p2131_p0 }
  0x31   : > { %p2139_p5 = pnand %p2138_p13, %p2132_p12 }
  0x33   : > { %2142 = shalt.err (!%p2139_p5)
}
  0x34   : > { %s2311_s23 = smov 64   ;;  %s2312_s30 = smov 4  }
  0x35   : > { %1968 = dma.hbm_to_vmem [thread:$0]  (!%p2416_p2), %s2805_s0, 9216, %s161_s5, [#allocation3], %s2311_s23, %s2311_s23, %s2312_s30  }
  0x36   : > { %p2806_p3 = scmp.ne.s32.totalorder %s2799_s25, 0  ;;  %p2807_p4 = scmp.lt.s32.totalorder %s2307_s18, 3 }
  0x37   : > { %s187_s11 = sand.u32 1, %s2307_s18   ;;  %s2143_s14 = scalar_lea.hbm %s2789_s1, 256 }
  0x38   : > { %p2447_p0 = pnand %p2807_p4, %p2806_p3  ;;  %p2144_p5 = scmp.ne.s32.totalorder %s2789_s1, %s2143_s14 }
  0x39   : > { %p2150_p12 = scmp.lt.u32.totalorder %s2143_s14, %s2789_s1 }
  0x3a   : > { %s2808_s10 = scalar_select %p2447_p0, 1, 0 }
  0x3b   : > { %p2146_p6 = pnand %p2144_p5, %p2117_p7 }
  0x3d   : > { %p2147_p11 = pneg %p2146_p6 }
  0x3f   : > { %p2152_p13 = pnand %p2150_p12, %p2147_p11 }
  0x41   : > { %2155 = shalt.err (!%p2152_p13)
}
  0x42   : > { %s2156_s23 = scalar_lea.vmem %s174_s8, 256  ;;  %p2164_p1 = scmp.lt.s32.totalorder %s174_s8, %s174_s8 }
  0x43   : > { %p2157_p8 = scmp.ne.s32.totalorder %s174_s8, %s2156_s23  ;;  %p2165_p3 = scmp.lt.s32.totalorder %s2156_s23, %s2156_s23 }
  0x45   : > { %p2159_p9 = pnand %p2157_p8, %p2117_p7  ;;  %p2166_p4 = por %p2165_p3, %p2164_p1 }
  0x47   : > { %p2160_p10 = pneg %p2159_p9 }
  0x49   : > { %p2167_p0 = pnand %p2166_p4, %p2160_p10 }
  0x4b   : > { %2170 = shalt.err (!%p2167_p0)
}
  0x4c   : > { %s2313_s30 = smov 128   ;;  %s2314_s7 = smov 8  }
  0x4d   : > { %1971 = dma.hbm_to_vmem [thread:$0]  (!%p2416_p2), %s2789_s1, 256, %s174_s8, [#allocation6], %s2313_s30, %s2313_s30, %s2314_s7  }
  0x4e   : > { %s189_s13 = sand.u32 1, %s2303_s17   ;;  %s1680_s20 = sshll.u32 %s2307_s18, 8 }
  0x4f   : > { %s1587_s14 = sshll.u32 %s189_s13, 4  ;;  %s2480_s5 = scalar_lea.hbm %s2790_s2, %s1680_s20 }
  0x50   : > { %s191_s6 = scalar_lea.vmem [#allocation7], %s1587_s14  ;;  %s2484_s0 = scalar_lea.sflag [#allocation3], %s187_s11 }
  0x51   : > { %s198_s23 = sshll.u32 %s191_s6, 4  ;;  %s2171_s9 = scalar_lea.hbm %s2480_s5, 256  ;;  %s2482_s23 = int_to_ptr.vmem [resolvable:$true] %s198_s23 }
  0x52   : > { %p2172_p2 = scmp.ne.s32.totalorder %s2480_s5, %s2171_s9  ;;  %p2809_p7 = scmp.ne.s32.totalorder %s2808_s10, 0 }
  0x53   : > { %s2176_s13 = scalar_lea.hbm %s2790_s2, 768  ;;  %p2177_p11 = scmp.lt.u32.totalorder %s2480_s5, %s2790_s2 }
  0x54   : > { %p2173_p0 = pneg %p2809_p7  ;;  %p2178_p12 = scmp.lt.u32.totalorder %s2176_s13, %s2171_s9 }
  0x55   : > { %p2180_p8 = scmp.lt.u32.totalorder %s2171_s9, %s2480_s5 }
  0x56   : > { %p2174_p5 = pnand %p2173_p0, %p2172_p2  ;;  %p2179_p13 = por %p2178_p12, %p2177_p11 }
  0x58   : > { %p2175_p6 = pneg %p2174_p5  ;;  %p2181_p9 = por %p2180_p8, %p2179_p13 }
  0x5a   : > { %p2182_p10 = pnand %p2181_p9, %p2175_p6 }
  0x5c   : > { %2185 = shalt.err (!%p2182_p10)
}
  0x5d   : > { %s2186_s11 = scalar_lea.vmem %s2482_s23, 256  ;;  %s2315_s14 = smov [#allocation7]  }
  0x5e   : > { %p2187_p1 = scmp.ne.s32.totalorder %s2482_s23, %s2186_s11  ;;  %s2191_s25 = sshll.u32 %s2315_s14, 4  ;;  %s2192_s25 = int_to_ptr.vmem [resolvable:$false] %s2191_s25 }
  0x5f   : > { %s2193_s6 = scalar_lea.vmem %s2192_s25, 512  ;;  %p2194_p2 = scmp.lt.s32.totalorder %s2482_s23, %s2192_s25 }
  0x60   : > { %p2189_p3 = pnand %p2187_p1, %p2173_p0  ;;  %p2195_p5 = scmp.lt.s32.totalorder %s2193_s6, %s2186_s11 }
  0x62   : > { %p2190_p4 = pneg %p2189_p3  ;;  %p2196_p11 = por %p2195_p5, %p2194_p2 }
  0x64   : > { %p2197_p12 = pnand %p2196_p11, %p2190_p4 }
  0x66   : > { %2200 = shalt.err (!%p2197_p12)
}
  0x67   : > { %1975 = dma.hbm_to_vmem [thread:$0]  (!%p2809_p7), %s2480_s5, 256, %s2482_s23, %s2484_s0, %s2313_s30, %s2313_s30, %s2314_s7  }
  0x68   : > { %p2810_p0 = scmp.ne.s32.totalorder %s2803_s29, 0 }
  0x69   : > { %p2811_p6 = scmp.eq.s32.totalorder (!%p2810_p0), %s2369_s19, 0 }
  0x6a   : > { %210 = sbr.rel (%p2810_p0) target bundleno = 2944 (0xb80), region = 32 }
  0x71   : > { %2274 = dma.done.wait (%p2811_p6), [#allocation3], 9216   ;;  %p2812_p13 = pmov %p2811_p6 }
  0x72   : > { %p2813_p8 = pmov %p2811_p6 }
  0x73   : > { %2276 = vsyncadd (%p2812_p13), [#allocation3], 4294958080 }
  0x74   : > { %2278 = dma.done.wait (%p2813_p8), [#allocation6], 256   ;;  %p2814_p9 = pmov %p2811_p6 }
  0x75   : > { %s220_s10 = sand.u32 1, %s2369_s19   ;;  %s2527_s0 = sand.u32 1, %s2299_s16  }
  0x76   : > { %2280 = vsyncadd (%p2814_p9), [#allocation6], 4294967040  ;;  %s1593_s29 = sshll.u32 %s2527_s0, 4  ;;  %s221_s30 = scalar_lea.sflag [#allocation3], %s220_s10 }
  0x77   : > { %s2532_s7 = scalar_lea.vmem [#allocation7], %s1593_s29  ;;  %p2815_p7 = scmp.ne.s32.totalorder %s2800_s26, 0 }
  0x79   : > { %2282 = dma.done.wait (%p2815_p7), %s221_s30, 256  }
  0x7a   : > { %2284 = vsyncadd (%p2815_p7), %s221_s30, 4294967040  ;;  %v2316_v0 = vmov 127   ;;  %v2317_v1 = vmov 0.0   ;;  %v2541_v2 = vld [vmem:[%s2532_s7] sm:$0xff]  ;;  %v2544_v3 = vld [vmem:[%s2532_s7 + $0x8] sm:$0xff]  ;;  %vm2318_vm0 = vmmov 0   ;;  %v261_v24 = vlaneseq }
  0x7b   : > { %2032 = vset.pattern.permute.xlu0 %v2316_v0  ;;  %1763 = vmatprep.subr.bf16.mxu0 %v2317_v1  ;;  %v1943_v4 = vtrunc.f32 %v2541_v2  ;;  %v1945_v5 = vtrunc.f32 %v2544_v3  ;;  %v2033_v6 = vld [vmem:[#allocation2] sm:$0xff]   ;;  %v2034_v9 = vld [vmem:[#allocation2 + $0x8] sm:$0xff]   ;;  %v2035_v12 = vld [vmem:[#allocation2 + $0x10] sm:$0xff]   ;;  %s2687_s26 = scalar_lea.vmem [#allocation8], %s1593_s29  ;;  %s1670_s5 = sshll.u32 %s2369_s19, 4 }
  0x7c   : > { %1783 = vmatprep.subr.bf16.mxu1 %v2317_v1  ;;  %1764 = vmatpush3.bf16.msra.mxu0 %v2033_v6  ;;  %v2036_v13 = vld [vmem:[#allocation2 + $0x18] sm:$0xff]   ;;  %v2037_v14 = vld [vmem:[#allocation2 + $0x20] sm:$0xff]   ;;  %v2038_v16 = vld [vmem:[#allocation2 + $0x28] sm:$0xff]   ;;  %v2566_v25 = vand.u32 127, %v261_v24  ;;  %v2590_v41 = vshrl.u32 %v261_v24, 7  ;;  %s1681_s23 = sshll.u32 %s2369_s19, 8 }
  0x7d   : > { %v1944_v7 = vcvt.f32.s32 %v1943_v4  ;;  %v1946_v8 = vcvt.f32.s32 %v1945_v5  ;;  %1765 = vmatprep.subr.bf16.mxu0 %v2317_v1  ;;  %1779 = vmatprep.mubr.msk.bf16.mxu0 %vm2318_vm0, %v2317_v1  ;;  %v2041_v15 = vld [vmem:[#allocation2 + $0x40] sm:$0xff]   ;;  %v2042_v17 = vld [vmem:[#allocation2 + $0x48] sm:$0xff]   ;;  %v2039_v18 = vld [vmem:[#allocation2 + $0x30] sm:$0xff]   ;;  %s2707_s12 = scalar_lea.hbm %s2791_s3, %s1681_s23  ;;  %s1445_s13 = sshll.u32 %s2687_s26, 4  ;;  %s2710_s13 = int_to_ptr.vmem [resolvable:$true] %s1445_s13 }
  0x7e   : > { %1799 = vmatprep.mubr.msk.bf16.mxu1 %vm2318_vm0, %v2317_v1  ;;  %1784 = vmatpush3.bf16.msra.mxu1 %v2041_v15  ;;  %v2043_v19 = vld [vmem:[#allocation2 + $0x50] sm:$0xff]   ;;  %v2040_v20 = vld [vmem:[#allocation2 + $0x38] sm:$0xff]   ;;  %v2045_v22 = vld [vmem:[#allocation2 + $0x60] sm:$0xff]   ;;  %v303_v42 = vsub.s32 0, %v2590_v41  ;;  %v419_v0 = vsub.s32 1, %v2590_v41  ;;  %s1427_s20 = scalar_lea.sflag [#allocation4], %s2527_s0 }
  0x7f   : > { %v265_v10 = vadd.s32 8, %v1944_v7  ;;  %v266_v11 = vadd.s32 8, %v1946_v8  ;;  %1785 = vmatprep.subr.bf16.mxu1 %v2317_v1  ;;  %v2044_v21 = vld [vmem:[#allocation2 + $0x58] sm:$0xff]   ;;  %v2046_v23 = vld [vmem:[#allocation2 + $0x68] sm:$0xff]   ;;  %v2047_v33 = vld [vmem:[#allocation2 + $0x70] sm:$0xff]   ;;  %s2201_s22 = scalar_lea.vmem %s2710_s13, 256 }
  0x80   : > { %1766 = vmatpush3.bf16.msra.mxu0 %v2034_v9  ;;  %v2048_v34 = vld [vmem:[#allocation2 + $0x78] sm:$0xff]   ;;  %v2049_v35 = vld [vmem:[#allocation2 + $0x80] sm:$0xff]   ;;  %v2050_v36 = vld [vmem:[#allocation2 + $0x88] sm:$0xff]   ;;  %p2202_p10 = scmp.ne.s32.totalorder %s2710_s13, %s2201_s22  ;;  %p2816_p1 = scmp.ne.s32.totalorder %s2801_s27, 0 }
  0x81   : > { %268 = vperm.xlu0 %2032, %v265_v10   ;;  %1767 = vmatprep.subr.bf16.mxu0 %v2317_v1  ;;  %v2051_v37 = vld [vmem:[#allocation2 + $0x90] sm:$0xff]   ;;  %v2052_v38 = vld [vmem:[#allocation2 + $0x98] sm:$0xff]   ;;  %v2053_v39 = vld [vmem:[#allocation2 + $0xa0] sm:$0xff]   ;;  %s2319_s11 = smov [#allocation8]  }
  0x82   : > { %1786 = vmatpush3.bf16.msra.mxu1 %v2042_v17  ;;  %v2054_v40 = vld [vmem:[#allocation2 + $0xa8] sm:$0xff]   ;;  %v2593_v43 = vld [vmem:[#allocation5] sm:$0xff]  ;;  %v2055_v56 = vld [vmem:[#allocation2 + $0xb0] sm:$0xff]   ;;  %p2203_p3 = pnand %p2202_p10, %p2816_p1  ;;  %s2205_s14 = sshll.u32 %s2319_s11, 4  ;;  %s2206_s14 = int_to_ptr.vmem [resolvable:$false] %s2205_s14 }
  0x83   : > { %1787 = vmatprep.subr.bf16.mxu1 %v2317_v1  ;;  %v304_v44 = vrot.slane %v2593_v43, %v303_v42  ;;  %v2056_v57 = vld [vmem:[#allocation2 + $0xb8] sm:$0xff]   ;;  %v2057_v58 = vld [vmem:[#allocation2 + $0xc0] sm:$0xff]   ;;  %v2058_v59 = vld [vmem:[#allocation2 + $0xc8] sm:$0xff]   ;;  %s2207_s25 = scalar_lea.vmem %s2206_s14, 512  ;;  %p2208_p2 = scmp.lt.s32.totalorder %s2710_s13, %s2206_s14 }
  0x84   : > { %1768 = vmatpush3.bf16.msra.mxu0 %v2035_v12  ;;  %v2059_v60 = vld [vmem:[#allocation2 + $0xd0] sm:$0xff]   ;;  %v2060_v61 = vld [vmem:[#allocation2 + $0xd8] sm:$0xff]   ;;  %v2061_v62 = vld [vmem:[#allocation2 + $0xe0] sm:$0xff]   ;;  %p2204_p4 = pneg %p2203_p3  ;;  %p2209_p5 = scmp.lt.s32.totalorder %s2207_s25, %s2201_s22 }
  0x85   : > { %271 = vperm.xlu0 %2032, %v266_v11   ;;  %1769 = vmatprep.subr.bf16.mxu0 %v2317_v1  ;;  %v2062_v63 = vld [vmem:[#allocation2 + $0xe8] sm:$0xff]   ;;  %v2064_v15 = vld [vmem:[#allocation2 + $0xf8] sm:$0xff]  }
  0x86   : > { %1788 = vmatpush3.bf16.msra.mxu1 %v2043_v19  ;;  %v2066_v17 = vld [vmem:[#allocation2 + $0x108] sm:$0xff]   ;;  %v2068_v19 = vld [vmem:[#allocation2 + $0x118] sm:$0xff]   ;;  %p2210_p11 = por %p2209_p5, %p2208_p2 }
  0x87   : > { %1789 = vmatprep.subr.bf16.mxu1 %v2317_v1 }
  0x88   : > { %1770 = vmatpush3.bf16.msra.mxu0 %v2036_v13  ;;  %p2211_p12 = pnand %p2210_p11, %p2204_p4 }
  0x89   : > { %1771 = vmatprep.subr.bf16.mxu0 %v2317_v1 }
  0x8a   : > { %1790 = vmatpush3.bf16.msra.mxu1 %v2044_v21  ;;  %v2070_v21 = vld [vmem:[#allocation2 + $0x128] sm:$0xff]  }
  0x8b   : > { %1791 = vmatprep.subr.bf16.mxu1 %v2317_v1 }
  0x8c   : > { %1772 = vmatpush3.bf16.msra.mxu0 %v2037_v14  ;;  %v2063_v14 = vld [vmem:[#allocation2 + $0xf0] sm:$0xff]  }
  0x8d   : > { %1773 = vmatprep.subr.bf16.mxu0 %v2317_v1 }
  0x8e   : > { %1792 = vmatpush3.bf16.msra.mxu1 %v2045_v22  ;;  %v535_v22 = vsub.s32 2, %v2590_v41 }
  0x8f   : > { %1793 = vmatprep.subr.bf16.mxu1 %v2317_v1 }
  0x90   : > { %1774 = vmatpush3.bf16.msra.mxu0 %v2038_v16  ;;  %v2065_v16 = vld [vmem:[#allocation2 + $0x100] sm:$0xff]  }
  0x91   : > { %1775 = vmatprep.subr.bf16.mxu0 %v2317_v1 }
  0x92   : > { %1794 = vmatpush3.bf16.msra.mxu1 %v2046_v23  ;;  %v536_v23 = vrot.slane %v2593_v43, %v535_v22  ;;  %v2089_v22 = vld [vmem:[#allocation2 + $0x1c0] sm:$0xff]  }
  0x93   : > { %1795 = vmatprep.subr.bf16.mxu1 %v2317_v1 }
  0x94   : > { %1776 = vmatpush3.bf16.msra.mxu0 %v2039_v18  ;;  %v2067_v18 = vld [vmem:[#allocation2 + $0x110] sm:$0xff]  }
  0x95   : > { %1777 = vmatprep.subr.bf16.mxu0 %v2317_v1 }
  0x96   : > { %1796 = vmatpush3.bf16.msra.mxu1 %v2047_v33 }
  0x97   : > { %1797 = vmatprep.subr.bf16.mxu1 %v2317_v1 }
  0x98   : > { %1778 = vmatpush3.bf16.msra.mxu0 %v2040_v20  ;;  %v2069_v20 = vld [vmem:[#allocation2 + $0x120] sm:$0xff]  }
  0x99   : > { %1803 = vmatprep.subr.bf16.mxu0 %v2317_v1 }
  0x9a   : > { %1798 = vmatpush3.bf16.msra.mxu1 %v2048_v34 }
  0x9b   : > { %1823 = vmatprep.subr.bf16.mxu1 %v2317_v1 }
 0x100   : > { %v269_v26 = vpop.permute.xlu0 %268 }
 0x101   : > { %vm273_vm1 = vcmp.eq.s32.totalorder %v2566_v25, %v269_v26 }
 0x102   : > { %v2570_v27 = vsel %vm273_vm1, 1.0, %v2317_v1  ;;  %vm279_vm1 = vcmp.ge.s32.totalorder %v2566_v25, 64 }
 0x103   : > { %v282_v30 = vadd.f32 %v2570_v27, %v2541_v2  ;;  %v420_v2 = vrot.slane %v2593_v43, %v419_v0  ;;  %v2081_v0 = vld [vmem:[#allocation2 + $0x180] sm:$0xff]  }
 0x104   : > { %v272_v28 = vpop.permute.xlu0 %271 }
 0x105   : > { %vm274_vm2 = vcmp.eq.s32.totalorder %v2566_v25, %v272_v28 }
 0x106   : > { %v2574_v29 = vsel %vm274_vm2, 1.0, %v2317_v1  ;;  %vm280_vm2 = vcmp.lt.s32.totalorder %v2566_v25, 66 }
 0x107   : > { %v283_v31 = vadd.f32 %v2574_v29, %v2544_v3 }
 0x109   : > { %v284_v32 = vpack.c.bf16 %v283_v31, %v282_v30 }
 0x10b   : > { %1780 = vmatmul.mubr.bf16.vlgmr.msra.gmra.mrb[0].mxu0 %v284_v32 }
 0x10c   : > { %1819 = vmatprep.mubr.msk.bf16.mxu0 %vm2318_vm0, %v2317_v1  ;;  %1804 = vmatpush3.bf16.msra.mxu0 %v2049_v35 }
 0x10d   : > { %1805 = vmatprep.subr.bf16.mxu0 %v2317_v1 }
 0x110   : > { %1806 = vmatpush3.bf16.msra.mxu0 %v2050_v36 }
 0x111   : > { %1807 = vmatprep.subr.bf16.mxu0 %v2317_v1 }
 0x114   : > { %1808 = vmatpush3.bf16.msra.mxu0 %v2051_v37 }
 0x115   : > { %1809 = vmatprep.subr.bf16.mxu0 %v2317_v1 }
 0x118   : > { %1810 = vmatpush3.bf16.msra.mxu0 %v2052_v38  ;;  %v2071_v38 = vld [vmem:[#allocation2 + $0x130] sm:$0xff]  }
 0x119   : > { %1811 = vmatprep.subr.bf16.mxu0 %v2317_v1 }
 0x11c   : > { %1812 = vmatpush3.bf16.msra.mxu0 %v2053_v39  ;;  %v2072_v39 = vld [vmem:[#allocation2 + $0x138] sm:$0xff]  }
 0x11d   : > { %1813 = vmatprep.subr.bf16.mxu0 %v2317_v1 }
 0x120   : > { %1814 = vmatpush3.bf16.msra.mxu0 %v2054_v40  ;;  %v2073_v40 = vld [vmem:[#allocation2 + $0x140] sm:$0xff]  }
 0x121   : > { %1815 = vmatprep.subr.bf16.mxu0 %v2317_v1 }
 0x124   : > { %1816 = vmatpush3.bf16.msra.mxu0 %v2055_v56 }
 0x125   : > { %1817 = vmatprep.subr.bf16.mxu0 %v2317_v1 }
 0x128   : > { %1818 = vmatpush3.bf16.msra.mxu0 %v2056_v57 }
 0x129   : > { %1843 = vmatprep.subr.bf16.mxu0 %v2317_v1 }
 0x1de   : > { %v387_v45 = vpop.f32.mrb[0].mxu0 }
 0x1df   : > { %v388_v46 = vadd.f32 %v387_v45, %v304_v44  ;;  %v1781_v47 = vpop.f32.mrb[1].mxu0  ;;  %v2075_v45 = vld [vmem:[#allocation2 + $0x150] sm:$0xff]  }
 0x1e0   : > { %v390_v48 = vpop.f32.mrb[2].mxu0  ;;  %v2077_v47 = vld [vmem:[#allocation2 + $0x160] sm:$0xff]  }
 0x1e1   : > { %v396_v49 = vmul.f32 0.2, %v388_v46  ;;  %v391_v50 = vadd.f32 %v390_v48, %v304_v44  ;;  %v1782_v51 = vpop.f32.mrb[3].mxu0  ;;  %vm394_vm3 = vcmp.ge.f32.partialorder %v388_v46, 0.0  ;;  %v2074_v44 = vld [vmem:[#allocation2 + $0x148] sm:$0xff]  }
 0x1e2   : > { %v2078_v48 = vld [vmem:[#allocation2 + $0x168] sm:$0xff]  }
 0x1e3   : > { %vm395_vm4 = vcmp.ge.f32.partialorder %v391_v50, 0.0  ;;  %v397_v52 = vmul.f32 0.2, %v391_v50  ;;  %v398_v53 = vsel %vm394_vm3, %v388_v46, %v396_v49  ;;  %v2076_v46 = vld [vmem:[#allocation2 + $0x158] sm:$0xff]   ;;  %v651_v49 = vsub.s32 3, %v2590_v41 }
 0x1e5   : > { %v399_v54 = vsel %vm395_vm4, %v391_v50, %v397_v52  ;;  %v652_v50 = vrot.slane %v2593_v43, %v651_v49  ;;  %v2097_v49 = vld [vmem:[#allocation2 + $0x200] sm:$0xff]  }
 0x1e6   : > { %v400_v55 = vpack.c.bf16 %v399_v54, %v398_v53 }
 0x1e8   : > { %1800 = vmatmul.mubr.bf16.vlgmr.msra.gmra.mrb[0].mxu1 %v400_v55 }
 0x1e9   : > { %1839 = vmatprep.mubr.msk.bf16.mxu1 %vm2318_vm0, %v2317_v1  ;;  %1824 = vmatpush3.bf16.msra.mxu1 %v2057_v58 }
 0x1ea   : > { %1825 = vmatprep.subr.bf16.mxu1 %v2317_v1 }
 0x1ed   : > { %1826 = vmatpush3.bf16.msra.mxu1 %v2058_v59 }
 0x1ee   : > { %1827 = vmatprep.subr.bf16.mxu1 %v2317_v1 }
 0x1f1   : > { %1828 = vmatpush3.bf16.msra.mxu1 %v2059_v60 }
 0x1f2   : > { %1829 = vmatprep.subr.bf16.mxu1 %v2317_v1 }
 0x1f5   : > { %1830 = vmatpush3.bf16.msra.mxu1 %v2060_v61 }
 0x1f6   : > { %1831 = vmatprep.subr.bf16.mxu1 %v2317_v1 }
 0x1f9   : > { %1832 = vmatpush3.bf16.msra.mxu1 %v2061_v62  ;;  %v2079_v62 = vld [vmem:[#allocation2 + $0x170] sm:$0xff]  }
 0x1fa   : > { %1833 = vmatprep.subr.bf16.mxu1 %v2317_v1 }
 0x1fd   : > { %1834 = vmatpush3.bf16.msra.mxu1 %v2062_v63  ;;  %v2080_v63 = vld [vmem:[#allocation2 + $0x178] sm:$0xff]  }
 0x1fe   : > { %1835 = vmatprep.subr.bf16.mxu1 %v2317_v1 }
 0x201   : > { %1836 = vmatpush3.bf16.msra.mxu1 %v2063_v14 }
 0x202   : > { %1837 = vmatprep.subr.bf16.mxu1 %v2317_v1 }
 0x205   : > { %1838 = vmatpush3.bf16.msra.mxu1 %v2064_v15 }
 0x206   : > { %1863 = vmatprep.subr.bf16.mxu1 %v2317_v1 }
 0x2bb   : > { %v503_v3 = vpop.f32.mrb[0].mxu1 }
 0x2bc   : > { %v504_v4 = vadd.f32 %v503_v3, %v420_v2  ;;  %v1801_v5 = vpop.f32.mrb[1].mxu1  ;;  %v2083_v3 = vld [vmem:[#allocation2 + $0x190] sm:$0xff]  }
 0x2bd   : > { %v506_v6 = vpop.f32.mrb[2].mxu1  ;;  %v2085_v5 = vld [vmem:[#allocation2 + $0x1a0] sm:$0xff]  }
 0x2be   : > { %v512_v7 = vmul.f32 0.2, %v504_v4  ;;  %v507_v8 = vadd.f32 %v506_v6, %v420_v2  ;;  %v1802_v9 = vpop.f32.mrb[3].mxu1  ;;  %vm510_vm5 = vcmp.ge.f32.partialorder %v504_v4, 0.0  ;;  %v2082_v2 = vld [vmem:[#allocation2 + $0x188] sm:$0xff]  }
 0x2bf   : > { %v2086_v6 = vld [vmem:[#allocation2 + $0x1a8] sm:$0xff]  }
 0x2c0   : > { %vm511_vm6 = vcmp.ge.f32.partialorder %v507_v8, 0.0  ;;  %v513_v10 = vmul.f32 0.2, %v507_v8  ;;  %v514_v11 = vsel %vm510_vm5, %v504_v4, %v512_v7  ;;  %v2084_v4 = vld [vmem:[#allocation2 + $0x198] sm:$0xff]   ;;  %v767_v7 = vsub.s32 4, %v2590_v41  ;;  %vm281_vm5 = vmand %vm279_vm1, %vm280_vm2 }
 0x2c2   : > { %v515_v12 = vsel %vm511_vm6, %v507_v8, %v513_v10  ;;  %v768_v8 = vrot.slane %v2593_v43, %v767_v7  ;;  %v2103_v7 = vld [vmem:[#allocation2 + $0x230] sm:$0xff]   ;;  %vm1362_vm6 = vcmp.ge.s32.totalorder %v2566_v25, 8 }
 0x2c3   : > { %v516_v13 = vpack.c.bf16 %v515_v12, %v514_v11 }
 0x2c5   : > { %1820 = vmatmul.mubr.bf16.vlgmr.msra.gmra.mrb[4].mxu0 %v516_v13 }
 0x2c6   : > { %1859 = vmatprep.mubr.msk.bf16.mxu0 %vm2318_vm0, %v2317_v1  ;;  %1844 = vmatpush3.bf16.msra.mxu0 %v2065_v16 }
 0x2c7   : > { %1845 = vmatprep.subr.bf16.mxu0 %v2317_v1 }
 0x2ca   : > { %1846 = vmatpush3.bf16.msra.mxu0 %v2066_v17 }
 0x2cb   : > { %1847 = vmatprep.subr.bf16.mxu0 %v2317_v1 }
 0x2ce   : > { %1848 = vmatpush3.bf16.msra.mxu0 %v2067_v18 }
 0x2cf   : > { %1849 = vmatprep.subr.bf16.mxu0 %v2317_v1 }
 0x2d2   : > { %1850 = vmatpush3.bf16.msra.mxu0 %v2068_v19 }
 0x2d3   : > { %1851 = vmatprep.subr.bf16.mxu0 %v2317_v1 }
 0x2d6   : > { %1852 = vmatpush3.bf16.msra.mxu0 %v2069_v20  ;;  %v2087_v20 = vld [vmem:[#allocation2 + $0x1b0] sm:$0xff]  }
 0x2d7   : > { %1853 = vmatprep.subr.bf16.mxu0 %v2317_v1 }
 0x2da   : > { %1854 = vmatpush3.bf16.msra.mxu0 %v2070_v21  ;;  %v2088_v21 = vld [vmem:[#allocation2 + $0x1b8] sm:$0xff]  }
 0x2db   : > { %1855 = vmatprep.subr.bf16.mxu0 %v2317_v1 }
 0x2de   : > { %1856 = vmatpush3.bf16.msra.mxu0 %v2071_v38 }
 0x2df   : > { %1857 = vmatprep.subr.bf16.mxu0 %v2317_v1 }
 0x2e2   : > { %1858 = vmatpush3.bf16.msra.mxu0 %v2072_v39 }
 0x2e3   : > { %1883 = vmatprep.subr.bf16.mxu0 %v2317_v1 }
 0x398   : > { %v619_v24 = vpop.f32.mrb[4].mxu0 }
 0x399   : > { %v620_v26 = vadd.f32 %v619_v24, %v536_v23  ;;  %v1821_v28 = vpop.f32.mrb[5].mxu0  ;;  %v2091_v24 = vld [vmem:[#allocation2 + $0x1d0] sm:$0xff]  }
 0x39a   : > { %v622_v30 = vpop.f32.mrb[6].mxu0  ;;  %v2093_v28 = vld [vmem:[#allocation2 + $0x1e0] sm:$0xff]  }
 0x39b   : > { %v628_v31 = vmul.f32 0.2, %v620_v26  ;;  %v623_v32 = vadd.f32 %v622_v30, %v536_v23  ;;  %v1822_v33 = vpop.f32.mrb[7].mxu0  ;;  %vm626_vm7 = vcmp.ge.f32.partialorder %v620_v26, 0.0  ;;  %v2090_v23 = vld [vmem:[#allocation2 + $0x1c8] sm:$0xff]  }
 0x39c   : > { %v2094_v30 = vld [vmem:[#allocation2 + $0x1e8] sm:$0xff]  }
 0x39d   : > { %vm627_vm8 = vcmp.ge.f32.partialorder %v623_v32, 0.0  ;;  %v629_v34 = vmul.f32 0.2, %v623_v32  ;;  %v630_v35 = vsel %vm626_vm7, %v620_v26, %v628_v31  ;;  %v2092_v26 = vld [vmem:[#allocation2 + $0x1d8] sm:$0xff]   ;;  %v883_v31 = vsub.s32 5, %v2590_v41 }
 0x39e   : > { %vm1363_vm7 = vcmp.lt.s32.totalorder %v2566_v25, 26 }
 0x39f   : > { %v631_v36 = vsel %vm627_vm8, %v623_v32, %v629_v34  ;;  %v884_v32 = vrot.slane %v2593_v43, %v883_v31  ;;  %vm1364_vm8 = vmand %vm1362_vm6, %vm1363_vm7 }
 0x3a0   : > { %v632_v37 = vpack.c.bf16 %v631_v36, %v630_v35 }
 0x3a2   : > { %1840 = vmatmul.mubr.bf16.vlgmr.msra.gmra.mrb[4].mxu1 %v632_v37 }
 0x3a3   : > { %1879 = vmatprep.mubr.msk.bf16.mxu1 %vm2318_vm0, %v2317_v1  ;;  %1864 = vmatpush3.bf16.msra.mxu1 %v2073_v40 }
 0x3a4   : > { %1865 = vmatprep.subr.bf16.mxu1 %v2317_v1 }
 0x3a7   : > { %1866 = vmatpush3.bf16.msra.mxu1 %v2074_v44 }
 0x3a8   : > { %1867 = vmatprep.subr.bf16.mxu1 %v2317_v1 }
 0x3ab   : > { %1868 = vmatpush3.bf16.msra.mxu1 %v2075_v45 }
 0x3ac   : > { %1869 = vmatprep.subr.bf16.mxu1 %v2317_v1 }
 0x3af   : > { %1870 = vmatpush3.bf16.msra.mxu1 %v2076_v46 }
 0x3b0   : > { %1871 = vmatprep.subr.bf16.mxu1 %v2317_v1 }
 0x3b3   : > { %1872 = vmatpush3.bf16.msra.mxu1 %v2077_v47  ;;  %v2095_v47 = vld [vmem:[#allocation2 + $0x1f0] sm:$0xff]  }
 0x3b4   : > { %1873 = vmatprep.subr.bf16.mxu1 %v2317_v1 }
 0x3b7   : > { %1874 = vmatpush3.bf16.msra.mxu1 %v2078_v48  ;;  %v2096_v48 = vld [vmem:[#allocation2 + $0x1f8] sm:$0xff]  }
 0x3b8   : > { %1875 = vmatprep.subr.bf16.mxu1 %v2317_v1 }
 0x3bb   : > { %1876 = vmatpush3.bf16.msra.mxu1 %v2079_v62 }
 0x3bc   : > { %1877 = vmatprep.subr.bf16.mxu1 %v2317_v1 }
 0x3bf   : > { %1878 = vmatpush3.bf16.msra.mxu1 %v2080_v63 }
 0x3c0   : > { %1903 = vmatprep.subr.bf16.mxu1 %v2317_v1 }
 0x475   : > { %v735_v51 = vpop.f32.mrb[4].mxu1 }
 0x476   : > { %v736_v52 = vadd.f32 %v735_v51, %v652_v50  ;;  %v1841_v53 = vpop.f32.mrb[5].mxu1  ;;  %v2099_v51 = vld [vmem:[#allocation2 + $0x210] sm:$0xff]  }
 0x477   : > { %v738_v54 = vpop.f32.mrb[6].mxu1  ;;  %v2101_v53 = vld [vmem:[#allocation2 + $0x220] sm:$0xff]  }
 0x478   : > { %v744_v55 = vmul.f32 0.2, %v736_v52  ;;  %v739_v56 = vadd.f32 %v738_v54, %v652_v50  ;;  %v1842_v57 = vpop.f32.mrb[7].mxu1  ;;  %vm742_vm9 = vcmp.ge.f32.partialorder %v736_v52, 0.0  ;;  %v2098_v50 = vld [vmem:[#allocation2 + $0x208] sm:$0xff]   ;;  %v999_v54 = vsub.s32 6, %v2590_v41 }
 0x47a   : > { %vm743_vm10 = vcmp.ge.f32.partialorder %v739_v56, 0.0  ;;  %v745_v58 = vmul.f32 0.2, %v739_v56  ;;  %v2634_v59 = vsel %vm742_vm9, %v736_v52, %v744_v55  ;;  %v2100_v52 = vld [vmem:[#allocation2 + $0x218] sm:$0xff]   ;;  %v1000_v55 = vrot.slane %v2593_v43, %v999_v54 }
 0x47b   : > { %vm1341_vm9 = vcmp.ge.s32.totalorder %v2566_v25, 2 }
 0x47c   : > { %v2636_v60 = vsel %vm743_vm10, %v739_v56, %v745_v58  ;;  %vm1342_vm10 = vcmp.lt.s32.totalorder %v2566_v25, 8 }
 0x47d   : > { %v748_v61 = vpack.c.bf16 %v2636_v60, %v2634_v59 }
 0x47f   : > { %1860 = vmatmul.mubr.bf16.vlgmr.msra.gmra.mrb[8].mxu0 %v748_v61 }
 0x480   : > { %1899 = vmatprep.mubr.msk.bf16.mxu0 %vm2318_vm0, %v2317_v1  ;;  %1884 = vmatpush3.bf16.msra.mxu0 %v2081_v0 }
 0x481   : > { %1885 = vmatprep.subr.bf16.mxu0 %v2317_v1 }
 0x484   : > { %1886 = vmatpush3.bf16.msra.mxu0 %v2082_v2 }
 0x485   : > { %1887 = vmatprep.subr.bf16.mxu0 %v2317_v1 }
 0x488   : > { %1888 = vmatpush3.bf16.msra.mxu0 %v2083_v3 }
 0x489   : > { %1889 = vmatprep.subr.bf16.mxu0 %v2317_v1 }
 0x48c   : > { %1890 = vmatpush3.bf16.msra.mxu0 %v2084_v4 }
 0x48d   : > { %1891 = vmatprep.subr.bf16.mxu0 %v2317_v1 }
 0x490   : > { %1892 = vmatpush3.bf16.msra.mxu0 %v2085_v5 }
 0x491   : > { %1893 = vmatprep.subr.bf16.mxu0 %v2317_v1 }
 0x494   : > { %1894 = vmatpush3.bf16.msra.mxu0 %v2086_v6  ;;  %v2102_v6 = vld [vmem:[#allocation2 + $0x228] sm:$0xff]  }
 0x495   : > { %1895 = vmatprep.subr.bf16.mxu0 %v2317_v1 }
 0x498   : > { %1896 = vmatpush3.bf16.msra.mxu0 %v2087_v20 }
 0x499   : > { %1897 = vmatprep.subr.bf16.mxu0 %v2317_v1 }
 0x49c   : > { %1898 = vmatpush3.bf16.msra.mxu0 %v2088_v21 }
 0x49d   : > { %1923 = vmatprep.subr.bf16.mxu0 %v2317_v1 }
 0x552   : > { %v851_v9 = vpop.f32.mrb[8].mxu0 }
 0x553   : > { %v852_v10 = vadd.f32 %v851_v9, %v768_v8  ;;  %v1861_v11 = vpop.f32.mrb[9].mxu0  ;;  %v1115_v9 = vsub.s32 7, %v2590_v41 }
 0x554   : > { %v854_v12 = vpop.f32.mrb[10].mxu0 }
 0x555   : > { %v860_v13 = vmul.f32 0.2, %v852_v10  ;;  %v855_v14 = vadd.f32 %v854_v12, %v768_v8  ;;  %v1862_v15 = vpop.f32.mrb[11].mxu0  ;;  %vm858_vm11 = vcmp.ge.f32.partialorder %v852_v10, 0.0  ;;  %v2104_v8 = vld [vmem:[#allocation2 + $0x238] sm:$0xff]  }
 0x557   : > { %vm859_vm12 = vcmp.ge.f32.partialorder %v855_v14, 0.0  ;;  %v861_v16 = vmul.f32 0.2, %v855_v14  ;;  %v862_v17 = vsel %vm858_vm11, %v852_v10, %v860_v13  ;;  %v1116_v10 = vrot.slane %v2593_v43, %v1115_v9 }
 0x559   : > { %v863_v18 = vsel %vm859_vm12, %v855_v14, %v861_v16 }
 0x55a   : > { %v864_v19 = vpack.c.bf16 %v863_v18, %v862_v17 }
 0x55c   : > { %1880 = vmatmul.mubr.bf16.vlgmr.msra.gmra.mrb[8].mxu1 %v864_v19 }
 0x55d   : > { %1919 = vmatprep.mubr.msk.bf16.mxu1 %vm2318_vm0, %v2317_v1  ;;  %1904 = vmatpush3.bf16.msra.mxu1 %v2089_v22 }
 0x55e   : > { %1905 = vmatprep.subr.bf16.mxu1 %v2317_v1 }
 0x561   : > { %1906 = vmatpush3.bf16.msra.mxu1 %v2090_v23  ;;  %v260_v23 = vld [vmem:[#allocation5 + $0x8] sm:$0xff] }
 0x562   : > { %1907 = vmatprep.subr.bf16.mxu1 %v2317_v1 }
 0x565   : > { %1908 = vmatpush3.bf16.msra.mxu1 %v2091_v24  ;;  %v1234_v24 = vrot.slane %v260_v23, %v303_v42 }
 0x566   : > { %1909 = vmatprep.subr.bf16.mxu1 %v2317_v1 }
 0x569   : > { %1910 = vmatpush3.bf16.msra.mxu1 %v2092_v26 }
 0x56a   : > { %1911 = vmatprep.subr.bf16.mxu1 %v2317_v1 }
 0x56d   : > { %1912 = vmatpush3.bf16.msra.mxu1 %v2093_v28 }
 0x56e   : > { %1913 = vmatprep.subr.bf16.mxu1 %v2317_v1 }
 0x571   : > { %1914 = vmatpush3.bf16.msra.mxu1 %v2094_v30 }
 0x572   : > { %1915 = vmatprep.subr.bf16.mxu1 %v2317_v1 }
 0x575   : > { %1916 = vmatpush3.bf16.msra.mxu1 %v2095_v47 }
 0x576   : > { %1917 = vmatprep.subr.bf16.mxu1 %v2317_v1 }
 0x579   : > { %1918 = vmatpush3.bf16.msra.mxu1 %v2096_v48 }
 0x62f   : > { %v967_v33 = vpop.f32.mrb[8].mxu1 }
 0x630   : > { %v968_v34 = vadd.f32 %v967_v33, %v884_v32  ;;  %v1881_v35 = vpop.f32.mrb[9].mxu1 }
 0x631   : > { %v970_v36 = vpop.f32.mrb[10].mxu1 }
 0x632   : > { %v976_v37 = vmul.f32 0.2, %v968_v34  ;;  %v971_v38 = vadd.f32 %v970_v36, %v884_v32  ;;  %v1882_v39 = vpop.f32.mrb[11].mxu1  ;;  %vm974_vm13 = vcmp.ge.f32.partialorder %v968_v34, 0.0 }
 0x634   : > { %vm975_vm14 = vcmp.ge.f32.partialorder %v971_v38, 0.0  ;;  %v977_v40 = vmul.f32 0.2, %v971_v38  ;;  %v978_v44 = vsel %vm974_vm13, %v968_v34, %v976_v37  ;;  %vm1343_vm13 = vmand %vm1341_vm9, %vm1342_vm10 }
 0x636   : > { %v979_v45 = vsel %vm975_vm14, %v971_v38, %v977_v40  ;;  %vm1399_vm14 = vcmask 7168  }
 0x637   : > { %v980_v46 = vpack.c.bf16 %v979_v45, %v978_v44 }
 0x639   : > { %1900 = vmatmul.mubr.bf16.vlgmr.msra.gmra.mrb[12].mxu0 %v980_v46 }
 0x63a   : > { %1939 = vmatprep.mubr.msk.bf16.mxu0 %vm2318_vm0, %v2317_v1  ;;  %1924 = vmatpush3.bf16.msra.mxu0 %v2097_v49 }
 0x63b   : > { %1925 = vmatprep.subr.bf16.mxu0 %v2317_v1 }
 0x63e   : > { %1926 = vmatpush3.bf16.msra.mxu0 %v2098_v50 }
 0x63f   : > { %1927 = vmatprep.subr.bf16.mxu0 %v2317_v1 }
 0x642   : > { %1928 = vmatpush3.bf16.msra.mxu0 %v2099_v51 }
 0x643   : > { %1929 = vmatprep.subr.bf16.mxu0 %v2317_v1 }
 0x646   : > { %1930 = vmatpush3.bf16.msra.mxu0 %v2100_v52 }
 0x647   : > { %1931 = vmatprep.subr.bf16.mxu0 %v2317_v1 }
 0x64a   : > { %1932 = vmatpush3.bf16.msra.mxu0 %v2101_v53 }
 0x64b   : > { %1933 = vmatprep.subr.bf16.mxu0 %v2317_v1 }
 0x64e   : > { %1934 = vmatpush3.bf16.msra.mxu0 %v2102_v6 }
 0x64f   : > { %1935 = vmatprep.subr.bf16.mxu0 %v2317_v1 }
 0x652   : > { %1936 = vmatpush3.bf16.msra.mxu0 %v2103_v7 }
 0x653   : > { %1937 = vmatprep.subr.bf16.mxu0 %v2317_v1 }
 0x656   : > { %1938 = vmatpush3.bf16.msra.mxu0 %v2104_v8 }
 0x70c   : > { %v1083_v56 = vpop.f32.mrb[12].mxu0 }
 0x70d   : > { %v1084_v57 = vadd.f32 %v1083_v56, %v1000_v55  ;;  %v1901_v58 = vpop.f32.mrb[13].mxu0 }
 0x70e   : > { %v1086_v61 = vpop.f32.mrb[14].mxu0  ;;  %v1331_v58 = vadd.s32 8, %v2590_v41 }
 0x70f   : > { %v1092_v62 = vmul.f32 0.2, %v1084_v57  ;;  %v1087_v63 = vadd.f32 %v1086_v61, %v1000_v55  ;;  %v1902_v0 = vpop.f32.mrb[15].mxu0  ;;  %vm1090_vm15 = vcmp.ge.f32.partialorder %v1084_v57, 0.0  ;;  %v1332_v61 = vstv %s1670_s5 }
 0x710   : > { %v1334_v0 = vadd.s32 %v1332_v61, %v1331_v58 }
 0x711   : > { %vm1091_vm0 = vcmp.ge.f32.partialorder %v1087_v63, 0.0  ;;  %v1093_v2 = vmul.f32 0.2, %v1087_v63  ;;  %v1094_v3 = vsel %vm1090_vm15, %v1084_v57, %v1092_v62  ;;  %v2113_v62 = vld [vmem:[%s2532_s7 + $0x8] sm:$0xff] }
 0x712   : > { %vm1336_vm11 = vcmp.lt.s32.totalorder %v1334_v0, 37 }
 0x713   : > { %v1095_v4 = vsel %vm1091_vm0, %v1087_v63, %v1093_v2  ;;  %v2114_v2 = vld [vmem:[%s2532_s7] sm:$0xff] }
 0x714   : > { %v1096_v5 = vpack.c.bf16 %v1095_v4, %v1094_v3  ;;  %v1333_v4 = vadd.s32 %v1332_v61, %v2590_v41 }
 0x716   : > { %1920 = vmatmul.mubr.bf16.vlgmr.msra.gmra.mrb[12].mxu1 %v1096_v5  ;;  %vm1335_vm12 = vcmp.lt.s32.totalorder %v1333_v4, 37 }
 0x717   : > { %v1671_v7 = vsel %vm1335_vm12, 1.0, %v2317_v1 }
 0x7e9   : > { %v1199_v11 = vpop.f32.mrb[12].mxu1 }
 0x7ea   : > { %v1200_v12 = vadd.f32 %v1199_v11, %v1116_v10  ;;  %v1921_v13 = vpop.f32.mrb[13].mxu1 }
 0x7eb   : > { %v1202_v14 = vpop.f32.mrb[14].mxu1 }
 0x7ec   : > { %vm1206_vm3 = vcmp.ge.f32.partialorder %v1200_v12, 0.0  ;;  %v1208_v15 = vmul.f32 0.2, %v1200_v12  ;;  %v1203_v16 = vadd.f32 %v1202_v14, %v1116_v10  ;;  %v1922_v17 = vpop.f32.mrb[15].mxu1 }
 0x7ee   : > { %v1210_v18 = vsel %vm1206_vm3, %v1200_v12, %v1208_v15  ;;  %vm1207_vm4 = vcmp.ge.f32.partialorder %v1203_v16, 0.0  ;;  %v1209_v19 = vmul.f32 0.2, %v1203_v16 }
 0x7ef   : > { %v1212_v21 = vsel %vm281_vm5, %v1210_v18, %v1200_v12 }
 0x7f0   : > { %v1211_v20 = vsel %vm1207_vm4, %v1203_v16, %v1209_v19 }
 0x7f1   : > { %v1213_v22 = vsel %vm281_vm5, %v1211_v20, %v1203_v16 }
 0x7f2   : > { %v1214_v43 = vpack.c.bf16 %v1213_v22, %v1212_v21 }
 0x7f4   : > { %1940 = vmatmul.mubr.bf16.vlgmr.msra.gmra.mrb[16].mxu0 %v1214_v43 }
 0x8c7   : > { %v1317_v26 = vpop.f32.mrb[16].mxu0 }
 0x8c8   : > { %v1318_v28 = vadd.f32 %v1317_v26, %v1234_v24  ;;  %v1941_v30 = vpop.f32.mrb[17].mxu0 }
 0x8c9   : > { %v1320_v31 = vpop.f32.mrb[18].mxu0 }
 0x8ca   : > { %v1324_v32 = vadd.f32 %v1318_v28, %v2634_v59  ;;  %v1321_v33 = vadd.f32 %v1320_v31, %v1234_v24  ;;  %v1942_v34 = vpop.f32.mrb[19].mxu0  ;;  %v1365_v35 = vsel %vm1364_vm8, %v1318_v28, -1e+30  ;;  %v1344_v3 = vsub.f32 %v2114_v2, %v1318_v28 }
 0x8cb   : > { %1367 = vmax.xlane.f32.xlu1 %v1365_v35 }
 0x8cc   : > { %1326 = vst [vmem:[%s2687_s26] sm:$0xff] %v1324_v32  ;;  %v1325_v42 = vadd.f32 %v1321_v33, %v2636_v60  ;;  %v1366_v36 = vsel %vm1364_vm8, %v1321_v33, -1e+30  ;;  %v1345_v63 = vsub.f32 %v2113_v62, %v1321_v33  ;;  %v1346_v5 = vmul.f32 %v1344_v3, %v1344_v3 }
 0x8ce   : > { %1327 = vst [vmem:[%s2687_s26 + $0x8] sm:$0xff] %v1325_v42  ;;  %v1348_v8 = vsel %vm1343_vm13, %v1346_v5, 0.0 }
 0x8cf   : > { %1369 = vmax.xlane.f32.xlu1 %v1366_v36  ;;  %v1350_v10 = vmul.f32 %v1671_v7, %v1348_v8 }
 0x958   : > { %v1368_v37 = vpop.xlane.xlu1 %1367 }
 0x959   : > { %v1371_v38 = vsub.f32 %v1365_v35, %v1368_v37 }
 0x95b   : > { %v1373_v39 = vmul.f32 1.442695, %v1371_v38 }
 0x95c   : > { %v1370_v40 = vpop.xlane.xlu1 %1369 }
 0x95d   : > { %2105 = vpow2.f32 %v1373_v39  ;;  %v1372_v59 = vsub.f32 %v1366_v36, %v1370_v40 }
 0x95f   : > { %v1375_v44 = vmul.f32 1.442695, %v1372_v59 }
 0x961   : > { %2107 = vpow2.f32 %v1375_v44 }
 0x967   : > { %v2106_v45 = vpop.eup %2105 }
 0x968   : > { %1377 = vadd.xlane.f32.xlu0 %v2106_v45 }
 0x96b   : > { %v2108_v46 = vpop.eup %2107 }
 0x96c   : > { %1379 = vadd.xlane.f32.xlu1 %v2108_v46 }
 0x9f5   : > { %v1378_v47 = vpop.xlane.xlu0 %1377 }
 0x9f6   : > { %2109 = vlog2.f32 %v1378_v47 }
 0x9f9   : > { %v1380_v48 = vpop.xlane.xlu1 %1379 }
 0x9fa   : > { %2111 = vlog2.f32 %v1380_v48 }
 0xa00   : > { %v2110_v60 = vpop.eup %2109 }
 0xa01   : > { %v1382_v49 = vmul.f32 0.6931472, %v2110_v60 }
 0xa03   : > { %v1385_v50 = vadd.f32 %v1382_v49, %v1368_v37 }
 0xa04   : > { %v2112_v51 = vpop.eup %2111 }
 0xa05   : > { %v1384_v52 = vmul.f32 0.6931472, %v2112_v51  ;;  %v1387_v53 = vsub.f32 %v1318_v28, %v1385_v50 }
 0xa07   : > { %v1386_v54 = vadd.f32 %v1384_v52, %v1370_v40  ;;  %v1389_v55 = vmul.f32 %v2570_v27, %v1387_v53  ;;  %v1347_v27 = vmul.f32 %v1345_v63, %v1345_v63 }
 0xa09   : > { %1391 = vadd.xlane.f32.xlu1 %v1389_v55  ;;  %v1388_v56 = vsub.f32 %v1321_v33, %v1386_v54  ;;  %v1349_v6 = vsel %vm1343_vm13, %v1347_v27, 0.0 }
 0xa0b   : > { %v1390_v57 = vmul.f32 %v2574_v29, %v1388_v56  ;;  %v1672_v29 = vsel %vm1336_vm11, 1.0, %v2317_v1 }
 0xa0c   : > { %v1351_v9 = vmul.f32 %v1672_v29, %v1349_v6 }
 0xa0d   : > { %1393 = vadd.xlane.f32.xlu1 %v1390_v57 }
 0xa0e   : > { %v1352_v11 = vadd.f32 %v1351_v9, %v1350_v10 }
 0xa10   : > { %v1353_v12 = vrot.slane %v1352_v11, 4 }
 0xa12   : > { %v1354_v13 = vadd.f32 %v1353_v12, %v1352_v11 }
 0xa14   : > { %v1355_v16 = vrot.slane %v1354_v13, 2 }
 0xa16   : > { %v1356_v20 = vadd.f32 %v1355_v16, %v1354_v13 }
 0xa18   : > { %v1357_v23 = vrot.slane %v1356_v20, 1 }
 0xa1a   : > { %v1358_v24 = vadd.f32 %v1357_v23, %v1356_v20 }
 0xa96   : > { %v1392_v14 = vpop.xlane.xlu1 %1391 }
 0xa97   : > { %v1395_v15 = vsub.f32 0.0, %v1392_v14 }
 0xa99   : > { %v1397_v18 = vmul.f32 %v1671_v7, %v1395_v15 }
 0xa9a   : > { %v1394_v17 = vpop.xlane.xlu1 %1393 }
 0xa9b   : > { %v1396_v19 = vsub.f32 0.0, %v1394_v17  ;;  %v1400_v1 = vsel %vm1399_vm14, %v1397_v18, 0.0 }
 0xa9d   : > { %v1398_v21 = vmul.f32 %v1672_v29, %v1396_v19 }
 0xa9f   : > { %v1401_v22 = vsel %vm1399_vm14, %v1398_v21, 0.0 }
 0xaa0   : > { %v1402_v43 = vadd.f32 %v1401_v22, %v1400_v1 }
 0xaa2   : > { %1403 = vadd.xlane.f32.xlu1 %v1402_v43 }
 0xaa6   : > { %1359 = vadd.xlane.f32.xlu1 %v1358_v24 }
 0xaa7   : > { %2214 = shalt.err (!%p2211_p12)
}
 0xaa8   : > { %s2215_s6 = scalar_lea.hbm %s2707_s12, 256  ;;  %s2219_s30 = scalar_lea.hbm %s2791_s3, 768 }
 0xaa9   : > { %p2216_p0 = scmp.ne.s32.totalorder %s2707_s12, %s2215_s6  ;;  %p2220_p8 = scmp.lt.u32.totalorder %s2707_s12, %s2791_s3 }
 0xaaa   : > { %p2221_p9 = scmp.lt.u32.totalorder %s2219_s30, %s2215_s6  ;;  %p2223_p10 = scmp.lt.u32.totalorder %s2215_s6, %s2707_s12 }
 0xaab   : > { %p2217_p6 = pnand %p2216_p0, %p2816_p1 }
 0xaac   : > { %p2222_p7 = por %p2221_p9, %p2220_p8 }
 0xaad   : > { %p2218_p13 = pneg %p2217_p6 }
 0xaae   : > { %p2224_p3 = por %p2223_p10, %p2222_p7 }
 0xab0   : > { %p2225_p4 = pnand %p2224_p3, %p2218_p13 }
 0xab2   : > { %2228 = shalt.err (!%p2225_p4)
}
 0xab3   : > { %s2320_s5 = smov 128   ;;  %s2321_s23 = smov 8   ;;  %vm1414_vm15 = vcmp.eq.s32.totalorder %v2590_v41, 1  ;;  %vm1415_vm0 = vcmp.eq.s32.totalorder %v2566_v25, 0  ;;  %vm1420_vm2 = vcmp.eq.s32.totalorder %v2566_v25, 1  ;;  %vm1412_vm3 = vcmp.eq.s32.totalorder %v2590_v41, 0 }
 0xab4   : > { %1961 = dma.vmem_to_hbm [thread:$0]  (%p2816_p1), %s2710_s13, 256, %s2707_s12, %s1427_s20, %s2320_s5, %s2320_s5, %s2321_s23   ;;  %vm1416_vm1 = vmand %vm1414_vm15, %vm1415_vm0  ;;  %v1413_v37 = vsel %vm1412_vm3, %v1358_v24, 0.0 }
 0xab5   : > { %s1595_s8 = sshll.u32 %s2527_s0, 3  ;;  %vm1421_vm4 = vmand %vm1414_vm15, %vm1420_vm2  ;;  %s1677_s12 = sshll.u32 %s2369_s19, 7 }
 0xab6   : > { %s253_s20 = scalar_lea.vmem [#allocation9], %s1595_s8  ;;  %s2745_s25 = scalar_lea.hbm %s2792_s4, %s1677_s12 }
 0xab7   : > { %s1461_s22 = sshll.u32 %s253_s20, 4  ;;  %s1432_s19 = scalar_lea.sflag [#allocation10], %s2527_s0  ;;  %s2747_s22 = int_to_ptr.vmem [resolvable:$true] %s1461_s22 }
 0xab8   : > { %s2229_s6 = scalar_lea.vmem %s2747_s22, 128  ;;  %s2322_s10 = smov [#allocation9]  }
 0xab9   : > { %p2230_p2 = scmp.ne.s32.totalorder %s2747_s22, %s2229_s6  ;;  %s2233_s29 = sshll.u32 %s2322_s10, 4  ;;  %s2234_s29 = int_to_ptr.vmem [resolvable:$false] %s2233_s29 }
 0xaba   : > { %s2235_s30 = scalar_lea.vmem %s2234_s29, 256  ;;  %p2236_p12 = scmp.lt.s32.totalorder %s2747_s22, %s2234_s29 }
 0xabb   : > { %p2231_p5 = pnand %p2230_p2, %p2816_p1  ;;  %p2237_p0 = scmp.lt.s32.totalorder %s2235_s30, %s2229_s6 }
 0xabd   : > { %p2232_p11 = pneg %p2231_p5  ;;  %p2238_p6 = por %p2237_p0, %p2236_p12 }
 0xabf   : > { %p2239_p13 = pnand %p2238_p6, %p2232_p11 }
 0xb2f   : > { %v1404_v26 = vpop.xlane.xlu1 %1403 }
 0xb30   : > { %v1405_v28 = vrot.slane %v1404_v26, 4 }
 0xb32   : > { %v1406_v30 = vadd.f32 %v1405_v28, %v1404_v26 }
 0xb33   : > { %v1360_v31 = vpop.xlane.xlu1 %1359 }
 0xb34   : > { %v1407_v32 = vrot.slane %v1406_v30, 2  ;;  %1947 = vpush %v1360_v31 }
 0xb36   : > { %v1408_v33 = vadd.f32 %v1407_v32, %v1406_v30 }
 0xb38   : > { %v1409_v34 = vrot.slane %v1408_v33, 1 }
 0xb3a   : > { %v1410_v35 = vadd.f32 %v1409_v34, %v1408_v33 }
 0xb3c   : > { %1949 = vpush %v1410_v35 }
 0xb65   : > { %s1948_s9 = spop %1947 }
 0xb66   : > { %v1417_v42 = vstv %s1948_s9 }
 0xb67   : > { %v1418_v36 = vsel %vm1416_vm1, %v1417_v42, 0.0 }
 0xb68   : > { %v1419_v38 = vadd.f32 %v1418_v36, %v1413_v37 }
 0xb6d   : > { %s1950_s13 = spop %1949 }
 0xb6e   : > { %v1422_v39 = vstv %s1950_s13 }
 0xb6f   : > { %v1423_v40 = vsel %vm1421_vm4, %v1422_v39, 0.0 }
 0xb70   : > { %v1424_v59 = vadd.f32 %v1423_v40, %v1419_v38 }
 0xb72   : > { %1425 = vst [vmem:[%s253_s20] sm:$0xff] %v1424_v59 }
 0xb73   : > { %2242 = shalt.err (!%p2239_p13)
}
 0xb74   : > { %s2243_s0 = scalar_lea.hbm %s2745_s25, 128  ;;  %s2247_s5 = scalar_lea.hbm %s2792_s4, 384 }
 0xb75   : > { %p2244_p8 = scmp.ne.s32.totalorder %s2745_s25, %s2243_s0  ;;  %p2248_p10 = scmp.lt.u32.totalorder %s2745_s25, %s2792_s4 }
 0xb76   : > { %p2249_p3 = scmp.lt.u32.totalorder %s2247_s5, %s2243_s0  ;;  %p2251_p2 = scmp.lt.u32.totalorder %s2243_s0, %s2745_s25 }
 0xb77   : > { %p2245_p9 = pnand %p2244_p8, %p2816_p1 }
 0xb78   : > { %p2250_p4 = por %p2249_p3, %p2248_p10 }
 0xb79   : > { %p2246_p7 = pneg %p2245_p9 }
 0xb7a   : > { %p2252_p5 = por %p2251_p2, %p2250_p4 }
 0xb7c   : > { %p2253_p11 = pnand %p2252_p5, %p2246_p7 }
 0xb7e   : > { %2256 = shalt.err (!%p2253_p11)
}
 0xb7f   : > { %1962 = dma.vmem_to_hbm [thread:$0]  (%p2816_p1), %s2747_s22, 128, %s2745_s25, %s1432_s19  }
 0xb80 PF: > { %p1988_p12 = scmp.ge.s32.totalorder %s2307_s18, 2  ;;  %s1473_s8 = sand.u32 1, %s2295_s15  }
 0xb81   : > { %p2817_p0 = scmp.ne.s32.totalorder %s2802_s28, 0  ;;  %s1474_s12 = scalar_lea.sflag [#allocation4], %s1473_s8 }
 0xb83   : > { %p1977_p6 = pnand %p1988_p12, %p2817_p0 }
 0xb85   : > { %2286 = dma.done.wait (!%p1977_p6), %s1474_s12, 256  }
 0xb86   : > { %2288 = vsyncadd (!%p1977_p6), %s1474_s12, 4294967040  ;;  %s1483_s13 = scalar_lea.sflag [#allocation10], %s1473_s8 }
 0xb87   : > { %2290 = dma.done.wait (!%p1977_p6), %s1483_s13, 128  }
 0xb88   : > { %2292 = vsyncadd (!%p1977_p6), %s1483_s13, 4294967168  ;;  %p20_p1 = scmp.ge.s32.totalorder %s2373_s21, 5   ;;  %s2818_s15 = smov %s2299_s16 }
 0xb89   : > { %s2819_s16 = smov %s2303_s17  ;;  %s2820_s17 = smov %s2385_s24 }
 0xb8a   : > { %s2821_s18 = smov %s2373_s21  ;;  %22 = sbr.rel (!%p20_p1) target bundleno = 9 (0x9), region = 101 }
 0xb91   :  { %1488 = vsyncpa [#allocation3], 1 }
 0xb92   :  { %1490 = vsyncpa [#allocation3 + $0x1], 1 }
 0xb93   :  { %1491 = vsyncpa [#allocation6], 1 }
 0xb94   :  { %1492 = vsyncpa [#allocation4], 1 }
 0xb95   :  { %1494 = vsyncpa [#allocation4 + $0x1], 1 }
 0xb96   :  { %1495 = vsyncpa [#allocation10], 1 }
 0xb97   :  { %1497 = vsyncpa [#allocation10 + $0x1], 1 }

// kernel: tpu_custom_call.1
= control target key start
LH: loop header
LB: loop body
LE: loop exit
PB: predicated region body
PF: predicated region fallthrough
CT: control target
= control target key end

     0   :  { %s2788_s0 = inlined_call_operand.hbm [shape: bf16[1152,128], index: 0, kind: input, shape index: {}]   ;;  %s2789_s1 = inlined_call_operand.hbm [shape: f32[16,128], index: 1, kind: input, shape index: {}]   ;;  %s2790_s2 = inlined_call_operand.hbm [shape: f32[48,128], index: 2, kind: input, shape index: {}]   ;;  %s2791_s3 = inlined_call_operand.hbm [shape: f32[48,128], index: 3, kind: output, shape index: {0}]   ;;  %s2792_s4 = inlined_call_operand.hbm [shape: f32[3,8,128], index: 4, kind: output, shape index: {1}]  }
   0x1   :  { %2798 = sst [smem:[#allocation16_spill]] %s2788_s0 }
   0x2   :  { %10 = vsyncpa [#allocation3], 0 }
   0x3   :  { %11 = vsyncpa [#allocation6], 0 }
   0x4   :  { %12 = vsyncpa [#allocation4], 0 }
   0x5   :  { %14 = vsyncpa [#allocation4 + $0x1], 0 }
   0x6   :  { %15 = vsyncpa [#allocation10], 0 }
   0x7   :  { %17 = vsyncpa [#allocation10 + $0x1], 0  ;;  %s2348_s15 = smov 0   ;;  %s2350_s16 = smov 0  }
   0x8   :  { %s2352_s17 = smov 0   ;;  %s2354_s18 = smov 0  }
   0x9 LB: > { %s2369_s19 = sadd.s32 4294967295, %s2307_s18   ;;  %s1582_s20 = sadd.s32 4294967294, %s2307_s18   ;;  %s2307_s18 = sphi %s2354_s18, %s2821_s18   ;;  %s2303_s17 = sphi %s2352_s17, %s2820_s17   ;;  %s2299_s16 = sphi %s2350_s16, %s2819_s16   ;;  %s2295_s15 = sphi %s2348_s15, %s2818_s15  }
   0xa   : > { %s2373_s21 = sadd.s32 1, %s2307_s18   ;;  %s72_s22 = sadd.s32 1, %s2303_s17 }
   0xb   : > { %s69_s23 = ssub.s32 %s2307_s18, %s2373_s21  ;;  %p79_p0 = scmp.ne.s32.totalorder %s2303_s17, %s2299_s16 }
   0xc   : > { %p70_p1 = scmp.eq.s32.totalorder %s69_s23, 0  ;;  %p80_p2 = scmp.eq.s32.totalorder %s2307_s18, 0 }
   0xd   : > { %p85_p3 = scmp.ne.s32.totalorder %s2299_s16, %s2295_s15  ;;  %p2793_p4 = scmp.eq.s32.totalorder %s2369_s19, 0 }
   0xe   : > { %s2385_s24 = scalar_select %p70_p1, %s2303_s17, %s72_s22  }
   0xf   : > { %p2387_p5 = por %p80_p2, %p79_p0  ;;  %p2393_p6 = por %p2793_p4, %p85_p3 }
  0x10   : > { %p109_p7 = scmp.eq.s32.totalorder %s2369_s19, 2  ;;  %p115_p8 = scmp.eq.s32.totalorder %s1582_s20, 2 }
  0x11   : > { %s2799_s25 = scalar_select %p2387_p5, 1, 0 }
  0x12   : > { %s2800_s26 = scalar_select %p2393_p6, 1, 0 }
  0x13   : > { %p1583_p9 = scmp.ge.s32.totalorder %s2307_s18, 1  ;;  %p148_p10 = scmp.lt.s32.totalorder %s2307_s18, 4 }
  0x14   : > { %p2400_p11 = por %p109_p7, %p79_p0  ;;  %p2404_p12 = por %p115_p8, %p85_p3 }
  0x15   : > { %p2408_p13 = pnand %p1583_p9, %p148_p10  ;;  %s2309_s30 = smov [#allocation2]  }
  0x16   : > { %s2801_s27 = scalar_select %p2400_p11, 1, 0 }
  0x17   : > { %s2802_s28 = scalar_select %p2404_p12, 1, 0 }
  0x18   : > { %s2803_s29 = scalar_select %p2408_p13, 1, 0 }
  0x19   : > { %p1965_p1 = pneg %p2408_p13  ;;  %s160_s5 = sshll.u32 %s2309_s30, 4  ;;  %s161_s5 = int_to_ptr.vmem [resolvable:$true] %s160_s5 }
  0x1a   : > { %s2310_s7 = smov [#allocation5]   ;;  %s2805_s0 = sld [smem:[#allocation16_spill]] }
  0x1b   : > { %p2416_p2 = pnand %p1965_p1, %p2793_p4  ;;  %s173_s8 = sshll.u32 %s2310_s7, 4  ;;  %s174_s8 = int_to_ptr.vmem [resolvable:$true] %s173_s8 }
  0x1d   : > { %p2117_p7 = pneg %p2416_p2 }
  0x20   : > { %s2115_s11 = scalar_lea.hbm %s2805_s0, 9216 }
  0x21   : > { %p2116_p3 = scmp.ne.s32.totalorder %s2805_s0, %s2115_s11  ;;  %p2122_p10 = scmp.lt.u32.totalorder %s2115_s11, %s2805_s0 }
  0x23   : > { %p2118_p8 = pnand %p2117_p7, %p2116_p3 }
  0x25   : > { %p2119_p9 = pneg %p2118_p8 }
  0x27   : > { %p2124_p1 = pnand %p2122_p10, %p2119_p9 }
  0x29   : > { %2127 = shalt.err (!%p2124_p1)
}
  0x2a   : > { %s2128_s22 = scalar_lea.vmem %s161_s5, 9216  ;;  %p2136_p11 = scmp.lt.s32.totalorder %s161_s5, %s161_s5 }
  0x2b   : > { %p2129_p4 = scmp.ne.s32.totalorder %s161_s5, %s2128_s22  ;;  %p2137_p6 = scmp.lt.s32.totalorder %s2128_s22, %s2128_s22 }
  0x2d   : > { %p2131_p0 = pnand %p2129_p4, %p2117_p7  ;;  %p2138_p13 = por %p2137_p6, %p2136_p11 }
  0x2f   : > { %p2132_p12 = pneg %p2131_p0 }
  0x31   : > { %p2139_p5 = pnand %p2138_p13, %p2132_p12 }
  0x33   : > { %2142 = shalt.err (!%p2139_p5)
}
  0x34   : > { %s2311_s23 = smov 64   ;;  %s2312_s30 = smov 4  }
  0x35   : > { %1968 = dma.hbm_to_vmem [thread:$0]  (!%p2416_p2), %s2805_s0, 9216, %s161_s5, [#allocation3], %s2311_s23, %s2311_s23, %s2312_s30  }
  0x36   : > { %p2806_p3 = scmp.ne.s32.totalorder %s2799_s25, 0  ;;  %p2807_p4 = scmp.lt.s32.totalorder %s2307_s18, 3 }
  0x37   : > { %s187_s11 = sand.u32 1, %s2307_s18   ;;  %s2143_s14 = scalar_lea.hbm %s2789_s1, 256 }
  0x38   : > { %p2447_p0 = pnand %p2807_p4, %p2806_p3  ;;  %p2144_p5 = scmp.ne.s32.totalorder %s2789_s1, %s2143_s14 }
  0x39   : > { %p2150_p12 = scmp.lt.u32.totalorder %s2143_s14, %s2789_s1 }
  0x3a   : > { %s2808_s10 = scalar_select %p2447_p0, 1, 0 }
  0x3b   : > { %p2146_p6 = pnand %p2144_p5, %p2117_p7 }
  0x3d   : > { %p2147_p11 = pneg %p2146_p6 }
  0x3f   : > { %p2152_p13 = pnand %p2150_p12, %p2147_p11 }
  0x41   : > { %2155 = shalt.err (!%p2152_p13)
}
  0x42   : > { %s2156_s23 = scalar_lea.vmem %s174_s8, 256  ;;  %p2164_p1 = scmp.lt.s32.totalorder %s174_s8, %s174_s8 }
  0x43   : > { %p2157_p8 = scmp.ne.s32.totalorder %s174_s8, %s2156_s23  ;;  %p2165_p3 = scmp.lt.s32.totalorder %s2156_s23, %s2156_s23 }
  0x45   : > { %p2159_p9 = pnand %p2157_p8, %p2117_p7  ;;  %p2166_p4 = por %p2165_p3, %p2164_p1 }
  0x47   : > { %p2160_p10 = pneg %p2159_p9 }
  0x49   : > { %p2167_p0 = pnand %p2166_p4, %p2160_p10 }
  0x4b   : > { %2170 = shalt.err (!%p2167_p0)
}
  0x4c   : > { %s2313_s30 = smov 128   ;;  %s2314_s7 = smov 8  }
  0x4d   : > { %1971 = dma.hbm_to_vmem [thread:$0]  (!%p2416_p2), %s2789_s1, 256, %s174_s8, [#allocation6], %s2313_s30, %s2313_s30, %s2314_s7  }
  0x4e   : > { %s189_s13 = sand.u32 1, %s2303_s17   ;;  %s1680_s20 = sshll.u32 %s2307_s18, 8 }
  0x4f   : > { %s1587_s14 = sshll.u32 %s189_s13, 4  ;;  %s2480_s5 = scalar_lea.hbm %s2790_s2, %s1680_s20 }
  0x50   : > { %s191_s6 = scalar_lea.vmem [#allocation7], %s1587_s14  ;;  %s2484_s0 = scalar_lea.sflag [#allocation3], %s187_s11 }
  0x51   : > { %s198_s23 = sshll.u32 %s191_s6, 4  ;;  %s2171_s9 = scalar_lea.hbm %s2480_s5, 256  ;;  %s2482_s23 = int_to_ptr.vmem [resolvable:$true] %s198_s23 }
  0x52   : > { %p2172_p2 = scmp.ne.s32.totalorder %s2480_s5, %s2171_s9  ;;  %p2809_p7 = scmp.ne.s32.totalorder %s2808_s10, 0 }
  0x53   : > { %s2176_s13 = scalar_lea.hbm %s2790_s2, 768  ;;  %p2177_p11 = scmp.lt.u32.totalorder %s2480_s5, %s2790_s2 }
  0x54   : > { %p2173_p0 = pneg %p2809_p7  ;;  %p2178_p12 = scmp.lt.u32.totalorder %s2176_s13, %s2171_s9 }
  0x55   : > { %p2180_p8 = scmp.lt.u32.totalorder %s2171_s9, %s2480_s5 }
  0x56   : > { %p2174_p5 = pnand %p2173_p0, %p2172_p2  ;;  %p2179_p13 = por %p2178_p12, %p2177_p11 }
  0x58   : > { %p2175_p6 = pneg %p2174_p5  ;;  %p2181_p9 = por %p2180_p8, %p2179_p13 }
  0x5a   : > { %p2182_p10 = pnand %p2181_p9, %p2175_p6 }
  0x5c   : > { %2185 = shalt.err (!%p2182_p10)
}
  0x5d   : > { %s2186_s11 = scalar_lea.vmem %s2482_s23, 256  ;;  %s2315_s14 = smov [#allocation7]  }
  0x5e   : > { %p2187_p1 = scmp.ne.s32.totalorder %s2482_s23, %s2186_s11  ;;  %s2191_s25 = sshll.u32 %s2315_s14, 4  ;;  %s2192_s25 = int_to_ptr.vmem [resolvable:$false] %s2191_s25 }
  0x5f   : > { %s2193_s6 = scalar_lea.vmem %s2192_s25, 512  ;;  %p2194_p2 = scmp.lt.s32.totalorder %s2482_s23, %s2192_s25 }
  0x60   : > { %p2189_p3 = pnand %p2187_p1, %p2173_p0  ;;  %p2195_p5 = scmp.lt.s32.totalorder %s2193_s6, %s2186_s11 }
  0x62   : > { %p2190_p4 = pneg %p2189_p3  ;;  %p2196_p11 = por %p2195_p5, %p2194_p2 }
  0x64   : > { %p2197_p12 = pnand %p2196_p11, %p2190_p4 }
  0x66   : > { %2200 = shalt.err (!%p2197_p12)
}
  0x67   : > { %1975 = dma.hbm_to_vmem [thread:$0]  (!%p2809_p7), %s2480_s5, 256, %s2482_s23, %s2484_s0, %s2313_s30, %s2313_s30, %s2314_s7  }
  0x68   : > { %p2810_p0 = scmp.ne.s32.totalorder %s2803_s29, 0 }
  0x69   : > { %p2811_p6 = scmp.eq.s32.totalorder (!%p2810_p0), %s2369_s19, 0 }
  0x6a   : > { %210 = sbr.rel (%p2810_p0) target bundleno = 2944 (0xb80), region = 32 }
  0x71   : > { %2274 = dma.done.wait (%p2811_p6), [#allocation3], 9216   ;;  %p2812_p13 = pmov %p2811_p6 }
  0x72   : > { %p2813_p8 = pmov %p2811_p6 }
  0x73   : > { %2276 = vsyncadd (%p2812_p13), [#allocation3], 4294958080 }
  0x74   : > { %2278 = dma.done.wait (%p2813_p8), [#allocation6], 256   ;;  %p2814_p9 = pmov %p2811_p6 }
  0x75   : > { %s220_s10 = sand.u32 1, %s2369_s19   ;;  %s2527_s0 = sand.u32 1, %s2299_s16  }
  0x76   : > { %2280 = vsyncadd (%p2814_p9), [#allocation6], 4294967040  ;;  %s1593_s29 = sshll.u32 %s2527_s0, 4  ;;  %s221_s30 = scalar_lea.sflag [#allocation3], %s220_s10 }
  0x77   : > { %s2532_s7 = scalar_lea.vmem [#allocation7], %s1593_s29  ;;  %p2815_p7 = scmp.ne.s32.totalorder %s2800_s26, 0 }
  0x79   : > { %2282 = dma.done.wait (%p2815_p7), %s221_s30, 256  }
  0x7a   : > { %2284 = vsyncadd (%p2815_p7), %s221_s30, 4294967040  ;;  %v2316_v0 = vmov 127   ;;  %v2317_v1 = vmov 0.0   ;;  %v2541_v2 = vld [vmem:[%s2532_s7] sm:$0xff]  ;;  %v2544_v3 = vld [vmem:[%s2532_s7 + $0x8] sm:$0xff]  ;;  %vm2318_vm0 = vmmov 0   ;;  %v261_v24 = vlaneseq }
  0x7b   : > { %2032 = vset.pattern.permute.xlu0 %v2316_v0  ;;  %1763 = vmatprep.subr.bf16.mxu0 %v2317_v1  ;;  %v1943_v4 = vtrunc.f32 %v2541_v2  ;;  %v1945_v5 = vtrunc.f32 %v2544_v3  ;;  %v2033_v6 = vld [vmem:[#allocation2] sm:$0xff]   ;;  %v2034_v9 = vld [vmem:[#allocation2 + $0x8] sm:$0xff]   ;;  %v2035_v12 = vld [vmem:[#allocation2 + $0x10] sm:$0xff]   ;;  %s2687_s26 = scalar_lea.vmem [#allocation8], %s1593_s29  ;;  %s1670_s5 = sshll.u32 %s2369_s19, 4 }
  0x7c   : > { %1783 = vmatprep.subr.bf16.mxu1 %v2317_v1  ;;  %1764 = vmatpush3.bf16.msra.mxu0 %v2033_v6  ;;  %v2036_v13 = vld [vmem:[#allocation2 + $0x18] sm:$0xff]   ;;  %v2037_v14 = vld [vmem:[#allocation2 + $0x20] sm:$0xff]   ;;  %v2038_v16 = vld [vmem:[#allocation2 + $0x28] sm:$0xff]   ;;  %v2566_v25 = vand.u32 127, %v261_v24  ;;  %v2590_v41 = vshrl.u32 %v261_v24, 7  ;;  %s1681_s23 = sshll.u32 %s2369_s19, 8 }
  0x7d   : > { %v1944_v7 = vcvt.f32.s32 %v1943_v4  ;;  %v1946_v8 = vcvt.f32.s32 %v1945_v5  ;;  %1765 = vmatprep.subr.bf16.mxu0 %v2317_v1  ;;  %1779 = vmatprep.mubr.msk.bf16.mxu0 %vm2318_vm0, %v2317_v1  ;;  %v2041_v15 = vld [vmem:[#allocation2 + $0x40] sm:$0xff]   ;;  %v2042_v17 = vld [vmem:[#allocation2 + $0x48] sm:$0xff]   ;;  %v2039_v18 = vld [vmem:[#allocation2 + $0x30] sm:$0xff]   ;;  %s2707_s12 = scalar_lea.hbm %s2791_s3, %s1681_s23  ;;  %s1445_s13 = sshll.u32 %s2687_s26, 4  ;;  %s2710_s13 = int_to_ptr.vmem [resolvable:$true] %s1445_s13 }
  0x7e   : > { %1799 = vmatprep.mubr.msk.bf16.mxu1 %vm2318_vm0, %v2317_v1  ;;  %1784 = vmatpush3.bf16.msra.mxu1 %v2041_v15  ;;  %v2043_v19 = vld [vmem:[#allocation2 + $0x50] sm:$0xff]   ;;  %v2040_v20 = vld [vmem:[#allocation2 + $0x38] sm:$0xff]   ;;  %v2045_v22 = vld [vmem:[#allocation2 + $0x60] sm:$0xff]   ;;  %v303_v42 = vsub.s32 0, %v2590_v41  ;;  %v419_v0 = vsub.s32 1, %v2590_v41  ;;  %s1427_s20 = scalar_lea.sflag [#allocation4], %s2527_s0 }
  0x7f   : > { %v265_v10 = vadd.s32 8, %v1944_v7  ;;  %v266_v11 = vadd.s32 8, %v1946_v8  ;;  %1785 = vmatprep.subr.bf16.mxu1 %v2317_v1  ;;  %v2044_v21 = vld [vmem:[#allocation2 + $0x58] sm:$0xff]   ;;  %v2046_v23 = vld [vmem:[#allocation2 + $0x68] sm:$0xff]   ;;  %v2047_v33 = vld [vmem:[#allocation2 + $0x70] sm:$0xff]   ;;  %s2201_s22 = scalar_lea.vmem %s2710_s13, 256 }
  0x80   : > { %1766 = vmatpush3.bf16.msra.mxu0 %v2034_v9  ;;  %v2048_v34 = vld [vmem:[#allocation2 + $0x78] sm:$0xff]   ;;  %v2049_v35 = vld [vmem:[#allocation2 + $0x80] sm:$0xff]   ;;  %v2050_v36 = vld [vmem:[#allocation2 + $0x88] sm:$0xff]   ;;  %p2202_p10 = scmp.ne.s32.totalorder %s2710_s13, %s2201_s22  ;;  %p2816_p1 = scmp.ne.s32.totalorder %s2801_s27, 0 }
  0x81   : > { %268 = vperm.xlu0 %2032, %v265_v10   ;;  %1767 = vmatprep.subr.bf16.mxu0 %v2317_v1  ;;  %v2051_v37 = vld [vmem:[#allocation2 + $0x90] sm:$0xff]   ;;  %v2052_v38 = vld [vmem:[#allocation2 + $0x98] sm:$0xff]   ;;  %v2053_v39 = vld [vmem:[#allocation2 + $0xa0] sm:$0xff]   ;;  %s2319_s11 = smov [#allocation8]  }
  0x82   : > { %1786 = vmatpush3.bf16.msra.mxu1 %v2042_v17  ;;  %v2054_v40 = vld [vmem:[#allocation2 + $0xa8] sm:$0xff]   ;;  %v2593_v43 = vld [vmem:[#allocation5] sm:$0xff]  ;;  %v2055_v56 = vld [vmem:[#allocation2 + $0xb0] sm:$0xff]   ;;  %p2203_p3 = pnand %p2202_p10, %p2816_p1  ;;  %s2205_s14 = sshll.u32 %s2319_s11, 4  ;;  %s2206_s14 = int_to_ptr.vmem [resolvable:$false] %s2205_s14 }
  0x83   : > { %1787 = vmatprep.subr.bf16.mxu1 %v2317_v1  ;;  %v304_v44 = vrot.slane %v2593_v43, %v303_v42  ;;  %v2056_v57 = vld [vmem:[#allocation2 + $0xb8] sm:$0xff]   ;;  %v2057_v58 = vld [vmem:[#allocation2 + $0xc0] sm:$0xff]   ;;  %v2058_v59 = vld [vmem:[#allocation2 + $0xc8] sm:$0xff]   ;;  %s2207_s25 = scalar_lea.vmem %s2206_s14, 512  ;;  %p2208_p2 = scmp.lt.s32.totalorder %s2710_s13, %s2206_s14 }
  0x84   : > { %1768 = vmatpush3.bf16.msra.mxu0 %v2035_v12  ;;  %v2059_v60 = vld [vmem:[#allocation2 + $0xd0] sm:$0xff]   ;;  %v2060_v61 = vld [vmem:[#allocation2 + $0xd8] sm:$0xff]   ;;  %v2061_v62 = vld [vmem:[#allocation2 + $0xe0] sm:$0xff]   ;;  %p2204_p4 = pneg %p2203_p3  ;;  %p2209_p5 = scmp.lt.s32.totalorder %s2207_s25, %s2201_s22 }
  0x85   : > { %271 = vperm.xlu0 %2032, %v266_v11   ;;  %1769 = vmatprep.subr.bf16.mxu0 %v2317_v1  ;;  %v2062_v63 = vld [vmem:[#allocation2 + $0xe8] sm:$0xff]   ;;  %v2064_v15 = vld [vmem:[#allocation2 + $0xf8] sm:$0xff]  }
  0x86   : > { %1788 = vmatpush3.bf16.msra.mxu1 %v2043_v19  ;;  %v2066_v17 = vld [vmem:[#allocation2 + $0x108] sm:$0xff]   ;;  %v2068_v19 = vld [vmem:[#allocation2 + $0x118] sm:$0xff]   ;;  %p2210_p11 = por %p2209_p5, %p2208_p2 }
  0x87   : > { %1789 = vmatprep.subr.bf16.mxu1 %v2317_v1 }
  0x88   : > { %1770 = vmatpush3.bf16.msra.mxu0 %v2036_v13  ;;  %p2211_p12 = pnand %p2210_p11, %p2204_p4 }
  0x89   : > { %1771 = vmatprep.subr.bf16.mxu0 %v2317_v1 }
  0x8a   : > { %1790 = vmatpush3.bf16.msra.mxu1 %v2044_v21  ;;  %v2070_v21 = vld [vmem:[#allocation2 + $0x128] sm:$0xff]  }
  0x8b   : > { %1791 = vmatprep.subr.bf16.mxu1 %v2317_v1 }
  0x8c   : > { %1772 = vmatpush3.bf16.msra.mxu0 %v2037_v14  ;;  %v2063_v14 = vld [vmem:[#allocation2 + $0xf0] sm:$0xff]  }
  0x8d   : > { %1773 = vmatprep.subr.bf16.mxu0 %v2317_v1 }
  0x8e   : > { %1792 = vmatpush3.bf16.msra.mxu1 %v2045_v22  ;;  %v535_v22 = vsub.s32 2, %v2590_v41 }
  0x8f   : > { %1793 = vmatprep.subr.bf16.mxu1 %v2317_v1 }
  0x90   : > { %1774 = vmatpush3.bf16.msra.mxu0 %v2038_v16  ;;  %v2065_v16 = vld [vmem:[#allocation2 + $0x100] sm:$0xff]  }
  0x91   : > { %1775 = vmatprep.subr.bf16.mxu0 %v2317_v1 }
  0x92   : > { %1794 = vmatpush3.bf16.msra.mxu1 %v2046_v23  ;;  %v536_v23 = vrot.slane %v2593_v43, %v535_v22  ;;  %v2089_v22 = vld [vmem:[#allocation2 + $0x1c0] sm:$0xff]  }
  0x93   : > { %1795 = vmatprep.subr.bf16.mxu1 %v2317_v1 }
  0x94   : > { %1776 = vmatpush3.bf16.msra.mxu0 %v2039_v18  ;;  %v2067_v18 = vld [vmem:[#allocation2 + $0x110] sm:$0xff]  }
  0x95   : > { %1777 = vmatprep.subr.bf16.mxu0 %v2317_v1 }
  0x96   : > { %1796 = vmatpush3.bf16.msra.mxu1 %v2047_v33 }
  0x97   : > { %1797 = vmatprep.subr.bf16.mxu1 %v2317_v1 }
  0x98   : > { %1778 = vmatpush3.bf16.msra.mxu0 %v2040_v20  ;;  %v2069_v20 = vld [vmem:[#allocation2 + $0x120] sm:$0xff]  }
  0x99   : > { %1803 = vmatprep.subr.bf16.mxu0 %v2317_v1 }
  0x9a   : > { %1798 = vmatpush3.bf16.msra.mxu1 %v2048_v34 }
  0x9b   : > { %1823 = vmatprep.subr.bf16.mxu1 %v2317_v1 }
 0x100   : > { %v269_v26 = vpop.permute.xlu0 %268 }
 0x101   : > { %vm273_vm1 = vcmp.eq.s32.totalorder %v2566_v25, %v269_v26 }
 0x102   : > { %v2570_v27 = vsel %vm273_vm1, 1.0, %v2317_v1  ;;  %vm279_vm1 = vcmp.ge.s32.totalorder %v2566_v25, 64 }
 0x103   : > { %v282_v30 = vadd.f32 %v2570_v27, %v2541_v2  ;;  %v420_v2 = vrot.slane %v2593_v43, %v419_v0  ;;  %v2081_v0 = vld [vmem:[#allocation2 + $0x180] sm:$0xff]  }
 0x104   : > { %v272_v28 = vpop.permute.xlu0 %271 }
 0x105   : > { %vm274_vm2 = vcmp.eq.s32.totalorder %v2566_v25, %v272_v28 }
 0x106   : > { %v2574_v29 = vsel %vm274_vm2, 1.0, %v2317_v1  ;;  %vm280_vm2 = vcmp.lt.s32.totalorder %v2566_v25, 66 }
 0x107   : > { %v283_v31 = vadd.f32 %v2574_v29, %v2544_v3 }
 0x109   : > { %v284_v32 = vpack.c.bf16 %v283_v31, %v282_v30 }
 0x10b   : > { %1780 = vmatmul.mubr.bf16.vlgmr.msra.gmra.mrb[0].mxu0 %v284_v32 }
 0x10c   : > { %1819 = vmatprep.mubr.msk.bf16.mxu0 %vm2318_vm0, %v2317_v1  ;;  %1804 = vmatpush3.bf16.msra.mxu0 %v2049_v35 }
 0x10d   : > { %1805 = vmatprep.subr.bf16.mxu0 %v2317_v1 }
 0x110   : > { %1806 = vmatpush3.bf16.msra.mxu0 %v2050_v36 }
 0x111   : > { %1807 = vmatprep.subr.bf16.mxu0 %v2317_v1 }
 0x114   : > { %1808 = vmatpush3.bf16.msra.mxu0 %v2051_v37 }
 0x115   : > { %1809 = vmatprep.subr.bf16.mxu0 %v2317_v1 }
 0x118   : > { %1810 = vmatpush3.bf16.msra.mxu0 %v2052_v38  ;;  %v2071_v38 = vld [vmem:[#allocation2 + $0x130] sm:$0xff]  }
 0x119   : > { %1811 = vmatprep.subr.bf16.mxu0 %v2317_v1 }
 0x11c   : > { %1812 = vmatpush3.bf16.msra.mxu0 %v2053_v39  ;;  %v2072_v39 = vld [vmem:[#allocation2 + $0x138] sm:$0xff]  }
 0x11d   : > { %1813 = vmatprep.subr.bf16.mxu0 %v2317_v1 }
 0x120   : > { %1814 = vmatpush3.bf16.msra.mxu0 %v2054_v40  ;;  %v2073_v40 = vld [vmem:[#allocation2 + $0x140] sm:$0xff]  }
 0x121   : > { %1815 = vmatprep.subr.bf16.mxu0 %v2317_v1 }
 0x124   : > { %1816 = vmatpush3.bf16.msra.mxu0 %v2055_v56 }
 0x125   : > { %1817 = vmatprep.subr.bf16.mxu0 %v2317_v1 }
 0x128   : > { %1818 = vmatpush3.bf16.msra.mxu0 %v2056_v57 }
 0x129   : > { %1843 = vmatprep.subr.bf16.mxu0 %v2317_v1 }
 0x1de   : > { %v387_v45 = vpop.f32.mrb[0].mxu0 }
 0x1df   : > { %v388_v46 = vadd.f32 %v387_v45, %v304_v44  ;;  %v1781_v47 = vpop.f32.mrb[1].mxu0  ;;  %v2075_v45 = vld [vmem:[#allocation2 + $0x150] sm:$0xff]  }
 0x1e0   : > { %v390_v48 = vpop.f32.mrb[2].mxu0  ;;  %v2077_v47 = vld [vmem:[#allocation2 + $0x160] sm:$0xff]  }
 0x1e1   : > { %v396_v49 = vmul.f32 0.2, %v388_v46  ;;  %v391_v50 = vadd.f32 %v390_v48, %v304_v44  ;;  %v1782_v51 = vpop.f32.mrb[3].mxu0  ;;  %vm394_vm3 = vcmp.ge.f32.partialorder %v388_v46, 0.0  ;;  %v2074_v44 = vld [vmem:[#allocation2 + $0x148] sm:$0xff]  }
 0x1e2   : > { %v2078_v48 = vld [vmem:[#allocation2 + $0x168] sm:$0xff]  }
 0x1e3   : > { %vm395_vm4 = vcmp.ge.f32.partialorder %v391_v50, 0.0  ;;  %v397_v52 = vmul.f32 0.2, %v391_v50  ;;  %v398_v53 = vsel %vm394_vm3, %v388_v46, %v396_v49  ;;  %v2076_v46 = vld [vmem:[#allocation2 + $0x158] sm:$0xff]   ;;  %v651_v49 = vsub.s32 3, %v2590_v41 }
 0x1e5   : > { %v399_v54 = vsel %vm395_vm4, %v391_v50, %v397_v52  ;;  %v652_v50 = vrot.slane %v2593_v43, %v651_v49  ;;  %v2097_v49 = vld [vmem:[#allocation2 + $0x200] sm:$0xff]  }
 0x1e6   : > { %v400_v55 = vpack.c.bf16 %v399_v54, %v398_v53 }
 0x1e8   : > { %1800 = vmatmul.mubr.bf16.vlgmr.msra.gmra.mrb[0].mxu1 %v400_v55 }
 0x1e9   : > { %1839 = vmatprep.mubr.msk.bf16.mxu1 %vm2318_vm0, %v2317_v1  ;;  %1824 = vmatpush3.bf16.msra.mxu1 %v2057_v58 }
 0x1ea   : > { %1825 = vmatprep.subr.bf16.mxu1 %v2317_v1 }
 0x1ed   : > { %1826 = vmatpush3.bf16.msra.mxu1 %v2058_v59 }
 0x1ee   : > { %1827 = vmatprep.subr.bf16.mxu1 %v2317_v1 }
 0x1f1   : > { %1828 = vmatpush3.bf16.msra.mxu1 %v2059_v60 }
 0x1f2   : > { %1829 = vmatprep.subr.bf16.mxu1 %v2317_v1 }
 0x1f5   : > { %1830 = vmatpush3.bf16.msra.mxu1 %v2060_v61 }
 0x1f6   : > { %1831 = vmatprep.subr.bf16.mxu1 %v2317_v1 }
 0x1f9   : > { %1832 = vmatpush3.bf16.msra.mxu1 %v2061_v62  ;;  %v2079_v62 = vld [vmem:[#allocation2 + $0x170] sm:$0xff]  }
 0x1fa   : > { %1833 = vmatprep.subr.bf16.mxu1 %v2317_v1 }
 0x1fd   : > { %1834 = vmatpush3.bf16.msra.mxu1 %v2062_v63  ;;  %v2080_v63 = vld [vmem:[#allocation2 + $0x178] sm:$0xff]  }
 0x1fe   : > { %1835 = vmatprep.subr.bf16.mxu1 %v2317_v1 }
 0x201   : > { %1836 = vmatpush3.bf16.msra.mxu1 %v2063_v14 }
 0x202   : > { %1837 = vmatprep.subr.bf16.mxu1 %v2317_v1 }
 0x205   : > { %1838 = vmatpush3.bf16.msra.mxu1 %v2064_v15 }
 0x206   : > { %1863 = vmatprep.subr.bf16.mxu1 %v2317_v1 }
 0x2bb   : > { %v503_v3 = vpop.f32.mrb[0].mxu1 }
 0x2bc   : > { %v504_v4 = vadd.f32 %v503_v3, %v420_v2  ;;  %v1801_v5 = vpop.f32.mrb[1].mxu1  ;;  %v2083_v3 = vld [vmem:[#allocation2 + $0x190] sm:$0xff]  }
 0x2bd   : > { %v506_v6 = vpop.f32.mrb[2].mxu1  ;;  %v2085_v5 = vld [vmem:[#allocation2 + $0x1a0] sm:$0xff]  }
 0x2be   : > { %v512_v7 = vmul.f32 0.2, %v504_v4  ;;  %v507_v8 = vadd.f32 %v506_v6, %v420_v2  ;;  %v1802_v9 = vpop.f32.mrb[3].mxu1  ;;  %vm510_vm5 = vcmp.ge.f32.partialorder %v504_v4, 0.0  ;;  %v2082_v2 = vld [vmem:[#allocation2 + $0x188] sm:$0xff]  }
 0x2bf   : > { %v2086_v6 = vld [vmem:[#allocation2 + $0x1a8] sm:$0xff]  }
 0x2c0   : > { %vm511_vm6 = vcmp.ge.f32.partialorder %v507_v8, 0.0  ;;  %v513_v10 = vmul.f32 0.2, %v507_v8  ;;  %v514_v11 = vsel %vm510_vm5, %v504_v4, %v512_v7  ;;  %v2084_v4 = vld [vmem:[#allocation2 + $0x198] sm:$0xff]   ;;  %v767_v7 = vsub.s32 4, %v2590_v41  ;;  %vm281_vm5 = vmand %vm279_vm1, %vm280_vm2 }
 0x2c2   : > { %v515_v12 = vsel %vm511_vm6, %v507_v8, %v513_v10  ;;  %v768_v8 = vrot.slane %v2593_v43, %v767_v7  ;;  %v2103_v7 = vld [vmem:[#allocation2 + $0x230] sm:$0xff]   ;;  %vm1362_vm6 = vcmp.ge.s32.totalorder %v2566_v25, 8 }
 0x2c3   : > { %v516_v13 = vpack.c.bf16 %v515_v12, %v514_v11 }
 0x2c5   : > { %1820 = vmatmul.mubr.bf16.vlgmr.msra.gmra.mrb[4].mxu0 %v516_v13 }
 0x2c6   : > { %1859 = vmatprep.mubr.msk.bf16.mxu0 %vm2318_vm0, %v2317_v1  ;;  %1844 = vmatpush3.bf16.msra.mxu0 %v2065_v16 }
 0x2c7   : > { %1845 = vmatprep.subr.bf16.mxu0 %v2317_v1 }
 0x2ca   : > { %1846 = vmatpush3.bf16.msra.mxu0 %v2066_v17 }
 0x2cb   : > { %1847 = vmatprep.subr.bf16.mxu0 %v2317_v1 }
 0x2ce   : > { %1848 = vmatpush3.bf16.msra.mxu0 %v2067_v18 }
 0x2cf   : > { %1849 = vmatprep.subr.bf16.mxu0 %v2317_v1 }
 0x2d2   : > { %1850 = vmatpush3.bf16.msra.mxu0 %v2068_v19 }
 0x2d3   : > { %1851 = vmatprep.subr.bf16.mxu0 %v2317_v1 }
 0x2d6   : > { %1852 = vmatpush3.bf16.msra.mxu0 %v2069_v20  ;;  %v2087_v20 = vld [vmem:[#allocation2 + $0x1b0] sm:$0xff]  }
 0x2d7   : > { %1853 = vmatprep.subr.bf16.mxu0 %v2317_v1 }
 0x2da   : > { %1854 = vmatpush3.bf16.msra.mxu0 %v2070_v21  ;;  %v2088_v21 = vld [vmem:[#allocation2 + $0x1b8] sm:$0xff]  }
 0x2db   : > { %1855 = vmatprep.subr.bf16.mxu0 %v2317_v1 }
 0x2de   : > { %1856 = vmatpush3.bf16.msra.mxu0 %v2071_v38 }
 0x2df   : > { %1857 = vmatprep.subr.bf16.mxu0 %v2317_v1 }
 0x2e2   : > { %1858 = vmatpush3.bf16.msra.mxu0 %v2072_v39 }
 0x2e3   : > { %1883 = vmatprep.subr.bf16.mxu0 %v2317_v1 }
 0x398   : > { %v619_v24 = vpop.f32.mrb[4].mxu0 }
 0x399   : > { %v620_v26 = vadd.f32 %v619_v24, %v536_v23  ;;  %v1821_v28 = vpop.f32.mrb[5].mxu0  ;;  %v2091_v24 = vld [vmem:[#allocation2 + $0x1d0] sm:$0xff]  }
 0x39a   : > { %v622_v30 = vpop.f32.mrb[6].mxu0  ;;  %v2093_v28 = vld [vmem:[#allocation2 + $0x1e0] sm:$0xff]  }
 0x39b   : > { %v628_v31 = vmul.f32 0.2, %v620_v26  ;;  %v623_v32 = vadd.f32 %v622_v30, %v536_v23  ;;  %v1822_v33 = vpop.f32.mrb[7].mxu0  ;;  %vm626_vm7 = vcmp.ge.f32.partialorder %v620_v26, 0.0  ;;  %v2090_v23 = vld [vmem:[#allocation2 + $0x1c8] sm:$0xff]  }
 0x39c   : > { %v2094_v30 = vld [vmem:[#allocation2 + $0x1e8] sm:$0xff]  }
 0x39d   : > { %vm627_vm8 = vcmp.ge.f32.partialorder %v623_v32, 0.0  ;;  %v629_v34 = vmul.f32 0.2, %v623_v32  ;;  %v630_v35 = vsel %vm626_vm7, %v620_v26, %v628_v31  ;;  %v2092_v26 = vld [vmem:[#allocation2 + $0x1d8] sm:$0xff]   ;;  %v883_v31 = vsub.s32 5, %v2590_v41 }
 0x39e   : > { %vm1363_vm7 = vcmp.lt.s32.totalorder %v2566_v25, 26 }
 0x39f   : > { %v631_v36 = vsel %vm627_vm8, %v623_v32, %v629_v34  ;;  %v884_v32 = vrot.slane %v2593_v43, %v883_v31  ;;  %vm1364_vm8 = vmand %vm1362_vm6, %vm1363_vm7 }
 0x3a0   : > { %v632_v37 = vpack.c.bf16 %v631_v36, %v630_v35 }
 0x3a2   : > { %1840 = vmatmul.mubr.bf16.vlgmr.msra.gmra.mrb[4].mxu1 %v632_v37 }
 0x3a3   : > { %1879 = vmatprep.mubr.msk.bf16.mxu1 %vm2318_vm0, %v2317_v1  ;;  %1864 = vmatpush3.bf16.msra.mxu1 %v2073_v40 }
 0x3a4   : > { %1865 = vmatprep.subr.bf16.mxu1 %v2317_v1 }
 0x3a7   : > { %1866 = vmatpush3.bf16.msra.mxu1 %v2074_v44 }
 0x3a8   : > { %1867 = vmatprep.subr.bf16.mxu1 %v2317_v1 }
 0x3ab   : > { %1868 = vmatpush3.bf16.msra.mxu1 %v2075_v45 }
 0x3ac   : > { %1869 = vmatprep.subr.bf16.mxu1 %v2317_v1 }
 0x3af   : > { %1870 = vmatpush3.bf16.msra.mxu1 %v2076_v46 }
 0x3b0   : > { %1871 = vmatprep.subr.bf16.mxu1 %v2317_v1 }
 0x3b3   : > { %1872 = vmatpush3.bf16.msra.mxu1 %v2077_v47  ;;  %v2095_v47 = vld [vmem:[#allocation2 + $0x1f0] sm:$0xff]  }
 0x3b4   : > { %1873 = vmatprep.subr.bf16.mxu1 %v2317_v1 }
 0x3b7   : > { %1874 = vmatpush3.bf16.msra.mxu1 %v2078_v48  ;;  %v2096_v48 = vld [vmem:[#allocation2 + $0x1f8] sm:$0xff]  }
 0x3b8   : > { %1875 = vmatprep.subr.bf16.mxu1 %v2317_v1 }
 0x3bb   : > { %1876 = vmatpush3.bf16.msra.mxu1 %v2079_v62 }
 0x3bc   : > { %1877 = vmatprep.subr.bf16.mxu1 %v2317_v1 }
 0x3bf   : > { %1878 = vmatpush3.bf16.msra.mxu1 %v2080_v63 }
 0x3c0   : > { %1903 = vmatprep.subr.bf16.mxu1 %v2317_v1 }
 0x475   : > { %v735_v51 = vpop.f32.mrb[4].mxu1 }
 0x476   : > { %v736_v52 = vadd.f32 %v735_v51, %v652_v50  ;;  %v1841_v53 = vpop.f32.mrb[5].mxu1  ;;  %v2099_v51 = vld [vmem:[#allocation2 + $0x210] sm:$0xff]  }
 0x477   : > { %v738_v54 = vpop.f32.mrb[6].mxu1  ;;  %v2101_v53 = vld [vmem:[#allocation2 + $0x220] sm:$0xff]  }
 0x478   : > { %v744_v55 = vmul.f32 0.2, %v736_v52  ;;  %v739_v56 = vadd.f32 %v738_v54, %v652_v50  ;;  %v1842_v57 = vpop.f32.mrb[7].mxu1  ;;  %vm742_vm9 = vcmp.ge.f32.partialorder %v736_v52, 0.0  ;;  %v2098_v50 = vld [vmem:[#allocation2 + $0x208] sm:$0xff]   ;;  %v999_v54 = vsub.s32 6, %v2590_v41 }
 0x47a   : > { %vm743_vm10 = vcmp.ge.f32.partialorder %v739_v56, 0.0  ;;  %v745_v58 = vmul.f32 0.2, %v739_v56  ;;  %v2634_v59 = vsel %vm742_vm9, %v736_v52, %v744_v55  ;;  %v2100_v52 = vld [vmem:[#allocation2 + $0x218] sm:$0xff]   ;;  %v1000_v55 = vrot.slane %v2593_v43, %v999_v54 }
 0x47b   : > { %vm1341_vm9 = vcmp.ge.s32.totalorder %v2566_v25, 2 }
 0x47c   : > { %v2636_v60 = vsel %vm743_vm10, %v739_v56, %v745_v58  ;;  %vm1342_vm10 = vcmp.lt.s32.totalorder %v2566_v25, 8 }
 0x47d   : > { %v748_v61 = vpack.c.bf16 %v2636_v60, %v2634_v59 }
 0x47f   : > { %1860 = vmatmul.mubr.bf16.vlgmr.msra.gmra.mrb[8].mxu0 %v748_v61 }
 0x480   : > { %1899 = vmatprep.mubr.msk.bf16.mxu0 %vm2318_vm0, %v2317_v1  ;;  %1884 = vmatpush3.bf16.msra.mxu0 %v2081_v0 }
 0x481   : > { %1885 = vmatprep.subr.bf16.mxu0 %v2317_v1 }
 0x484   : > { %1886 = vmatpush3.bf16.msra.mxu0 %v2082_v2 }
 0x485   : > { %1887 = vmatprep.subr.bf16.mxu0 %v2317_v1 }
 0x488   : > { %1888 = vmatpush3.bf16.msra.mxu0 %v2083_v3 }
 0x489   : > { %1889 = vmatprep.subr.bf16.mxu0 %v2317_v1 }
 0x48c   : > { %1890 = vmatpush3.bf16.msra.mxu0 %v2084_v4 }
 0x48d   : > { %1891 = vmatprep.subr.bf16.mxu0 %v2317_v1 }
 0x490   : > { %1892 = vmatpush3.bf16.msra.mxu0 %v2085_v5 }
 0x491   : > { %1893 = vmatprep.subr.bf16.mxu0 %v2317_v1 }
 0x494   : > { %1894 = vmatpush3.bf16.msra.mxu0 %v2086_v6  ;;  %v2102_v6 = vld [vmem:[#allocation2 + $0x228] sm:$0xff]  }
 0x495   : > { %1895 = vmatprep.subr.bf16.mxu0 %v2317_v1 }
 0x498   : > { %1896 = vmatpush3.bf16.msra.mxu0 %v2087_v20 }
 0x499   : > { %1897 = vmatprep.subr.bf16.mxu0 %v2317_v1 }
 0x49c   : > { %1898 = vmatpush3.bf16.msra.mxu0 %v2088_v21 }
 0x49d   : > { %1923 = vmatprep.subr.bf16.mxu0 %v2317_v1 }
 0x552   : > { %v851_v9 = vpop.f32.mrb[8].mxu0 }
 0x553   : > { %v852_v10 = vadd.f32 %v851_v9, %v768_v8  ;;  %v1861_v11 = vpop.f32.mrb[9].mxu0  ;;  %v1115_v9 = vsub.s32 7, %v2590_v41 }
 0x554   : > { %v854_v12 = vpop.f32.mrb[10].mxu0 }
 0x555   : > { %v860_v13 = vmul.f32 0.2, %v852_v10  ;;  %v855_v14 = vadd.f32 %v854_v12, %v768_v8  ;;  %v1862_v15 = vpop.f32.mrb[11].mxu0  ;;  %vm858_vm11 = vcmp.ge.f32.partialorder %v852_v10, 0.0  ;;  %v2104_v8 = vld [vmem:[#allocation2 + $0x238] sm:$0xff]  }
 0x557   : > { %vm859_vm12 = vcmp.ge.f32.partialorder %v855_v14, 0.0  ;;  %v861_v16 = vmul.f32 0.2, %v855_v14  ;;  %v862_v17 = vsel %vm858_vm11, %v852_v10, %v860_v13  ;;  %v1116_v10 = vrot.slane %v2593_v43, %v1115_v9 }
 0x559   : > { %v863_v18 = vsel %vm859_vm12, %v855_v14, %v861_v16 }
 0x55a   : > { %v864_v19 = vpack.c.bf16 %v863_v18, %v862_v17 }
 0x55c   : > { %1880 = vmatmul.mubr.bf16.vlgmr.msra.gmra.mrb[8].mxu1 %v864_v19 }
 0x55d   : > { %1919 = vmatprep.mubr.msk.bf16.mxu1 %vm2318_vm0, %v2317_v1  ;;  %1904 = vmatpush3.bf16.msra.mxu1 %v2089_v22 }
 0x55e   : > { %1905 = vmatprep.subr.bf16.mxu1 %v2317_v1 }
 0x561   : > { %1906 = vmatpush3.bf16.msra.mxu1 %v2090_v23  ;;  %v260_v23 = vld [vmem:[#allocation5 + $0x8] sm:$0xff] }
 0x562   : > { %1907 = vmatprep.subr.bf16.mxu1 %v2317_v1 }
 0x565   : > { %1908 = vmatpush3.bf16.msra.mxu1 %v2091_v24  ;;  %v1234_v24 = vrot.slane %v260_v23, %v303_v42 }
 0x566   : > { %1909 = vmatprep.subr.bf16.mxu1 %v2317_v1 }
 0x569   : > { %1910 = vmatpush3.bf16.msra.mxu1 %v2092_v26 }
 0x56a   : > { %1911 = vmatprep.subr.bf16.mxu1 %v2317_v1 }
 0x56d   : > { %1912 = vmatpush3.bf16.msra.mxu1 %v2093_v28 }
 0x56e   : > { %1913 = vmatprep.subr.bf16.mxu1 %v2317_v1 }
 0x571   : > { %1914 = vmatpush3.bf16.msra.mxu1 %v2094_v30 }
 0x572   : > { %1915 = vmatprep.subr.bf16.mxu1 %v2317_v1 }
 0x575   : > { %1916 = vmatpush3.bf16.msra.mxu1 %v2095_v47 }
 0x576   : > { %1917 = vmatprep.subr.bf16.mxu1 %v2317_v1 }
 0x579   : > { %1918 = vmatpush3.bf16.msra.mxu1 %v2096_v48 }
 0x62f   : > { %v967_v33 = vpop.f32.mrb[8].mxu1 }
 0x630   : > { %v968_v34 = vadd.f32 %v967_v33, %v884_v32  ;;  %v1881_v35 = vpop.f32.mrb[9].mxu1 }
 0x631   : > { %v970_v36 = vpop.f32.mrb[10].mxu1 }
 0x632   : > { %v976_v37 = vmul.f32 0.2, %v968_v34  ;;  %v971_v38 = vadd.f32 %v970_v36, %v884_v32  ;;  %v1882_v39 = vpop.f32.mrb[11].mxu1  ;;  %vm974_vm13 = vcmp.ge.f32.partialorder %v968_v34, 0.0 }
 0x634   : > { %vm975_vm14 = vcmp.ge.f32.partialorder %v971_v38, 0.0  ;;  %v977_v40 = vmul.f32 0.2, %v971_v38  ;;  %v978_v44 = vsel %vm974_vm13, %v968_v34, %v976_v37  ;;  %vm1343_vm13 = vmand %vm1341_vm9, %vm1342_vm10 }
 0x636   : > { %v979_v45 = vsel %vm975_vm14, %v971_v38, %v977_v40  ;;  %vm1399_vm14 = vcmask 7168  }
 0x637   : > { %v980_v46 = vpack.c.bf16 %v979_v45, %v978_v44 }
 0x639   : > { %1900 = vmatmul.mubr.bf16.vlgmr.msra.gmra.mrb[12].mxu0 %v980_v46 }
 0x63a   : > { %1939 = vmatprep.mubr.msk.bf16.mxu0 %vm2318_vm0, %v2317_v1  ;;  %1924 = vmatpush3.bf16.msra.mxu0 %v2097_v49 }
 0x63b   : > { %1925 = vmatprep.subr.bf16.mxu0 %v2317_v1 }
 0x63e   : > { %1926 = vmatpush3.bf16.msra.mxu0 %v2098_v50 }
 0x63f   : > { %1927 = vmatprep.subr.bf16.mxu0 %v2317_v1 }
 0x642   : > { %1928 = vmatpush3.bf16.msra.mxu0 %v2099_v51 }
 0x643   : > { %1929 = vmatprep.subr.bf16.mxu0 %v2317_v1 }
 0x646   : > { %1930 = vmatpush3.bf16.msra.mxu0 %v2100_v52 }
 0x647   : > { %1931 = vmatprep.subr.bf16.mxu0 %v2317_v1 }
 0x64a   : > { %1932 = vmatpush3.bf16.msra.mxu0 %v2101_v53 }
 0x64b   : > { %1933 = vmatprep.subr.bf16.mxu0 %v2317_v1 }
 0x64e   : > { %1934 = vmatpush3.bf16.msra.mxu0 %v2102_v6 }
 0x64f   : > { %1935 = vmatprep.subr.bf16.mxu0 %v2317_v1 }
 0x652   : > { %1936 = vmatpush3.bf16.msra.mxu0 %v2103_v7 }
 0x653   : > { %1937 = vmatprep.subr.bf16.mxu0 %v2317_v1 }
 0x656   : > { %1938 = vmatpush3.bf16.msra.mxu0 %v2104_v8 }
 0x70c   : > { %v1083_v56 = vpop.f32.mrb[12].mxu0 }
 0x70d   : > { %v1084_v57 = vadd.f32 %v1083_v56, %v1000_v55  ;;  %v1901_v58 = vpop.f32.mrb[13].mxu0 }
 0x70e   : > { %v1086_v61 = vpop.f32.mrb[14].mxu0  ;;  %v1331_v58 = vadd.s32 8, %v2590_v41 }
 0x70f   : > { %v1092_v62 = vmul.f32 0.2, %v1084_v57  ;;  %v1087_v63 = vadd.f32 %v1086_v61, %v1000_v55  ;;  %v1902_v0 = vpop.f32.mrb[15].mxu0  ;;  %vm1090_vm15 = vcmp.ge.f32.partialorder %v1084_v57, 0.0  ;;  %v1332_v61 = vstv %s1670_s5 }
 0x710   : > { %v1334_v0 = vadd.s32 %v1332_v61, %v1331_v58 }
 0x711   : > { %vm1091_vm0 = vcmp.ge.f32.partialorder %v1087_v63, 0.0  ;;  %v1093_v2 = vmul.f32 0.2, %v1087_v63  ;;  %v1094_v3 = vsel %vm1090_vm15, %v1084_v57, %v1092_v62  ;;  %v2113_v62 = vld [vmem:[%s2532_s7 + $0x8] sm:$0xff] }
 0x712   : > { %vm1336_vm11 = vcmp.lt.s32.totalorder %v1334_v0, 37 }
 0x713   : > { %v1095_v4 = vsel %vm1091_vm0, %v1087_v63, %v1093_v2  ;;  %v2114_v2 = vld [vmem:[%s2532_s7] sm:$0xff] }
 0x714   : > { %v1096_v5 = vpack.c.bf16 %v1095_v4, %v1094_v3  ;;  %v1333_v4 = vadd.s32 %v1332_v61, %v2590_v41 }
 0x716   : > { %1920 = vmatmul.mubr.bf16.vlgmr.msra.gmra.mrb[12].mxu1 %v1096_v5  ;;  %vm1335_vm12 = vcmp.lt.s32.totalorder %v1333_v4, 37 }
 0x717   : > { %v1671_v7 = vsel %vm1335_vm12, 1.0, %v2317_v1 }
 0x7e9   : > { %v1199_v11 = vpop.f32.mrb[12].mxu1 }
 0x7ea   : > { %v1200_v12 = vadd.f32 %v1199_v11, %v1116_v10  ;;  %v1921_v13 = vpop.f32.mrb[13].mxu1 }
 0x7eb   : > { %v1202_v14 = vpop.f32.mrb[14].mxu1 }
 0x7ec   : > { %vm1206_vm3 = vcmp.ge.f32.partialorder %v1200_v12, 0.0  ;;  %v1208_v15 = vmul.f32 0.2, %v1200_v12  ;;  %v1203_v16 = vadd.f32 %v1202_v14, %v1116_v10  ;;  %v1922_v17 = vpop.f32.mrb[15].mxu1 }
 0x7ee   : > { %v1210_v18 = vsel %vm1206_vm3, %v1200_v12, %v1208_v15  ;;  %vm1207_vm4 = vcmp.ge.f32.partialorder %v1203_v16, 0.0  ;;  %v1209_v19 = vmul.f32 0.2, %v1203_v16 }
 0x7ef   : > { %v1212_v21 = vsel %vm281_vm5, %v1210_v18, %v1200_v12 }
 0x7f0   : > { %v1211_v20 = vsel %vm1207_vm4, %v1203_v16, %v1209_v19 }
 0x7f1   : > { %v1213_v22 = vsel %vm281_vm5, %v1211_v20, %v1203_v16 }
 0x7f2   : > { %v1214_v43 = vpack.c.bf16 %v1213_v22, %v1212_v21 }
 0x7f4   : > { %1940 = vmatmul.mubr.bf16.vlgmr.msra.gmra.mrb[16].mxu0 %v1214_v43 }
 0x8c7   : > { %v1317_v26 = vpop.f32.mrb[16].mxu0 }
 0x8c8   : > { %v1318_v28 = vadd.f32 %v1317_v26, %v1234_v24  ;;  %v1941_v30 = vpop.f32.mrb[17].mxu0 }
 0x8c9   : > { %v1320_v31 = vpop.f32.mrb[18].mxu0 }
 0x8ca   : > { %v1324_v32 = vadd.f32 %v1318_v28, %v2634_v59  ;;  %v1321_v33 = vadd.f32 %v1320_v31, %v1234_v24  ;;  %v1942_v34 = vpop.f32.mrb[19].mxu0  ;;  %v1365_v35 = vsel %vm1364_vm8, %v1318_v28, -1e+30  ;;  %v1344_v3 = vsub.f32 %v2114_v2, %v1318_v28 }
 0x8cb   : > { %1367 = vmax.xlane.f32.xlu1 %v1365_v35 }
 0x8cc   : > { %1326 = vst [vmem:[%s2687_s26] sm:$0xff] %v1324_v32  ;;  %v1325_v42 = vadd.f32 %v1321_v33, %v2636_v60  ;;  %v1366_v36 = vsel %vm1364_vm8, %v1321_v33, -1e+30  ;;  %v1345_v63 = vsub.f32 %v2113_v62, %v1321_v33  ;;  %v1346_v5 = vmul.f32 %v1344_v3, %v1344_v3 }
 0x8ce   : > { %1327 = vst [vmem:[%s2687_s26 + $0x8] sm:$0xff] %v1325_v42  ;;  %v1348_v8 = vsel %vm1343_vm13, %v1346_v5, 0.0 }
 0x8cf   : > { %1369 = vmax.xlane.f32.xlu1 %v1366_v36  ;;  %v1350_v10 = vmul.f32 %v1671_v7, %v1348_v8 }
 0x958   : > { %v1368_v37 = vpop.xlane.xlu1 %1367 }
 0x959   : > { %v1371_v38 = vsub.f32 %v1365_v35, %v1368_v37 }
 0x95b   : > { %v1373_v39 = vmul.f32 1.442695, %v1371_v38 }
 0x95c   : > { %v1370_v40 = vpop.xlane.xlu1 %1369 }
 0x95d   : > { %2105 = vpow2.f32 %v1373_v39  ;;  %v1372_v59 = vsub.f32 %v1366_v36, %v1370_v40 }
 0x95f   : > { %v1375_v44 = vmul.f32 1.442695, %v1372_v59 }
 0x961   : > { %2107 = vpow2.f32 %v1375_v44 }
 0x967   : > { %v2106_v45 = vpop.eup %2105 }
 0x968   : > { %1377 = vadd.xlane.f32.xlu0 %v2106_v45 }
 0x96b   : > { %v2108_v46 = vpop.eup %2107 }
 0x96c   : > { %1379 = vadd.xlane.f32.xlu1 %v2108_v46 }
 0x9f5   : > { %v1378_v47 = vpop.xlane.xlu0 %1377 }
 0x9f6   : > { %2109 = vlog2.f32 %v1378_v47 }
 0x9f9   : > { %v1380_v48 = vpop.xlane.xlu1 %1379 }
 0x9fa   : > { %2111 = vlog2.f32 %v1380_v48 }
 0xa00   : > { %v2110_v60 = vpop.eup %2109 }
 0xa01   : > { %v1382_v49 = vmul.f32 0.6931472, %v2110_v60 }
 0xa03   : > { %v1385_v50 = vadd.f32 %v1382_v49, %v1368_v37 }
 0xa04   : > { %v2112_v51 = vpop.eup %2111 }
 0xa05   : > { %v1384_v52 = vmul.f32 0.6931472, %v2112_v51  ;;  %v1387_v53 = vsub.f32 %v1318_v28, %v1385_v50 }
 0xa07   : > { %v1386_v54 = vadd.f32 %v1384_v52, %v1370_v40  ;;  %v1389_v55 = vmul.f32 %v2570_v27, %v1387_v53  ;;  %v1347_v27 = vmul.f32 %v1345_v63, %v1345_v63 }
 0xa09   : > { %1391 = vadd.xlane.f32.xlu1 %v1389_v55  ;;  %v1388_v56 = vsub.f32 %v1321_v33, %v1386_v54  ;;  %v1349_v6 = vsel %vm1343_vm13, %v1347_v27, 0.0 }
 0xa0b   : > { %v1390_v57 = vmul.f32 %v2574_v29, %v1388_v56  ;;  %v1672_v29 = vsel %vm1336_vm11, 1.0, %v2317_v1 }
 0xa0c   : > { %v1351_v9 = vmul.f32 %v1672_v29, %v1349_v6 }
 0xa0d   : > { %1393 = vadd.xlane.f32.xlu1 %v1390_v57 }
 0xa0e   : > { %v1352_v11 = vadd.f32 %v1351_v9, %v1350_v10 }
 0xa10   : > { %v1353_v12 = vrot.slane %v1352_v11, 4 }
 0xa12   : > { %v1354_v13 = vadd.f32 %v1353_v12, %v1352_v11 }
 0xa14   : > { %v1355_v16 = vrot.slane %v1354_v13, 2 }
 0xa16   : > { %v1356_v20 = vadd.f32 %v1355_v16, %v1354_v13 }
 0xa18   : > { %v1357_v23 = vrot.slane %v1356_v20, 1 }
 0xa1a   : > { %v1358_v24 = vadd.f32 %v1357_v23, %v1356_v20 }
 0xa96   : > { %v1392_v14 = vpop.xlane.xlu1 %1391 }
 0xa97   : > { %v1395_v15 = vsub.f32 0.0, %v1392_v14 }
 0xa99   : > { %v1397_v18 = vmul.f32 %v1671_v7, %v1395_v15 }
 0xa9a   : > { %v1394_v17 = vpop.xlane.xlu1 %1393 }
 0xa9b   : > { %v1396_v19 = vsub.f32 0.0, %v1394_v17  ;;  %v1400_v1 = vsel %vm1399_vm14, %v1397_v18, 0.0 }
 0xa9d   : > { %v1398_v21 = vmul.f32 %v1672_v29, %v1396_v19 }
 0xa9f   : > { %v1401_v22 = vsel %vm1399_vm14, %v1398_v21, 0.0 }
 0xaa0   : > { %v1402_v43 = vadd.f32 %v1401_v22, %v1400_v1 }
 0xaa2   : > { %1403 = vadd.xlane.f32.xlu1 %v1402_v43 }
 0xaa6   : > { %1359 = vadd.xlane.f32.xlu1 %v1358_v24 }
 0xaa7   : > { %2214 = shalt.err (!%p2211_p12)
}
 0xaa8   : > { %s2215_s6 = scalar_lea.hbm %s2707_s12, 256  ;;  %s2219_s30 = scalar_lea.hbm %s2791_s3, 768 }
 0xaa9   : > { %p2216_p0 = scmp.ne.s32.totalorder %s2707_s12, %s2215_s6  ;;  %p2220_p8 = scmp.lt.u32.totalorder %s2707_s12, %s2791_s3 }
 0xaaa   : > { %p2221_p9 = scmp.lt.u32.totalorder %s2219_s30, %s2215_s6  ;;  %p2223_p10 = scmp.lt.u32.totalorder %s2215_s6, %s2707_s12 }
 0xaab   : > { %p2217_p6 = pnand %p2216_p0, %p2816_p1 }
 0xaac   : > { %p2222_p7 = por %p2221_p9, %p2220_p8 }
 0xaad   : > { %p2218_p13 = pneg %p2217_p6 }
 0xaae   : > { %p2224_p3 = por %p2223_p10, %p2222_p7 }
 0xab0   : > { %p2225_p4 = pnand %p2224_p3, %p2218_p13 }
 0xab2   : > { %2228 = shalt.err (!%p2225_p4)
}
 0xab3   : > { %s2320_s5 = smov 128   ;;  %s2321_s23 = smov 8   ;;  %vm1414_vm15 = vcmp.eq.s32.totalorder %v2590_v41, 1  ;;  %vm1415_vm0 = vcmp.eq.s32.totalorder %v2566_v25, 0  ;;  %vm1420_vm2 = vcmp.eq.s32.totalorder %v2566_v25, 1  ;;  %vm1412_vm3 = vcmp.eq.s32.totalorder %v2590_v41, 0 }
 0xab4   : > { %1961 = dma.vmem_to_hbm [thread:$0]  (%p2816_p1), %s2710_s13, 256, %s2707_s12, %s1427_s20, %s2320_s5, %s2320_s5, %s2321_s23   ;;  %vm1416_vm1 = vmand %vm1414_vm15, %vm1415_vm0  ;;  %v1413_v37 = vsel %vm1412_vm3, %v1358_v24, 0.0 }
 0xab5   : > { %s1595_s8 = sshll.u32 %s2527_s0, 3  ;;  %vm1421_vm4 = vmand %vm1414_vm15, %vm1420_vm2  ;;  %s1677_s12 = sshll.u32 %s2369_s19, 7 }
 0xab6   : > { %s253_s20 = scalar_lea.vmem [#allocation9], %s1595_s8  ;;  %s2745_s25 = scalar_lea.hbm %s2792_s4, %s1677_s12 }
 0xab7   : > { %s1461_s22 = sshll.u32 %s253_s20, 4  ;;  %s1432_s19 = scalar_lea.sflag [#allocation10], %s2527_s0  ;;  %s2747_s22 = int_to_ptr.vmem [resolvable:$true] %s1461_s22 }
 0xab8   : > { %s2229_s6 = scalar_lea.vmem %s2747_s22, 128  ;;  %s2322_s10 = smov [#allocation9]  }
 0xab9   : > { %p2230_p2 = scmp.ne.s32.totalorder %s2747_s22, %s2229_s6  ;;  %s2233_s29 = sshll.u32 %s2322_s10, 4  ;;  %s2234_s29 = int_to_ptr.vmem [resolvable:$false] %s2233_s29 }
 0xaba   : > { %s2235_s30 = scalar_lea.vmem %s2234_s29, 256  ;;  %p2236_p12 = scmp.lt.s32.totalorder %s2747_s22, %s2234_s29 }
 0xabb   : > { %p2231_p5 = pnand %p2230_p2, %p2816_p1  ;;  %p2237_p0 = scmp.lt.s32.totalorder %s2235_s30, %s2229_s6 }
 0xabd   : > { %p2232_p11 = pneg %p2231_p5  ;;  %p2238_p6 = por %p2237_p0, %p2236_p12 }
 0xabf   : > { %p2239_p13 = pnand %p2238_p6, %p2232_p11 }
 0xb2f   : > { %v1404_v26 = vpop.xlane.xlu1 %1403 }
 0xb30   : > { %v1405_v28 = vrot.slane %v1404_v26, 4 }
 0xb32   : > { %v1406_v30 = vadd.f32 %v1405_v28, %v1404_v26 }
 0xb33   : > { %v1360_v31 = vpop.xlane.xlu1 %1359 }
 0xb34   : > { %v1407_v32 = vrot.slane %v1406_v30, 2  ;;  %1947 = vpush %v1360_v31 }
 0xb36   : > { %v1408_v33 = vadd.f32 %v1407_v32, %v1406_v30 }
 0xb38   : > { %v1409_v34 = vrot.slane %v1408_v33, 1 }
 0xb3a   : > { %v1410_v35 = vadd.f32 %v1409_v34, %v1408_v33 }
 0xb3c   : > { %1949 = vpush %v1410_v35 }
 0xb65   : > { %s1948_s9 = spop %1947 }
 0xb66   : > { %v1417_v42 = vstv %s1948_s9 }
 0xb67   : > { %v1418_v36 = vsel %vm1416_vm1, %v1417_v42, 0.0 }
 0xb68   : > { %v1419_v38 = vadd.f32 %v1418_v36, %v1413_v37 }
 0xb6d   : > { %s1950_s13 = spop %1949 }
 0xb6e   : > { %v1422_v39 = vstv %s1950_s13 }
 0xb6f   : > { %v1423_v40 = vsel %vm1421_vm4, %v1422_v39, 0.0 }
 0xb70   : > { %v1424_v59 = vadd.f32 %v1423_v40, %v1419_v38 }
 0xb72   : > { %1425 = vst [vmem:[%s253_s20] sm:$0xff] %v1424_v59 }
 0xb73   : > { %2242 = shalt.err (!%p2239_p13)
}
 0xb74   : > { %s2243_s0 = scalar_lea.hbm %s2745_s25, 128  ;;  %s2247_s5 = scalar_lea.hbm %s2792_s4, 384 }
 0xb75   : > { %p2244_p8 = scmp.ne.s32.totalorder %s2745_s25, %s2243_s0  ;;  %p2248_p10 = scmp.lt.u32.totalorder %s2745_s25, %s2792_s4 }
 0xb76   : > { %p2249_p3 = scmp.lt.u32.totalorder %s2247_s5, %s2243_s0  ;;  %p2251_p2 = scmp.lt.u32.totalorder %s2243_s0, %s2745_s25 }
 0xb77   : > { %p2245_p9 = pnand %p2244_p8, %p2816_p1 }
 0xb78   : > { %p2250_p4 = por %p2249_p3, %p2248_p10 }
 0xb79   : > { %p2246_p7 = pneg %p2245_p9 }
 0xb7a   : > { %p2252_p5 = por %p2251_p2, %p2250_p4 }
 0xb7c   : > { %p2253_p11 = pnand %p2252_p5, %p2246_p7 }
 0xb7e   : > { %2256 = shalt.err (!%p2253_p11)
}
 0xb7f   : > { %1962 = dma.vmem_to_hbm [thread:$0]  (%p2816_p1), %s2747_s22, 128, %s2745_s25, %s1432_s19  }
 0xb80 PF: > { %p1988_p12 = scmp.ge.s32.totalorder %s2307_s18, 2  ;;  %s1473_s8 = sand.u32 1, %s2295_s15  }
 0xb81   : > { %p2817_p0 = scmp.ne.s32.totalorder %s2802_s28, 0  ;;  %s1474_s12 = scalar_lea.sflag [#allocation4], %s1473_s8 }
 0xb83   : > { %p1977_p6 = pnand %p1988_p12, %p2817_p0 }
 0xb85   : > { %2286 = dma.done.wait (!%p1977_p6), %s1474_s12, 256  }
 0xb86   : > { %2288 = vsyncadd (!%p1977_p6), %s1474_s12, 4294967040  ;;  %s1483_s13 = scalar_lea.sflag [#allocation10], %s1473_s8 }
 0xb87   : > { %2290 = dma.done.wait (!%p1977_p6), %s1483_s13, 128  }
 0xb88   : > { %2292 = vsyncadd (!%p1977_p6), %s1483_s13, 4294967168  ;;  %p20_p1 = scmp.ge.s32.totalorder %s2373_s21, 5   ;;  %s2818_s15 = smov %s2299_s16 }
 0xb89   : > { %s2819_s16 = smov %s2303_s17  ;;  %s2820_s17 = smov %s2385_s24 }
 0xb8a   : > { %s2821_s18 = smov %s2373_s21  ;;  %22 = sbr.rel (!%p20_p1) target bundleno = 9 (0x9), region = 101 }
 0xb91   :  { %1488 = vsyncpa [#allocation3], 1 }
 0xb92   :  { %1490 = vsyncpa [#allocation3 + $0x1], 1 }
 0xb93   :  { %1491 = vsyncpa [#allocation6], 1 }
 0xb94   :  { %1492 = vsyncpa [#allocation4], 1 }
 0xb95   :  { %1494 = vsyncpa [#allocation4 + $0x1], 1 }
 0xb96   :  { %1495 = vsyncpa [#allocation10], 1 }
 0xb97   :  { %1497 = vsyncpa [#allocation10 + $0x1], 1 }

</bundles_post_ra>
